<compile_context>
chip_gen: v6e
topology: v6e:2x2x1
jax: 0.10.0
libtpu: 0.0.40
codegen_flags: <defaults>
</compile_context>

<pallas_src>
import jax
import jax.numpy as jnp
from jax.experimental import pallas as pl
from jax.experimental.pallas import tpu as pltpu


def _vmem_limit_bytes():
    """~3/4 of physical VMEM per generation (96 MiB v5e/v6e, 48 MiB v7x)."""
    try:
        cap = int(pltpu.get_tpu_info().vmem_capacity_bytes)
    except Exception:
        cap = 64 * 1024 * 1024          # conservative fallback (v7x physical)
    return max(32 * 1024 * 1024, min(3 * cap // 4, 112 * 1024 * 1024))


_VMEM_LIMIT = _vmem_limit_bytes()


# ----------------------------------------------------------------------------
# Kernel 1: ConvTranspose2d(k=2, s=2) fused with the 2x2 pixel shuffle.
# grid = (B, H) (both "parallel"): each step does one (W, Cin) @ (Cin, 4*Cup)
# MXU matmul (lane-dense N=4*Cup) + f32 bias, and stores the two upsampled
# output rows straight into their final positions via the output BlockSpec.
# ----------------------------------------------------------------------------
def _upconv_kernel(x_ref, w_ref, b_ref, o_ref):
    # x: (W, Cin) bf16 | w: (Cin, 4*Cup) bf16, columns ordered (dh, dw, cout)
    # b: (1, 4*Cup) f32 | o: (2, W, 2*Cup) -> rows 2h / 2h+1, cols (dw, cout)
    r = jnp.dot(x_ref[...], w_ref[...], preferred_element_type=jnp.float32)
    r = (r + b_ref[...]).astype(o_ref.dtype)
    half = r.shape[1] // 2
    o_ref[0] = r[:, :half]            # dh = 0 -> output row 2h
    o_ref[1] = r[:, half:]            # dh = 1 -> output row 2h + 1


def upconv2x2(x1_nhwc, w_up, b_up):
    """x1_nhwc: (B, H, W, Cin) bf16.  Returns (B, 2H, W, 2*Cup) bf16 whose
    free row-major reshape is the upsampled NHWC tensor (B, 2H, 2W, Cup)."""
    B, H, W, Cin = x1_nhwc.shape
    n4 = int(w_up.shape[1])           # 4 * Cup
    return pl.pallas_call(
        _upconv_kernel,
        out_shape=jax.ShapeDtypeStruct((B, 2 * H, W, n4 // 2), jnp.bfloat16),
        grid_spec=pltpu.PrefetchScalarGridSpec(
            num_scalar_prefetch=0,
            grid=(B, H),
            in_specs=[
                pl.BlockSpec((None, None, W, Cin), lambda b, h: (b, h, 0, 0)),
                pl.BlockSpec((Cin, n4), lambda b, h: (0, 0)),
                pl.BlockSpec((1, n4), lambda b, h: (0, 0)),
            ],
            out_specs=pl.BlockSpec((None, 2, W, n4 // 2),
                                   lambda b, h: (b, h, 0, 0)),
        ),
        compiler_params=pltpu.CompilerParams(
            dimension_semantics=("parallel", "parallel"),
            vmem_limit_bytes=_VMEM_LIMIT,
        ),
    )(x1_nhwc, w_up, b_up)


# ----------------------------------------------------------------------------
# Kernel 2: fused [3x3 conv (pad=1) + bias + GroupNorm(32) + ReLU].
# One grid step per batch sample ("parallel").  The halo pad AND the channel
# concat are built once per step inside a zero-filled VMEM scratch (no HBM
# pads / concat); the conv is 9 shifted matmuls with merged K and an f32
# accumulator; GroupNorm uses one-pass stats with a fused normalize.
# ----------------------------------------------------------------------------
def _per_channel_group_stat(row, groups, gs):
    """(1, C) per-channel sums -> per-channel value of its group's total."""
    if gs == 1:                        # GroupNorm(32, 32): group size 1
        return row
    g = jnp.sum(row.reshape(groups, gs), axis=1, keepdims=True)     # (G, 1)
    return jnp.broadcast_to(g, (groups, gs)).reshape(1, groups * gs)


def _make_conv_gn_relu_kernel(n_in, H, W, cins, cout, groups, eps=1e-5):
    HW = H * W
    K = sum(cins)
    gs = cout // groups
    offs = [sum(cins[:t]) for t in range(n_in)]

    def kernel(*refs):
        x_refs = refs[:n_in]                        # (H, W, Cin_t)  bf16
        w_ref = refs[n_in]                          # (9, K, Cout)   bf16
        b_ref, gam_ref, bet_ref = refs[n_in + 1:n_in + 4]   # (1, Cout) f32
        o_ref = refs[n_in + 4]                      # (HW, Cout)
        pad_ref = refs[n_in + 5]                    # (H+2, W+2, K)  f32 scratch

        # Halo pad + channel concat built entirely in VMEM (no HBM passes).
        # Scratch kept f32 so the offset interior stores stay on the plain
        # masked-store path; the per-tap bf16 cast below is a cheap VALU pass
        # that overlaps the MXU.
        # TODO(synk): bf16 scratch once packed unaligned stores are verified.
        pad_ref[...] = jnp.zeros_like(pad_ref)
        for t in range(n_in):
            pad_ref[1:H + 1, 1:W + 1, offs[t]:offs[t] + cins[t]] = (
                x_refs[t][...].astype(pad_ref.dtype))

        # 3x3 conv = 9 shifted matmuls at merged K, f32 accumulation.
        # TODO(synk): express the kw shift with pltpu.roll (XLU slot) to avoid
        # the per-tap windowed-load relayout once bf16 sublane rolls are safe.
        acc = None
        for kh in range(3):
            for kw in range(3):
                xs = (pad_ref[kh:kh + H, kw:kw + W, :]
                      .reshape(HW, K).astype(jnp.bfloat16))
                part = jnp.dot(xs, w_ref[kh * 3 + kw],
                               preferred_element_type=jnp.float32)
                acc = part if acc is None else acc + part
        acc = acc + b_ref[...]                      # conv bias (f32)

        # One-pass GroupNorm stats + fused normalize + ReLU (all f32).
        inv_n = 1.0 / float(HW * gs)
        s1 = jnp.sum(acc, axis=0, keepdims=True)                 # (1, Cout)
        s2 = jnp.sum(acc * acc, axis=0, keepdims=True)           # (1, Cout)
        mean = _per_channel_group_stat(s1, groups, gs) * inv_n
        ex2 = _per_channel_group_stat(s2, groups, gs) * inv_n
        var = ex2 - mean * mean
        scale = jax.lax.rsqrt(var + eps) * gam_ref[...]
        shift = bet_ref[...] - mean * scale
        # TODO(synk): lane-dense (HW/4, 4*Cout) output store (requires an
        # in-kernel sublane->lane fold relayout); kept (HW, Cout) for safety.
        o_ref[...] = jnp.maximum(acc * scale + shift, 0.0).astype(o_ref.dtype)

    return kernel


def conv3x3_gn_relu(xs, w9, bias, gamma, beta, groups=32,
                    out_dtype=jnp.float32):
    """Fused 3x3 conv (pad=1) + GroupNorm + ReLU.

    xs:  list of (B, H, W, Cin_t) bf16 NHWC tensors whose channel concat is
         the conv input (the concat is built in VMEM, never in HBM).
    w9:  (9, sum(Cin_t), Cout) bf16 weights, tap-major (kh*3 + kw).
    """
    n_in = len(xs)
    B, H, W, _ = xs[0].shape
    cins = [int(x.shape[-1]) for x in xs]
    K = sum(cins)
    cout = int(w9.shape[-1])
    HW = H * W
    assert w9.shape == (9, K, cout)
    assert cout % groups == 0, "GroupNorm(32, C) requires C % 32 == 0"

    kernel = _make_conv_gn_relu_kernel(n_in, H, W, cins, cout, groups)
    in_specs = (
        [pl.BlockSpec((None, H, W, c), lambda b: (b, 0, 0, 0)) for c in cins]
        + [pl.BlockSpec((9, K, cout), lambda b: (0, 0, 0)),
           pl.BlockSpec((1, cout), lambda b: (0, 0)),
           pl.BlockSpec((1, cout), lambda b: (0, 0)),
           pl.BlockSpec((1, cout), lambda b: (0, 0))]
    )
    out = pl.pallas_call(
        kernel,
        out_shape=jax.ShapeDtypeStruct((B, HW, cout), out_dtype),
        grid_spec=pltpu.PrefetchScalarGridSpec(
            num_scalar_prefetch=0,
            # TODO(synk): for large H add an inner row-tile grid axis
            # ("arbitrary") with GN stats accumulated in scratch and a
            # pl.when(last-row) finalize, to respect v7x's 64 MiB VMEM and
            # deepen the pipeline beyond B steps.
            grid=(B,),
            in_specs=in_specs,
            out_specs=pl.BlockSpec((None, HW, cout), lambda b: (b, 0, 0)),
            scratch_shapes=[pltpu.VMEM((H + 2, W + 2, K), jnp.float32)],
        ),
        compiler_params=pltpu.CompilerParams(
            dimension_semantics=("parallel",),
            vmem_limit_bytes=_VMEM_LIMIT,
        ),
    )(
        *xs, w9,
        bias.astype(jnp.float32)[None, :],
        gamma.astype(jnp.float32)[None, :],
        beta.astype(jnp.float32)[None, :],
    )
    return out.reshape(B, H, W, cout)


# ----------------------------------------------------------------------------
# Parameters + forward (JAX glue: layout plumbing only).
# ----------------------------------------------------------------------------
def init_up_params(key, in_ch, out_ch):
    ks = jax.random.split(key, 10)
    s = 0.05
    return {
        # ConvTranspose2d(in_ch, in_ch//2, k=2, s=2): weight (in_ch, in_ch//2, 2, 2)
        "up_w": s * jax.random.normal(ks[0], (in_ch, in_ch // 2, 2, 2), jnp.float32),
        "up_b": s * jax.random.normal(ks[1], (in_ch // 2,), jnp.float32),
        # DoubleConv in_net
        "c1_w": s * jax.random.normal(ks[2], (out_ch, in_ch, 3, 3), jnp.float32),
        "c1_b": s * jax.random.normal(ks[3], (out_ch,), jnp.float32),
        "gn1_g": 1.0 + 0.1 * jax.random.normal(ks[4], (out_ch,), jnp.float32),
        "gn1_b": 0.1 * jax.random.normal(ks[5], (out_ch,), jnp.float32),
        # DoubleConv out_net
        "c2_w": s * jax.random.normal(ks[6], (out_ch, out_ch, 3, 3), jnp.float32),
        "c2_b": s * jax.random.normal(ks[7], (out_ch,), jnp.float32),
        "gn2_g": 1.0 + 0.1 * jax.random.normal(ks[8], (out_ch,), jnp.float32),
        "gn2_b": 0.1 * jax.random.normal(ks[9], (out_ch,), jnp.float32),
    }


def up_forward(params, x1, x2):
    """x1: (B, in_ch, H, W), x2: (B, in_ch//2, ~2H, ~2W), NCHW. Returns NCHW."""
    B, Cin, H, W = x1.shape
    Cup = Cin // 2
    H2t, W2t = int(x2.shape[2]), int(x2.shape[3])
    out_ch = int(params["c1_w"].shape[0])

    # --- ConvTranspose2d(k=2, s=2) with the pixel shuffle fused in-kernel.
    x1n = jnp.transpose(x1, (0, 2, 3, 1)).astype(jnp.bfloat16)   # (B,H,W,Cin)
    w_up = (jnp.transpose(params["up_w"], (0, 2, 3, 1))          # (Cin,2,2,Cup)
            .reshape(Cin, 4 * Cup).astype(jnp.bfloat16))         # cols (dh,dw,c)
    b_up = jnp.tile(params["up_b"], 4)[None, :].astype(jnp.float32)
    y = upconv2x2(x1n, w_up, b_up)                 # (B, 2H, W, 2*Cup) bf16
    y = y.reshape(B, 2 * H, 2 * W, Cup)            # row-major contiguous: free

    # F.pad to x2's spatial size (a no-op in the standard UNet shapes).
    dh, dw = H2t - 2 * H, W2t - 2 * W
    if dh or dw:
        y = jnp.pad(y, ((0, 0), (dh // 2, dh - dh // 2),
                        (dw // 2, dw - dw // 2), (0, 0)))

    x2n = jnp.transpose(x2, (0, 2, 3, 1)).astype(jnp.bfloat16)   # (B,H2,W2,Cup)

    # --- DoubleConv.in_net: conv(concat([x2, y])) with the concat, halo pad
    #     and K=64 merge all done inside the kernel's VMEM scratch.
    w1 = (jnp.transpose(params["c1_w"], (2, 3, 1, 0))            # (3,3,Cin,out)
          .reshape(9, Cin, out_ch).astype(jnp.bfloat16))
    h1 = conv3x3_gn_relu([x2n, y], w1,
                         params["c1_b"], params["gn1_g"], params["gn1_b"],
                         out_dtype=jnp.bfloat16)   # bf16 inter-layer tensor

    # --- DoubleConv.out_net
    w2 = (jnp.transpose(params["c2_w"], (2, 3, 1, 0))
          .reshape(9, out_ch, out_ch).astype(jnp.bfloat16))
    out = conv3x3_gn_relu([h1], w2,
                          params["c2_b"], params["gn2_g"], params["gn2_b"],
                          out_dtype=jnp.float32)   # (B, H2, W2, out_ch) f32

    # TODO(synk): attention / time-embedding / dropout branches of DoubleConv
    # are inactive at the module defaults used here and are not implemented.
    # TODO(synk): store the last conv transposed (Cout, HW) in-kernel to also
    # remove this final NHWC->NCHW XLA transpose.
    return jnp.transpose(out, (0, 3, 1, 2))


# ----------------------------------------------------------------------------
if __name__ == "__main__":
    key = jax.random.PRNGKey(0)
    k_p, k_x1, k_x2 = jax.random.split(key, 3)

    IN_CH, OUT_CH = 64, 32          # GroupNorm(32, C) requires C % 32 == 0
    B, H, W = 2, 8, 8               # x1 spatial; x2 is 2x larger (UNet skip)

    params = init_up_params(k_p, IN_CH, OUT_CH)
    x1 = jax.random.normal(k_x1, (B, IN_CH, H, W), jnp.float32)
    x2 = jax.random.normal(k_x2, (B, IN_CH // 2, 2 * H, 2 * W), jnp.float32)

    out = jax.jit(up_forward)(params, x1, x2)
    out = jax.block_until_ready(out)
    assert out.shape == (B, OUT_CH, 2 * H, 2 * W), out.shape
    assert bool(jnp.all(jnp.isfinite(out)))
    print("KERNEL_OK")
</pallas_src>

<mosaic_0001>
module attributes {stable_mosaic.version = 11 : i64} {
  func.func @_upconv_kernel(%arg0: i32, %arg1: i32, %arg2: memref<1x1x8x64xbf16, #tpu.memory_space<vmem>>, %arg3: memref<64x128xbf16, #tpu.memory_space<vmem>>, %arg4: memref<1x128xf32, #tpu.memory_space<vmem>>, %arg5: memref<1x2x8x64xbf16, #tpu.memory_space<vmem>>) attributes {dimension_semantics = [#tpu.dimension_semantics<parallel>, #tpu.dimension_semantics<parallel>], iteration_bounds = array<i64: 2, 8>, scalar_prefetch = 0 : i64, scratch_operands = 0 : i64, tpu.core_type = #tpu.core_type<tc>, window_params = [{transform_indices = @transform_0, window_bounds = array<i64: 1, 1, 8, 64>}, {pipeline_mode = #tpu.pipeline_mode<synchronous>, transform_indices = @transform_1, window_bounds = array<i64: 64, 128>}, {pipeline_mode = #tpu.pipeline_mode<synchronous>, transform_indices = @transform_2, window_bounds = array<i64: 1, 128>}, {transform_indices = @transform_3, window_bounds = array<i64: 1, 2, 8, 64>}]} {
    %c0 = arith.constant 0 : index
    %c0_0 = arith.constant 0 : index
    %c0_1 = arith.constant 0 : index
    %c0_2 = arith.constant 0 : index
    %0 = vector.load %arg2[%c0, %c0_0, %c0_1, %c0_2] : memref<1x1x8x64xbf16, #tpu.memory_space<vmem>>, vector<1x1x8x64xbf16>
    %1 = vector.shape_cast %0 : vector<1x1x8x64xbf16> to vector<8x64xbf16>
    %c0_3 = arith.constant 0 : index
    %c0_4 = arith.constant 0 : index
    %2 = vector.load %arg3[%c0_3, %c0_4] : memref<64x128xbf16, #tpu.memory_space<vmem>>, vector<64x128xbf16>
    %cst = arith.constant dense<0.000000e+00> : vector<8x128xf32>
    %3 = tpu.matmul %1, %2, %cst {dimension_numbers = #tpu.dot_dimension_numbers<[1], [0], [0], [1], [0, 0, 1, 1], [], []>} : vector<8x64xbf16>, vector<64x128xbf16>, vector<8x128xf32> -> vector<8x128xf32>
    %c0_5 = arith.constant 0 : index
    %c0_6 = arith.constant 0 : index
    %4 = vector.load %arg4[%c0_5, %c0_6] : memref<1x128xf32, #tpu.memory_space<vmem>>, vector<1x128xf32>
    %5 = vector.broadcast %4 : vector<1x128xf32> to vector<8x128xf32>
    %6 = arith.addf %3, %5 : vector<8x128xf32>
    %7 = arith.truncf %6 : vector<8x128xf32> to vector<8x128xbf16>
    %8 = vector.extract_strided_slice %7 {offsets = [0, 0], sizes = [8, 64], strides = [1, 1]} : vector<8x128xbf16> to vector<8x64xbf16>
    %c0_7 = arith.constant 0 : index
    %c0_8 = arith.constant 0 : index
    %c0_9 = arith.constant 0 : index
    %c0_10 = arith.constant 0 : index
    %9 = vector.load %arg5[%c0_7, %c0_8, %c0_9, %c0_10] : memref<1x2x8x64xbf16, #tpu.memory_space<vmem>>, vector<1x1x8x64xbf16>
    %10 = vector.shape_cast %9 : vector<1x1x8x64xbf16> to vector<8x64xbf16>
    %11 = vector.shape_cast %8 : vector<8x64xbf16> to vector<1x1x8x64xbf16>
    tpu.vector_store %arg5[%c0_7, %c0_8, %c0_9, %c0_10], %11 {strides = array<i32>} : memref<1x2x8x64xbf16, #tpu.memory_space<vmem>>, vector<1x1x8x64xbf16>,
    %12 = vector.extract_strided_slice %7 {offsets = [0, 64], sizes = [8, 64], strides = [1, 1]} : vector<8x128xbf16> to vector<8x64xbf16>
    %c0_11 = arith.constant 0 : index
    %c1 = arith.constant 1 : index
    %c0_12 = arith.constant 0 : index
    %c0_13 = arith.constant 0 : index
    %13 = vector.load %arg5[%c0_11, %c1, %c0_12, %c0_13] : memref<1x2x8x64xbf16, #tpu.memory_space<vmem>>, vector<1x1x8x64xbf16>
    %14 = vector.shape_cast %13 : vector<1x1x8x64xbf16> to vector<8x64xbf16>
    %15 = vector.shape_cast %12 : vector<8x64xbf16> to vector<1x1x8x64xbf16>
    tpu.vector_store %arg5[%c0_11, %c1, %c0_12, %c0_13], %15 {strides = array<i32>} : memref<1x2x8x64xbf16, #tpu.memory_space<vmem>>, vector<1x1x8x64xbf16>,
    return
  }
  func.func @transform_0(%arg0: i32, %arg1: i32) -> (i32, i32, i32, i32) {
    %c0_i32 = arith.constant 0 : i32
    %c0_i32_0 = arith.constant 0 : i32
    %c0_i32_1 = arith.constant 0 : i32
    return %arg0, %arg1, %c0_i32, %c0_i32_0 : i32, i32, i32, i32
  }
  func.func @transform_1(%arg0: i32, %arg1: i32) -> (i32, i32) {
    %c0_i32 = arith.constant 0 : i32
    %c0_i32_0 = arith.constant 0 : i32
    %c0_i32_1 = arith.constant 0 : i32
    return %c0_i32, %c0_i32_0 : i32, i32
  }
  func.func @transform_2(%arg0: i32, %arg1: i32) -> (i32, i32) {
    %c0_i32 = arith.constant 0 : i32
    %c0_i32_0 = arith.constant 0 : i32
    %c0_i32_1 = arith.constant 0 : i32
    return %c0_i32, %c0_i32_0 : i32, i32
  }
  func.func @transform_3(%arg0: i32, %arg1: i32) -> (i32, i32, i32, i32) {
    %c0_i32 = arith.constant 0 : i32
    %c0_i32_0 = arith.constant 0 : i32
    %c0_i32_1 = arith.constant 0 : i32
    return %arg0, %arg1, %c0_i32, %c0_i32_0 : i32, i32, i32, i32
  }
}

module attributes {stable_mosaic.version = 11 : i64} {
  func.func @kernel(%arg0: i32, %arg1: memref<1x16x16x32xbf16, #tpu.memory_space<vmem>>, %arg2: memref<1x16x16x32xbf16, #tpu.memory_space<vmem>>, %arg3: memref<9x64x32xbf16, #tpu.memory_space<vmem>>, %arg4: memref<1x32xf32, #tpu.memory_space<vmem>>, %arg5: memref<1x32xf32, #tpu.memory_space<vmem>>, %arg6: memref<1x32xf32, #tpu.memory_space<vmem>>, %arg7: memref<1x256x32xbf16, #tpu.memory_space<vmem>>, %arg8: memref<18x18x64xf32, #tpu.memory_space<vmem>>) attributes {dimension_semantics = [#tpu.dimension_semantics<parallel>], iteration_bounds = array<i64: 2>, scalar_prefetch = 0 : i64, scratch_operands = 1 : i64, tpu.core_type = #tpu.core_type<tc>, window_params = [{transform_indices = @transform_0, window_bounds = array<i64: 1, 16, 16, 32>}, {transform_indices = @transform_1, window_bounds = array<i64: 1, 16, 16, 32>}, {pipeline_mode = #tpu.pipeline_mode<synchronous>, transform_indices = @transform_2, window_bounds = array<i64: 9, 64, 32>}, {pipeline_mode = #tpu.pipeline_mode<synchronous>, transform_indices = @transform_3, window_bounds = array<i64: 1, 32>}, {pipeline_mode = #tpu.pipeline_mode<synchronous>, transform_indices = @transform_4, window_bounds = array<i64: 1, 32>}, {pipeline_mode = #tpu.pipeline_mode<synchronous>, transform_indices = @transform_5, window_bounds = array<i64: 1, 32>}, {transform_indices = @transform_6, window_bounds = array<i64: 1, 256, 32>}]} {
    %cst = arith.constant 0.000000e+00 : f32
    %0 = vector.broadcast %cst : f32 to vector<18x18x64xf32>
    %c0 = arith.constant 0 : index
    %c0_0 = arith.constant 0 : index
    %c0_1 = arith.constant 0 : index
    %1 = vector.load %arg8[%c0, %c0_0, %c0_1] : memref<18x18x64xf32, #tpu.memory_space<vmem>>, vector<18x18x64xf32>
    tpu.vector_store %arg8[%c0, %c0_0, %c0_1], %0 {strides = array<i32>} : memref<18x18x64xf32, #tpu.memory_space<vmem>>, vector<18x18x64xf32>,
    %c0_2 = arith.constant 0 : index
    %c0_3 = arith.constant 0 : index
    %c0_4 = arith.constant 0 : index
    %c0_5 = arith.constant 0 : index
    %2 = vector.load %arg1[%c0_2, %c0_3, %c0_4, %c0_5] : memref<1x16x16x32xbf16, #tpu.memory_space<vmem>>, vector<1x16x16x32xbf16>
    %3 = vector.shape_cast %2 : vector<1x16x16x32xbf16> to vector<16x16x32xbf16>
    %4 = arith.extf %3 : vector<16x16x32xbf16> to vector<16x16x32xf32>
    %c1 = arith.constant 1 : index
    %c1_6 = arith.constant 1 : index
    %c0_7 = arith.constant 0 : index
    %5 = vector.load %arg8[%c1, %c1_6, %c0_7] : memref<18x18x64xf32, #tpu.memory_space<vmem>>, vector<16x16x32xf32>
    tpu.vector_store %arg8[%c1, %c1_6, %c0_7], %4 {strides = array<i32>} : memref<18x18x64xf32, #tpu.memory_space<vmem>>, vector<16x16x32xf32>,
    %c0_8 = arith.constant 0 : index
    %c0_9 = arith.constant 0 : index
    %c0_10 = arith.constant 0 : index
    %c0_11 = arith.constant 0 : index
    %6 = vector.load %arg2[%c0_8, %c0_9, %c0_10, %c0_11] : memref<1x16x16x32xbf16, #tpu.memory_space<vmem>>, vector<1x16x16x32xbf16>
    %7 = vector.shape_cast %6 : vector<1x16x16x32xbf16> to vector<16x16x32xbf16>
    %8 = arith.extf %7 : vector<16x16x32xbf16> to vector<16x16x32xf32>
    %c1_12 = arith.constant 1 : index
    %c1_13 = arith.constant 1 : index
    %c32 = arith.constant 32 : index
    %9 = vector.load %arg8[%c1_12, %c1_13, %c32] : memref<18x18x64xf32, #tpu.memory_space<vmem>>, vector<16x16x32xf32>
    tpu.vector_store %arg8[%c1_12, %c1_13, %c32], %8 {strides = array<i32>} : memref<18x18x64xf32, #tpu.memory_space<vmem>>, vector<16x16x32xf32>,
    %c0_14 = arith.constant 0 : index
    %c0_15 = arith.constant 0 : index
    %c0_16 = arith.constant 0 : index
    %10 = vector.load %arg8[%c0_14, %c0_15, %c0_16] : memref<18x18x64xf32, #tpu.memory_space<vmem>>, vector<16x16x64xf32>
    %11 = vector.shape_cast %10 : vector<16x16x64xf32> to vector<256x64xf32>
    %12 = arith.truncf %11 : vector<256x64xf32> to vector<256x64xbf16>
    %c0_17 = arith.constant 0 : index
    %c0_18 = arith.constant 0 : index
    %c0_19 = arith.constant 0 : index
    %13 = vector.load %arg3[%c0_17, %c0_18, %c0_19] : memref<9x64x32xbf16, #tpu.memory_space<vmem>>, vector<1x64x32xbf16>
    %14 = vector.shape_cast %13 : vector<1x64x32xbf16> to vector<64x32xbf16>
    %cst_20 = arith.constant dense<0.000000e+00> : vector<256x32xf32>
    %15 = tpu.matmul %12, %14, %cst_20 {dimension_numbers = #tpu.dot_dimension_numbers<[1], [0], [0], [1], [0, 0, 1, 1], [], []>} : vector<256x64xbf16>, vector<64x32xbf16>, vector<256x32xf32> -> vector<256x32xf32>
    %c0_21 = arith.constant 0 : index
    %c1_22 = arith.constant 1 : index
    %c0_23 = arith.constant 0 : index
    %16 = vector.load %arg8[%c0_21, %c1_22, %c0_23] : memref<18x18x64xf32, #tpu.memory_space<vmem>>, vector<16x16x64xf32>
    %17 = vector.shape_cast %16 : vector<16x16x64xf32> to vector<256x64xf32>
    %18 = arith.truncf %17 : vector<256x64xf32> to vector<256x64xbf16>
    %c1_24 = arith.constant 1 : index
    %c0_25 = arith.constant 0 : index
    %c0_26 = arith.constant 0 : index
    %19 = vector.load %arg3[%c1_24, %c0_25, %c0_26] : memref<9x64x32xbf16, #tpu.memory_space<vmem>>, vector<1x64x32xbf16>
    %20 = vector.shape_cast %19 : vector<1x64x32xbf16> to vector<64x32xbf16>
    %cst_27 = arith.constant dense<0.000000e+00> : vector<256x32xf32>
    %21 = tpu.matmul %18, %20, %cst_27 {dimension_numbers = #tpu.dot_dimension_numbers<[1], [0], [0], [1], [0, 0, 1, 1], [], []>} : vector<256x64xbf16>, vector<64x32xbf16>, vector<256x32xf32> -> vector<256x32xf32>
    %22 = arith.addf %15, %21 : vector<256x32xf32>
    %c0_28 = arith.constant 0 : index
    %c2 = arith.constant 2 : index
    %c0_29 = arith.constant 0 : index
    %23 = vector.load %arg8[%c0_28, %c2, %c0_29] : memref<18x18x64xf32, #tpu.memory_space<vmem>>, vector<16x16x64xf32>
    %24 = vector.shape_cast %23 : vector<16x16x64xf32> to vector<256x64xf32>
    %25 = arith.truncf %24 : vector<256x64xf32> to vector<256x64xbf16>
    %c2_30 = arith.constant 2 : index
    %c0_31 = arith.constant 0 : index
    %c0_32 = arith.constant 0 : index
    %26 = vector.load %arg3[%c2_30, %c0_31, %c0_32] : memref<9x64x32xbf16, #tpu.memory_space<vmem>>, vector<1x64x32xbf16>
    %27 = vector.shape_cast %26 : vector<1x64x32xbf16> to vector<64x32xbf16>
    %cst_33 = arith.constant dense<0.000000e+00> : vector<256x32xf32>
    %28 = tpu.matmul %25, %27, %cst_33 {dimension_numbers = #tpu.dot_dimension_numbers<[1], [0], [0], [1], [0, 0, 1, 1], [], []>} : vector<256x64xbf16>, vector<64x32xbf16>, vector<256x32xf32> -> vector<256x32xf32>
    %29 = arith.addf %22, %28 : vector<256x32xf32>
    %c1_34 = arith.constant 1 : index
    %c0_35 = arith.constant 0 : index
    %c0_36 = arith.constant 0 : index
    %30 = vector.load %arg8[%c1_34, %c0_35, %c0_36] : memref<18x18x64xf32, #tpu.memory_space<vmem>>, vector<16x16x64xf32>
    %31 = vector.shape_cast %30 : vector<16x16x64xf32> to vector<256x64xf32>
    %32 = arith.truncf %31 : vector<256x64xf32> to vector<256x64xbf16>
    %c3 = arith.constant 3 : index
    %c0_37 = arith.constant 0 : index
    %c0_38 = arith.constant 0 : index
    %33 = vector.load %arg3[%c3, %c0_37, %c0_38] : memref<9x64x32xbf16, #tpu.memory_space<vmem>>, vector<1x64x32xbf16>
    %34 = vector.shape_cast %33 : vector<1x64x32xbf16> to vector<64x32xbf16>
    %cst_39 = arith.constant dense<0.000000e+00> : vector<256x32xf32>
    %35 = tpu.matmul %32, %34, %cst_39 {dimension_numbers = #tpu.dot_dimension_numbers<[1], [0], [0], [1], [0, 0, 1, 1], [], []>} : vector<256x64xbf16>, vector<64x32xbf16>, vector<256x32xf32> -> vector<256x32xf32>
    %36 = arith.addf %29, %35 : vector<256x32xf32>
    %c1_40 = arith.constant 1 : index
    %c1_41 = arith.constant 1 : index
    %c0_42 = arith.constant 0 : index
    %37 = vector.load %arg8[%c1_40, %c1_41, %c0_42] : memref<18x18x64xf32, #tpu.memory_space<vmem>>, vector<16x16x64xf32>
    %38 = vector.shape_cast %37 : vector<16x16x64xf32> to vector<256x64xf32>
    %39 = arith.truncf %38 : vector<256x64xf32> to vector<256x64xbf16>
    %c4 = arith.constant 4 : index
    %c0_43 = arith.constant 0 : index
    %c0_44 = arith.constant 0 : index
    %40 = vector.load %arg3[%c4, %c0_43, %c0_44] : memref<9x64x32xbf16, #tpu.memory_space<vmem>>, vector<1x64x32xbf16>
    %41 = vector.shape_cast %40 : vector<1x64x32xbf16> to vector<64x32xbf16>
    %cst_45 = arith.constant dense<0.000000e+00> : vector<256x32xf32>
    %42 = tpu.matmul %39, %41, %cst_45 {dimension_numbers = #tpu.dot_dimension_numbers<[1], [0], [0], [1], [0, 0, 1, 1], [], []>} : vector<256x64xbf16>, vector<64x32xbf16>, vector<256x32xf32> -> vector<256x32xf32>
    %43 = arith.addf %36, %42 : vector<256x32xf32>
    %c1_46 = arith.constant 1 : index
    %c2_47 = arith.constant 2 : index
    %c0_48 = arith.constant 0 : index
    %44 = vector.load %arg8[%c1_46, %c2_47, %c0_48] : memref<18x18x64xf32, #tpu.memory_space<vmem>>, vector<16x16x64xf32>
    %45 = vector.shape_cast %44 : vector<16x16x64xf32> to vector<256x64xf32>
    %46 = arith.truncf %45 : vector<256x64xf32> to vector<256x64xbf16>
    %c5 = arith.constant 5 : index
    %c0_49 = arith.constant 0 : index
    %c0_50 = arith.constant 0 : index
    %47 = vector.load %arg3[%c5, %c0_49, %c0_50] : memref<9x64x32xbf16, #tpu.memory_space<vmem>>, vector<1x64x32xbf16>
    %48 = vector.shape_cast %47 : vector<1x64x32xbf16> to vector<64x32xbf16>
    %cst_51 = arith.constant dense<0.000000e+00> : vector<256x32xf32>
    %49 = tpu.matmul %46, %48, %cst_51 {dimension_numbers = #tpu.dot_dimension_numbers<[1], [0], [0], [1], [0, 0, 1, 1], [], []>} : vector<256x64xbf16>, vector<64x32xbf16>, vector<256x32xf32> -> vector<256x32xf32>
    %50 = arith.addf %43, %49 : vector<256x32xf32>
    %c2_52 = arith.constant 2 : index
    %c0_53 = arith.constant 0 : index
    %c0_54 = arith.constant 0 : index
    %51 = vector.load %arg8[%c2_52, %c0_53, %c0_54] : memref<18x18x64xf32, #tpu.memory_space<vmem>>, vector<16x16x64xf32>
    %52 = vector.shape_cast %51 : vector<16x16x64xf32> to vector<256x64xf32>
    %53 = arith.truncf %52 : vector<256x64xf32> to vector<256x64xbf16>
    %c6 = arith.constant 6 : index
    %c0_55 = arith.constant 0 : index
    %c0_56 = arith.constant 0 : index
    %54 = vector.load %arg3[%c6, %c0_55, %c0_56] : memref<9x64x32xbf16, #tpu.memory_space<vmem>>, vector<1x64x32xbf16>
    %55 = vector.shape_cast %54 : vector<1x64x32xbf16> to vector<64x32xbf16>
    %cst_57 = arith.constant dense<0.000000e+00> : vector<256x32xf32>
    %56 = tpu.matmul %53, %55, %cst_57 {dimension_numbers = #tpu.dot_dimension_numbers<[1], [0], [0], [1], [0, 0, 1, 1], [], []>} : vector<256x64xbf16>, vector<64x32xbf16>, vector<256x32xf32> -> vector<256x32xf32>
    %57 = arith.addf %50, %56 : vector<256x32xf32>
    %c2_58 = arith.constant 2 : index
    %c1_59 = arith.constant 1 : index
    %c0_60 = arith.constant 0 : index
    %58 = vector.load %arg8[%c2_58, %c1_59, %c0_60] : memref<18x18x64xf32, #tpu.memory_space<vmem>>, vector<16x16x64xf32>
    %59 = vector.shape_cast %58 : vector<16x16x64xf32> to vector<256x64xf32>
    %60 = arith.truncf %59 : vector<256x64xf32> to vector<256x64xbf16>
    %c7 = arith.constant 7 : index
    %c0_61 = arith.constant 0 : index
    %c0_62 = arith.constant 0 : index
    %61 = vector.load %arg3[%c7, %c0_61, %c0_62] : memref<9x64x32xbf16, #tpu.memory_space<vmem>>, vector<1x64x32xbf16>
    %62 = vector.shape_cast %61 : vector<1x64x32xbf16> to vector<64x32xbf16>
    %cst_63 = arith.constant dense<0.000000e+00> : vector<256x32xf32>
    %63 = tpu.matmul %60, %62, %cst_63 {dimension_numbers = #tpu.dot_dimension_numbers<[1], [0], [0], [1], [0, 0, 1, 1], [], []>} : vector<256x64xbf16>, vector<64x32xbf16>, vector<256x32xf32> -> vector<256x32xf32>
    %64 = arith.addf %57, %63 : vector<256x32xf32>
    %c2_64 = arith.constant 2 : index
    %c2_65 = arith.constant 2 : index
    %c0_66 = arith.constant 0 : index
    %65 = vector.load %arg8[%c2_64, %c2_65, %c0_66] : memref<18x18x64xf32, #tpu.memory_space<vmem>>, vector<16x16x64xf32>
    %66 = vector.shape_cast %65 : vector<16x16x64xf32> to vector<256x64xf32>
    %67 = arith.truncf %66 : vector<256x64xf32> to vector<256x64xbf16>
    %c8 = arith.constant 8 : index
    %c0_67 = arith.constant 0 : index
    %c0_68 = arith.constant 0 : index
    %68 = vector.load %arg3[%c8, %c0_67, %c0_68] : memref<9x64x32xbf16, #tpu.memory_space<vmem>>, vector<1x64x32xbf16>
    %69 = vector.shape_cast %68 : vector<1x64x32xbf16> to vector<64x32xbf16>
    %cst_69 = arith.constant dense<0.000000e+00> : vector<256x32xf32>
    %70 = tpu.matmul %67, %69, %cst_69 {dimension_numbers = #tpu.dot_dimension_numbers<[1], [0], [0], [1], [0, 0, 1, 1], [], []>} : vector<256x64xbf16>, vector<64x32xbf16>, vector<256x32xf32> -> vector<256x32xf32>
    %71 = arith.addf %64, %70 : vector<256x32xf32>
    %c0_70 = arith.constant 0 : index
    %c0_71 = arith.constant 0 : index
    %72 = vector.load %arg4[%c0_70, %c0_71] : memref<1x32xf32, #tpu.memory_space<vmem>>, vector<1x32xf32>
    %73 = vector.broadcast %72 : vector<1x32xf32> to vector<256x32xf32>
    %74 = arith.addf %71, %73 : vector<256x32xf32>
    %cst_72 = arith.constant dense<0.000000e+00> : vector<32xf32>
    %75 = vector.multi_reduction <add>, %74, %cst_72 [0] : vector<256x32xf32> to vector<32xf32>
    %76 = vector.shape_cast %75 : vector<32xf32> to vector<1x32xf32>
    %77 = arith.mulf %74, %74 : vector<256x32xf32>
    %cst_73 = arith.constant dense<0.000000e+00> : vector<32xf32>
    %78 = vector.multi_reduction <add>, %77, %cst_73 [0] : vector<256x32xf32> to vector<32xf32>
    %79 = vector.shape_cast %78 : vector<32xf32> to vector<1x32xf32>
    %cst_74 = arith.constant 3.906250e-03 : f32
    %80 = vector.broadcast %cst_74 : f32 to vector<1x32xf32>
    %81 = arith.mulf %76, %80 : vector<1x32xf32>
    %cst_75 = arith.constant 3.906250e-03 : f32
    %82 = vector.broadcast %cst_75 : f32 to vector<1x32xf32>
    %83 = arith.mulf %79, %82 : vector<1x32xf32>
    %84 = arith.mulf %81, %81 : vector<1x32xf32>
    %85 = arith.subf %83, %84 : vector<1x32xf32>
    %cst_76 = arith.constant 9.99999974E-6 : f32
    %86 = vector.broadcast %cst_76 : f32 to vector<1x32xf32>
    %87 = arith.addf %85, %86 : vector<1x32xf32>
    %88 = math.rsqrt %87 : vector<1x32xf32>
    %c0_77 = arith.constant 0 : index
    %c0_78 = arith.constant 0 : index
    %89 = vector.load %arg5[%c0_77, %c0_78] : memref<1x32xf32, #tpu.memory_space<vmem>>, vector<1x32xf32>
    %90 = arith.mulf %88, %89 : vector<1x32xf32>
    %c0_79 = arith.constant 0 : index
    %c0_80 = arith.constant 0 : index
    %91 = vector.load %arg6[%c0_79, %c0_80] : memref<1x32xf32, #tpu.memory_space<vmem>>, vector<1x32xf32>
    %92 = arith.mulf %81, %90 : vector<1x32xf32>
    %93 = arith.subf %91, %92 : vector<1x32xf32>
    %94 = vector.broadcast %90 : vector<1x32xf32> to vector<256x32xf32>
    %95 = arith.mulf %74, %94 : vector<256x32xf32>
    %96 = vector.broadcast %93 : vector<1x32xf32> to vector<256x32xf32>
    %97 = arith.addf %95, %96 : vector<256x32xf32>
    %cst_81 = arith.constant 0.000000e+00 : f32
    %98 = vector.broadcast %cst_81 : f32 to vector<256x32xf32>
    %99 = arith.maximumf %97, %98 : vector<256x32xf32>
    %100 = arith.truncf %99 : vector<256x32xf32> to vector<256x32xbf16>
    %c0_82 = arith.constant 0 : index
    %c0_83 = arith.constant 0 : index
    %c0_84 = arith.constant 0 : index
    %101 = vector.load %arg7[%c0_82, %c0_83, %c0_84] : memref<1x256x32xbf16, #tpu.memory_space<vmem>>, vector<1x256x32xbf16>
    %102 = vector.shape_cast %101 : vector<1x256x32xbf16> to vector<256x32xbf16>
    %103 = vector.shape_cast %100 : vector<256x32xbf16> to vector<1x256x32xbf16>
    tpu.vector_store %arg7[%c0_82, %c0_83, %c0_84], %103 {strides = array<i32>} : memref<1x256x32xbf16, #tpu.memory_space<vmem>>, vector<1x256x32xbf16>,
    return
  }
  func.func @transform_0(%arg0: i32) -> (i32, i32, i32, i32) {
    %c0_i32 = arith.constant 0 : i32
    %c0_i32_0 = arith.constant 0 : i32
    %c0_i32_1 = arith.constant 0 : i32
    %c0_i32_2 = arith.constant 0 : i32
    return %arg0, %c0_i32, %c0_i32_0, %c0_i32_1 : i32, i32, i32, i32
  }
  func.func @transform_1(%arg0: i32) -> (i32, i32, i32, i32) {
    %c0_i32 = arith.constant 0 : i32
    %c0_i32_0 = arith.constant 0 : i32
    %c0_i32_1 = arith.constant 0 : i32
    %c0_i32_2 = arith.constant 0 : i32
    return %arg0, %c0_i32, %c0_i32_0, %c0_i32_1 : i32, i32, i32, i32
  }
  func.func @transform_2(%arg0: i32) -> (i32, i32, i32) {
    %c0_i32 = arith.constant 0 : i32
    %c0_i32_0 = arith.constant 0 : i32
    %c0_i32_1 = arith.constant 0 : i32
    %c0_i32_2 = arith.constant 0 : i32
    return %c0_i32, %c0_i32_0, %c0_i32_1 : i32, i32, i32
  }
  func.func @transform_3(%arg0: i32) -> (i32, i32) {
    %c0_i32 = arith.constant 0 : i32
    %c0_i32_0 = arith.constant 0 : i32
    %c0_i32_1 = arith.constant 0 : i32
    return %c0_i32, %c0_i32_0 : i32, i32
  }
  func.func @transform_4(%arg0: i32) -> (i32, i32) {
    %c0_i32 = arith.constant 0 : i32
    %c0_i32_0 = arith.constant 0 : i32
    %c0_i32_1 = arith.constant 0 : i32
    return %c0_i32, %c0_i32_0 : i32, i32
  }
  func.func @transform_5(%arg0: i32) -> (i32, i32) {
    %c0_i32 = arith.constant 0 : i32
    %c0_i32_0 = arith.constant 0 : i32
    %c0_i32_1 = arith.constant 0 : i32
    return %c0_i32, %c0_i32_0 : i32, i32
  }
  func.func @transform_6(%arg0: i32) -> (i32, i32, i32) {
    %c0_i32 = arith.constant 0 : i32
    %c0_i32_0 = arith.constant 0 : i32
    %c0_i32_1 = arith.constant 0 : i32
    return %arg0, %c0_i32, %c0_i32_0 : i32, i32, i32
  }
}

module attributes {stable_mosaic.version = 11 : i64} {
  func.func @kernel(%arg0: i32, %arg1: memref<1x16x16x32xbf16, #tpu.memory_space<vmem>>, %arg2: memref<9x32x32xbf16, #tpu.memory_space<vmem>>, %arg3: memref<1x32xf32, #tpu.memory_space<vmem>>, %arg4: memref<1x32xf32, #tpu.memory_space<vmem>>, %arg5: memref<1x32xf32, #tpu.memory_space<vmem>>, %arg6: memref<1x256x32xf32, #tpu.memory_space<vmem>>, %arg7: memref<18x18x32xf32, #tpu.memory_space<vmem>>) attributes {dimension_semantics = [#tpu.dimension_semantics<parallel>], iteration_bounds = array<i64: 2>, scalar_prefetch = 0 : i64, scratch_operands = 1 : i64, tpu.core_type = #tpu.core_type<tc>, window_params = [{transform_indices = @transform_0, window_bounds = array<i64: 1, 16, 16, 32>}, {pipeline_mode = #tpu.pipeline_mode<synchronous>, transform_indices = @transform_1, window_bounds = array<i64: 9, 32, 32>}, {pipeline_mode = #tpu.pipeline_mode<synchronous>, transform_indices = @transform_2, window_bounds = array<i64: 1, 32>}, {pipeline_mode = #tpu.pipeline_mode<synchronous>, transform_indices = @transform_3, window_bounds = array<i64: 1, 32>}, {pipeline_mode = #tpu.pipeline_mode<synchronous>, transform_indices = @transform_4, window_bounds = array<i64: 1, 32>}, {transform_indices = @transform_5, window_bounds = array<i64: 1, 256, 32>}]} {
    %cst = arith.constant 0.000000e+00 : f32
    %0 = vector.broadcast %cst : f32 to vector<18x18x32xf32>
    %c0 = arith.constant 0 : index
    %c0_0 = arith.constant 0 : index
    %c0_1 = arith.constant 0 : index
    %1 = vector.load %arg7[%c0, %c0_0, %c0_1] : memref<18x18x32xf32, #tpu.memory_space<vmem>>, vector<18x18x32xf32>
    tpu.vector_store %arg7[%c0, %c0_0, %c0_1], %0 {strides = array<i32>} : memref<18x18x32xf32, #tpu.memory_space<vmem>>, vector<18x18x32xf32>,
    %c0_2 = arith.constant 0 : index
    %c0_3 = arith.constant 0 : index
    %c0_4 = arith.constant 0 : index
    %c0_5 = arith.constant 0 : index
    %2 = vector.load %arg1[%c0_2, %c0_3, %c0_4, %c0_5] : memref<1x16x16x32xbf16, #tpu.memory_space<vmem>>, vector<1x16x16x32xbf16>
    %3 = vector.shape_cast %2 : vector<1x16x16x32xbf16> to vector<16x16x32xbf16>
    %4 = arith.extf %3 : vector<16x16x32xbf16> to vector<16x16x32xf32>
    %c1 = arith.constant 1 : index
    %c1_6 = arith.constant 1 : index
    %c0_7 = arith.constant 0 : index
    %5 = vector.load %arg7[%c1, %c1_6, %c0_7] : memref<18x18x32xf32, #tpu.memory_space<vmem>>, vector<16x16x32xf32>
    tpu.vector_store %arg7[%c1, %c1_6, %c0_7], %4 {strides = array<i32>} : memref<18x18x32xf32, #tpu.memory_space<vmem>>, vector<16x16x32xf32>,
    %c0_8 = arith.constant 0 : index
    %c0_9 = arith.constant 0 : index
    %c0_10 = arith.constant 0 : index
    %6 = vector.load %arg7[%c0_8, %c0_9, %c0_10] : memref<18x18x32xf32, #tpu.memory_space<vmem>>, vector<16x16x32xf32>
    %7 = vector.shape_cast %6 : vector<16x16x32xf32> to vector<256x32xf32>
    %8 = arith.truncf %7 : vector<256x32xf32> to vector<256x32xbf16>
    %c0_11 = arith.constant 0 : index
    %c0_12 = arith.constant 0 : index
    %c0_13 = arith.constant 0 : index
    %9 = vector.load %arg2[%c0_11, %c0_12, %c0_13] : memref<9x32x32xbf16, #tpu.memory_space<vmem>>, vector<1x32x32xbf16>
    %10 = vector.shape_cast %9 : vector<1x32x32xbf16> to vector<32x32xbf16>
    %cst_14 = arith.constant dense<0.000000e+00> : vector<256x32xf32>
    %11 = tpu.matmul %8, %10, %cst_14 {dimension_numbers = #tpu.dot_dimension_numbers<[1], [0], [0], [1], [0, 0, 1, 1], [], []>} : vector<256x32xbf16>, vector<32x32xbf16>, vector<256x32xf32> -> vector<256x32xf32>
    %c0_15 = arith.constant 0 : index
    %c1_16 = arith.constant 1 : index
    %c0_17 = arith.constant 0 : index
    %12 = vector.load %arg7[%c0_15, %c1_16, %c0_17] : memref<18x18x32xf32, #tpu.memory_space<vmem>>, vector<16x16x32xf32>
    %13 = vector.shape_cast %12 : vector<16x16x32xf32> to vector<256x32xf32>
    %14 = arith.truncf %13 : vector<256x32xf32> to vector<256x32xbf16>
    %c1_18 = arith.constant 1 : index
    %c0_19 = arith.constant 0 : index
    %c0_20 = arith.constant 0 : index
    %15 = vector.load %arg2[%c1_18, %c0_19, %c0_20] : memref<9x32x32xbf16, #tpu.memory_space<vmem>>, vector<1x32x32xbf16>
    %16 = vector.shape_cast %15 : vector<1x32x32xbf16> to vector<32x32xbf16>
    %cst_21 = arith.constant dense<0.000000e+00> : vector<256x32xf32>
    %17 = tpu.matmul %14, %16, %cst_21 {dimension_numbers = #tpu.dot_dimension_numbers<[1], [0], [0], [1], [0, 0, 1, 1], [], []>} : vector<256x32xbf16>, vector<32x32xbf16>, vector<256x32xf32> -> vector<256x32xf32>
    %18 = arith.addf %11, %17 : vector<256x32xf32>
    %c0_22 = arith.constant 0 : index
    %c2 = arith.constant 2 : index
    %c0_23 = arith.constant 0 : index
    %19 = vector.load %arg7[%c0_22, %c2, %c0_23] : memref<18x18x32xf32, #tpu.memory_space<vmem>>, vector<16x16x32xf32>
    %20 = vector.shape_cast %19 : vector<16x16x32xf32> to vector<256x32xf32>
    %21 = arith.truncf %20 : vector<256x32xf32> to vector<256x32xbf16>
    %c2_24 = arith.constant 2 : index
    %c0_25 = arith.constant 0 : index
    %c0_26 = arith.constant 0 : index
    %22 = vector.load %arg2[%c2_24, %c0_25, %c0_26] : memref<9x32x32xbf16, #tpu.memory_space<vmem>>, vector<1x32x32xbf16>
    %23 = vector.shape_cast %22 : vector<1x32x32xbf16> to vector<32x32xbf16>
    %cst_27 = arith.constant dense<0.000000e+00> : vector<256x32xf32>
    %24 = tpu.matmul %21, %23, %cst_27 {dimension_numbers = #tpu.dot_dimension_numbers<[1], [0], [0], [1], [0, 0, 1, 1], [], []>} : vector<256x32xbf16>, vector<32x32xbf16>, vector<256x32xf32> -> vector<256x32xf32>
    %25 = arith.addf %18, %24 : vector<256x32xf32>
    %c1_28 = arith.constant 1 : index
    %c0_29 = arith.constant 0 : index
    %c0_30 = arith.constant 0 : index
    %26 = vector.load %arg7[%c1_28, %c0_29, %c0_30] : memref<18x18x32xf32, #tpu.memory_space<vmem>>, vector<16x16x32xf32>
    %27 = vector.shape_cast %26 : vector<16x16x32xf32> to vector<256x32xf32>
    %28 = arith.truncf %27 : vector<256x32xf32> to vector<256x32xbf16>
    %c3 = arith.constant 3 : index
    %c0_31 = arith.constant 0 : index
    %c0_32 = arith.constant 0 : index
    %29 = vector.load %arg2[%c3, %c0_31, %c0_32] : memref<9x32x32xbf16, #tpu.memory_space<vmem>>, vector<1x32x32xbf16>
    %30 = vector.shape_cast %29 : vector<1x32x32xbf16> to vector<32x32xbf16>
    %cst_33 = arith.constant dense<0.000000e+00> : vector<256x32xf32>
    %31 = tpu.matmul %28, %30, %cst_33 {dimension_numbers = #tpu.dot_dimension_numbers<[1], [0], [0], [1], [0, 0, 1, 1], [], []>} : vector<256x32xbf16>, vector<32x32xbf16>, vector<256x32xf32> -> vector<256x32xf32>
    %32 = arith.addf %25, %31 : vector<256x32xf32>
    %c1_34 = arith.constant 1 : index
    %c1_35 = arith.constant 1 : index
    %c0_36 = arith.constant 0 : index
    %33 = vector.load %arg7[%c1_34, %c1_35, %c0_36] : memref<18x18x32xf32, #tpu.memory_space<vmem>>, vector<16x16x32xf32>
    %34 = vector.shape_cast %33 : vector<16x16x32xf32> to vector<256x32xf32>
    %35 = arith.truncf %34 : vector<256x32xf32> to vector<256x32xbf16>
    %c4 = arith.constant 4 : index
    %c0_37 = arith.constant 0 : index
    %c0_38 = arith.constant 0 : index
    %36 = vector.load %arg2[%c4, %c0_37, %c0_38] : memref<9x32x32xbf16, #tpu.memory_space<vmem>>, vector<1x32x32xbf16>
    %37 = vector.shape_cast %36 : vector<1x32x32xbf16> to vector<32x32xbf16>
    %cst_39 = arith.constant dense<0.000000e+00> : vector<256x32xf32>
    %38 = tpu.matmul %35, %37, %cst_39 {dimension_numbers = #tpu.dot_dimension_numbers<[1], [0], [0], [1], [0, 0, 1, 1], [], []>} : vector<256x32xbf16>, vector<32x32xbf16>, vector<256x32xf32> -> vector<256x32xf32>
    %39 = arith.addf %32, %38 : vector<256x32xf32>
    %c1_40 = arith.constant 1 : index
    %c2_41 = arith.constant 2 : index
    %c0_42 = arith.constant 0 : index
    %40 = vector.load %arg7[%c1_40, %c2_41, %c0_42] : memref<18x18x32xf32, #tpu.memory_space<vmem>>, vector<16x16x32xf32>
    %41 = vector.shape_cast %40 : vector<16x16x32xf32> to vector<256x32xf32>
    %42 = arith.truncf %41 : vector<256x32xf32> to vector<256x32xbf16>
    %c5 = arith.constant 5 : index
    %c0_43 = arith.constant 0 : index
    %c0_44 = arith.constant 0 : index
    %43 = vector.load %arg2[%c5, %c0_43, %c0_44] : memref<9x32x32xbf16, #tpu.memory_space<vmem>>, vector<1x32x32xbf16>
    %44 = vector.shape_cast %43 : vector<1x32x32xbf16> to vector<32x32xbf16>
    %cst_45 = arith.constant dense<0.000000e+00> : vector<256x32xf32>
    %45 = tpu.matmul %42, %44, %cst_45 {dimension_numbers = #tpu.dot_dimension_numbers<[1], [0], [0], [1], [0, 0, 1, 1], [], []>} : vector<256x32xbf16>, vector<32x32xbf16>, vector<256x32xf32> -> vector<256x32xf32>
    %46 = arith.addf %39, %45 : vector<256x32xf32>
    %c2_46 = arith.constant 2 : index
    %c0_47 = arith.constant 0 : index
    %c0_48 = arith.constant 0 : index
    %47 = vector.load %arg7[%c2_46, %c0_47, %c0_48] : memref<18x18x32xf32, #tpu.memory_space<vmem>>, vector<16x16x32xf32>
    %48 = vector.shape_cast %47 : vector<16x16x32xf32> to vector<256x32xf32>
    %49 = arith.truncf %48 : vector<256x32xf32> to vector<256x32xbf16>
    %c6 = arith.constant 6 : index
    %c0_49 = arith.constant 0 : index
    %c0_50 = arith.constant 0 : index
    %50 = vector.load %arg2[%c6, %c0_49, %c0_50] : memref<9x32x32xbf16, #tpu.memory_space<vmem>>, vector<1x32x32xbf16>
    %51 = vector.shape_cast %50 : vector<1x32x32xbf16> to vector<32x32xbf16>
    %cst_51 = arith.constant dense<0.000000e+00> : vector<256x32xf32>
    %52 = tpu.matmul %49, %51, %cst_51 {dimension_numbers = #tpu.dot_dimension_numbers<[1], [0], [0], [1], [0, 0, 1, 1], [], []>} : vector<256x32xbf16>, vector<32x32xbf16>, vector<256x32xf32> -> vector<256x32xf32>
    %53 = arith.addf %46, %52 : vector<256x32xf32>
    %c2_52 = arith.constant 2 : index
    %c1_53 = arith.constant 1 : index
    %c0_54 = arith.constant 0 : index
    %54 = vector.load %arg7[%c2_52, %c1_53, %c0_54] : memref<18x18x32xf32, #tpu.memory_space<vmem>>, vector<16x16x32xf32>
    %55 = vector.shape_cast %54 : vector<16x16x32xf32> to vector<256x32xf32>
    %56 = arith.truncf %55 : vector<256x32xf32> to vector<256x32xbf16>
    %c7 = arith.constant 7 : index
    %c0_55 = arith.constant 0 : index
    %c0_56 = arith.constant 0 : index
    %57 = vector.load %arg2[%c7, %c0_55, %c0_56] : memref<9x32x32xbf16, #tpu.memory_space<vmem>>, vector<1x32x32xbf16>
    %58 = vector.shape_cast %57 : vector<1x32x32xbf16> to vector<32x32xbf16>
    %cst_57 = arith.constant dense<0.000000e+00> : vector<256x32xf32>
    %59 = tpu.matmul %56, %58, %cst_57 {dimension_numbers = #tpu.dot_dimension_numbers<[1], [0], [0], [1], [0, 0, 1, 1], [], []>} : vector<256x32xbf16>, vector<32x32xbf16>, vector<256x32xf32> -> vector<256x32xf32>
    %60 = arith.addf %53, %59 : vector<256x32xf32>
    %c2_58 = arith.constant 2 : index
    %c2_59 = arith.constant 2 : index
    %c0_60 = arith.constant 0 : index
    %61 = vector.load %arg7[%c2_58, %c2_59, %c0_60] : memref<18x18x32xf32, #tpu.memory_space<vmem>>, vector<16x16x32xf32>
    %62 = vector.shape_cast %61 : vector<16x16x32xf32> to vector<256x32xf32>
    %63 = arith.truncf %62 : vector<256x32xf32> to vector<256x32xbf16>
    %c8 = arith.constant 8 : index
    %c0_61 = arith.constant 0 : index
    %c0_62 = arith.constant 0 : index
    %64 = vector.load %arg2[%c8, %c0_61, %c0_62] : memref<9x32x32xbf16, #tpu.memory_space<vmem>>, vector<1x32x32xbf16>
    %65 = vector.shape_cast %64 : vector<1x32x32xbf16> to vector<32x32xbf16>
    %cst_63 = arith.constant dense<0.000000e+00> : vector<256x32xf32>
    %66 = tpu.matmul %63, %65, %cst_63 {dimension_numbers = #tpu.dot_dimension_numbers<[1], [0], [0], [1], [0, 0, 1, 1], [], []>} : vector<256x32xbf16>, vector<32x32xbf16>, vector<256x32xf32> -> vector<256x32xf32>
    %67 = arith.addf %60, %66 : vector<256x32xf32>
    %c0_64 = arith.constant 0 : index
    %c0_65 = arith.constant 0 : index
    %68 = vector.load %arg3[%c0_64, %c0_65] : memref<1x32xf32, #tpu.memory_space<vmem>>, vector<1x32xf32>
    %69 = vector.broadcast %68 : vector<1x32xf32> to vector<256x32xf32>
    %70 = arith.addf %67, %69 : vector<256x32xf32>
    %cst_66 = arith.constant dense<0.000000e+00> : vector<32xf32>
    %71 = vector.multi_reduction <add>, %70, %cst_66 [0] : vector<256x32xf32> to vector<32xf32>
    %72 = vector.shape_cast %71 : vector<32xf32> to vector<1x32xf32>
    %73 = arith.mulf %70, %70 : vector<256x32xf32>
    %cst_67 = arith.constant dense<0.000000e+00> : vector<32xf32>
    %74 = vector.multi_reduction <add>, %73, %cst_67 [0] : vector<256x32xf32> to vector<32xf32>
    %75 = vector.shape_cast %74 : vector<32xf32> to vector<1x32xf32>
    %cst_68 = arith.constant 3.906250e-03 : f32
    %76 = vector.broadcast %cst_68 : f32 to vector<1x32xf32>
    %77 = arith.mulf %72, %76 : vector<1x32xf32>
    %cst_69 = arith.constant 3.906250e-03 : f32
    %78 = vector.broadcast %cst_69 : f32 to vector<1x32xf32>
    %79 = arith.mulf %75, %78 : vector<1x32xf32>
    %80 = arith.mulf %77, %77 : vector<1x32xf32>
    %81 = arith.subf %79, %80 : vector<1x32xf32>
    %cst_70 = arith.constant 9.99999974E-6 : f32
    %82 = vector.broadcast %cst_70 : f32 to vector<1x32xf32>
    %83 = arith.addf %81, %82 : vector<1x32xf32>
    %84 = math.rsqrt %83 : vector<1x32xf32>
    %c0_71 = arith.constant 0 : index
    %c0_72 = arith.constant 0 : index
    %85 = vector.load %arg4[%c0_71, %c0_72] : memref<1x32xf32, #tpu.memory_space<vmem>>, vector<1x32xf32>
    %86 = arith.mulf %84, %85 : vector<1x32xf32>
    %c0_73 = arith.constant 0 : index
    %c0_74 = arith.constant 0 : index
    %87 = vector.load %arg5[%c0_73, %c0_74] : memref<1x32xf32, #tpu.memory_space<vmem>>, vector<1x32xf32>
    %88 = arith.mulf %77, %86 : vector<1x32xf32>
    %89 = arith.subf %87, %88 : vector<1x32xf32>
    %90 = vector.broadcast %86 : vector<1x32xf32> to vector<256x32xf32>
    %91 = arith.mulf %70, %90 : vector<256x32xf32>
    %92 = vector.broadcast %89 : vector<1x32xf32> to vector<256x32xf32>
    %93 = arith.addf %91, %92 : vector<256x32xf32>
    %cst_75 = arith.constant 0.000000e+00 : f32
    %94 = vector.broadcast %cst_75 : f32 to vector<256x32xf32>
    %95 = arith.maximumf %93, %94 : vector<256x32xf32>
    %c0_76 = arith.constant 0 : index
    %c0_77 = arith.constant 0 : index
    %c0_78 = arith.constant 0 : index
    %96 = vector.load %arg6[%c0_76, %c0_77, %c0_78] : memref<1x256x32xf32, #tpu.memory_space<vmem>>, vector<1x256x32xf32>
    %97 = vector.shape_cast %96 : vector<1x256x32xf32> to vector<256x32xf32>
    %98 = vector.shape_cast %95 : vector<256x32xf32> to vector<1x256x32xf32>
    tpu.vector_store %arg6[%c0_76, %c0_77, %c0_78], %98 {strides = array<i32>} : memref<1x256x32xf32, #tpu.memory_space<vmem>>, vector<1x256x32xf32>,
    return
  }
  func.func @transform_0(%arg0: i32) -> (i32, i32, i32, i32) {
    %c0_i32 = arith.constant 0 : i32
    %c0_i32_0 = arith.constant 0 : i32
    %c0_i32_1 = arith.constant 0 : i32
    %c0_i32_2 = arith.constant 0 : i32
    return %arg0, %c0_i32, %c0_i32_0, %c0_i32_1 : i32, i32, i32, i32
  }
  func.func @transform_1(%arg0: i32) -> (i32, i32, i32) {
    %c0_i32 = arith.constant 0 : i32
    %c0_i32_0 = arith.constant 0 : i32
    %c0_i32_1 = arith.constant 0 : i32
    %c0_i32_2 = arith.constant 0 : i32
    return %c0_i32, %c0_i32_0, %c0_i32_1 : i32, i32, i32
  }
  func.func @transform_2(%arg0: i32) -> (i32, i32) {
    %c0_i32 = arith.constant 0 : i32
    %c0_i32_0 = arith.constant 0 : i32
    %c0_i32_1 = arith.constant 0 : i32
    return %c0_i32, %c0_i32_0 : i32, i32
  }
  func.func @transform_3(%arg0: i32) -> (i32, i32) {
    %c0_i32 = arith.constant 0 : i32
    %c0_i32_0 = arith.constant 0 : i32
    %c0_i32_1 = arith.constant 0 : i32
    return %c0_i32, %c0_i32_0 : i32, i32
  }
  func.func @transform_4(%arg0: i32) -> (i32, i32) {
    %c0_i32 = arith.constant 0 : i32
    %c0_i32_0 = arith.constant 0 : i32
    %c0_i32_1 = arith.constant 0 : i32
    return %c0_i32, %c0_i32_0 : i32, i32
  }
  func.func @transform_5(%arg0: i32) -> (i32, i32, i32) {
    %c0_i32 = arith.constant 0 : i32
    %c0_i32_0 = arith.constant 0 : i32
    %c0_i32_1 = arith.constant 0 : i32
    return %arg0, %c0_i32, %c0_i32_0 : i32, i32, i32
  }
}

</mosaic_0001>

<bundles_post_ra>
// kernel: tile.8
= control target key start
LH: loop header
LB: loop body
LE: loop exit
PB: predicated region body
PF: predicated region fallthrough
CT: control target
= control target key end

     0   :  { %s22_s0 = inlined_call_operand.vmem [shape: f32[32], index: 0, kind: input, shape index: {}]   ;;  %s23_s1 = inlined_call_operand.vmem [shape: f32[4,32], index: 1, kind: output, shape index: {}]  }
   0x1   :  { %v4_v0 = vld [vmem:[%s22_s0] ss:$0 sm:$0xff] }
   0x2   :  { %5 = vst [vmem:[%s23_s1] sm:$0xf] %v4_v0 }

// kernel: tile.9
= control target key start
LH: loop header
LB: loop body
LE: loop exit
PB: predicated region body
PF: predicated region fallthrough
CT: control target
= control target key end

     0   :  { %vm8_vm0 = vcmask 261120   ;;  %s40_s8 = smov 32   ;;  %s41_s9 = smov 64   ;;  %vm14_vm1 = vcmask 1048320   ;;  %vm20_vm2 = vcmask 785920   ;;  %vm26_vm3 = vcmask 523520   ;;  %s58_s0 = inlined_call_operand.vmem [shape: f32[4,32], index: 0, kind: input, shape index: {}]   ;;  %s59_s1 = inlined_call_operand.vmem [shape: f32[1,128], index: 1, kind: output, shape index: {}]  }
   0x1   :  { %v5_v0 = vld [vmem:[%s58_s0] sm:$0xf]  ;;  %s39_s0 = smov 96  }
   0x2   :  { %6 = vst [vmem:[#allocation1] sm:$0xf] %v5_v0 }
   0x9   :  { %v11_v1 = vld [vmem:[#allocation1 + $0x3] sm:$0x1]   ;;  %v23_v2 = vld [vmem:[#allocation1 + $0x1] sm:$0x1]   ;;  %v7_v3 = vld [vmem:[#allocation1] sm:$0x1]  }
   0xa   :  { %12 = vrot.lane.b32.xlu0 %v11_v1, %s39_s0  ;;  %24 = vrot.lane.b32.xlu1 %v23_v2, %s40_s8  ;;  %v17_v4 = vld [vmem:[#allocation1 + $0x2] sm:$0x1]   ;;  %9 = vst.msk [vmem:[#allocation0] sm:$0x1] %vm8_vm0, %v7_v3  }
   0xe   :  { %18 = vrot.lane.b32.xlu0 %v17_v4, %s41_s9 }
  0x7c   :  { %v13_v5 = vpop.permute.xlu0 %12   ;;  %v25_v6 = vpop.permute.xlu1 %24  }
  0x7d   :  { %15 = vst.msk [vmem:[#allocation0] sm:$0x1] %vm14_vm1, %v13_v5  }
  0x80   :  { %v19_v7 = vpop.permute.xlu0 %18  }
  0x81   :  { %21 = vst.msk [vmem:[#allocation0] sm:$0x1] %vm20_vm2, %v19_v7  }
  0x82   :  { %27 = vst.msk [vmem:[#allocation0] sm:$0x1] %vm26_vm3, %v25_v6  }
  0x89   :  { %v32_v8 = vld [vmem:[#allocation0] sm:$0x1] }
  0x8a   :  { %35 = vst [vmem:[%s59_s1] sm:$0x1] %v32_v8 }

// kernel: up_forward.3
= control target key start
LH: loop header
LB: loop body
LE: loop exit
PB: predicated region body
PF: predicated region fallthrough
CT: control target
= control target key end

     0   :  { %s539_s12 = smov 0   ;;  %s541_s13 = smov 0   ;;  %s610_s0 = inlined_call_operand.vmem [shape: bf16[2,8,8,64], index: 0, kind: input, shape index: {}]   ;;  %s611_s1 = inlined_call_operand.vmem [shape: bf16[64,128], index: 1, kind: input, shape index: {}]   ;;  %s612_s2 = inlined_call_operand.vmem [shape: f32[1,128], index: 2, kind: input, shape index: {}]   ;;  %s613_s3 = inlined_call_operand.vmem [shape: bf16[2,16,8,64], index: 3, kind: output, shape index: {}]  }
   0x1   :  { %s543_s14 = smov 0   ;;  %s545_s15 = smov 0  }
   0x2   :  { %s547_s16 = smov 0  }
   0x3 LB: > { %s22_s17 = sadd.s32 1, %s506_s14  ;;  %s25_s18 = sadd.s32 1, %s510_s15  ;;  %s514_s16 = sphi %s547_s16, %s13_s16   ;;  %s510_s15 = sphi %s545_s15, %s617_s15   ;;  %s506_s14 = sphi %s543_s14, %s616_s14   ;;  %s502_s13 = sphi %s541_s13, %s615_s13   ;;  %s498_s12 = sphi %s539_s12, %s614_s12  }
   0x4   : > { %p23_p0 = scmp.ge.s32.totalorder %s22_s17, 8  ;;  %p395_p1 = scmp.ge.s32.totalorder %s514_s16, 1 }
   0x5   : > { %p156_p2 = scmp.lt.s32.totalorder %s514_s16, 17 }
   0x6   : > { %s619_s17 = smov (%p23_p0, %s22_s17), 0  ;;  %s621_s18 = smov (!%p23_p0, %s25_s18), %s510_s15 }
   0x7   : > { %p157_p3 = pnand %p395_p1, %p156_p2  ;;  %p27_p4 = scmp.ge.s32.totalorder %s621_s18, 2 }
   0x8   : > { %p187_p5 = scmp.lt.s32.totalorder (!%p157_p3), %s502_s13, 1  ;;  %p189_p6 = scmp.lt.s32.totalorder (!%p157_p3), %s498_s12, 7 }
   0x9   : > { %s623_s18 = smov (%p27_p4, %s621_s18), 0  ;;  %160 = sbr.rel (%p157_p3) target bundleno = 344 (0x158), region = 32 }
   0xa   : > { %s398_s7 = sshll.u32 (!%p157_p3), %s498_s12, 1 }
   0xb   : > { %p198_p7 = scmp.lt.s32.totalorder (!%p157_p3), %s398_s7, 15 }
   0xe   : > { %v472_v0 = vld [vmem:[%s611_s1 + $0x18] sm:$0xff]   ;;  %v516_v1 = vmov 0.0   ;;  %v473_v2 = vld [vmem:[%s611_s1 + $0x10] sm:$0xff]   ;;  %vm517_vm0 = vmmov 0   ;;  %s625_s13 = smov (!%p187_p5, %s502_s13), 1  ;;  %v474_v3 = vld [vmem:[%s611_s1 + $0x8] sm:$0xff]  }
   0xf   : > { %417 = vmatprep.subr.bf16.mxu0 %v516_v1  ;;  %425 = vmatprep.mubr.msk.bf16.mxu0 %vm517_vm0, %v516_v1  ;;  %s190_s23 = scalar_select %p189_p6, %s498_s12, 7  ;;  %v475_v4 = vld [vmem:[%s611_s1] sm:$0xff]   ;;  %vm246_vm1 = vcmask 523264   ;;  %vm291_vm2 = vcmask 519168  }
  0x10   : > { %418 = vmatpush3.bf16.msra.mxu0 %v472_v0  ;;  %s396_s26 = sshll.u32 %s625_s13, 3  ;;  %s627_s7 = smov (!%p198_p7, %s398_s7), 15  ;;  %v401_v6 = vld [vmem:[%s612_s2] ss:$0 sm:$0xff] }
  0x11   : > { %419 = vmatprep.subr.bf16.mxu0 %v516_v1  ;;  %s192_s27 = sadd.s32 %s396_s26, %s190_s23  ;;  %s399_s8 = sshll.u32 %s625_s13, 4 }
  0x12   : > { %s397_s28 = sshll.u32 %s192_s27, 2  ;;  %s201_s9 = sadd.s32 %s399_s8, %s627_s7 }
  0x13   : > { %s194_s6 = scalar_lea.vmem %s610_s0, %s397_s28  ;;  %s400_s19 = sshll.u32 %s201_s9, 2 }
  0x14   : > { %420 = vmatpush3.bf16.msra.mxu0 %v473_v2  ;;  %v206_v5 = vld [vmem:[%s194_s6] sm:$0xf]  ;;  %s203_s22 = scalar_lea.vmem %s613_s3, %s400_s19  ;;  %s518_s12 = smov 64  }
  0x15   : > { %421 = vmatprep.subr.bf16.mxu0 %v516_v1 }
  0x18   : > { %422 = vmatpush3.bf16.msra.mxu0 %v474_v3 }
  0x19   : > { %423 = vmatprep.subr.bf16.mxu0 %v516_v1 }
  0x1c   : > { %424 = vmatpush3.bf16.msra.mxu0 %v475_v4 }
  0x1f   : > { %426 = vmatmul.mubr.msk.bf16.vlgmr.msra.gmra.mxu0 %vm246_vm1, %v206_v5 }
  0xdf   : > { %v284_v7 = vpop.f32.mrf.mxu0 }
  0xe0   : > { %v285_v8 = vadd.f32 %v401_v6, %v284_v7 }
  0xe1   : > { %v427_v9 = vpop.f32.mrf.mxu0 }
  0xe2   : > { %v290_v10 = vpack.c.bf16 %v285_v8, %v285_v8 }
  0xe3   : > { %v287_v11 = vpop.f32.mrf.mxu0 }
  0xe4   : > { %296 = vrot.lane.b32.xlu0 %v290_v10, %s518_s12  ;;  %292 = vst.msk [vmem:[%s203_s22] sm:$0xf] %vm291_vm2, %v290_v10 }
  0xe5   : > { %v428_v12 = vpop.f32.mrf.mxu0 }
 0x156   : > { %v297_v13 = vpop.permute.xlu0 %296 }
 0x157   : > { %408 = vst.msk [vmem:[%s203_s22 + $0x4] sm:$0xf] %vm291_vm2, %v297_v13 }
 0x158 PF: > { %s13_s16 = sadd.s32 1, %s514_s16   ;;  %s614_s12 = smov %s506_s14 }
 0x159   : > { %p10_p8 = scmp.ge.s32.totalorder %s13_s16, 18   ;;  %s615_s13 = smov %s510_s15 }
 0x15a   : > { %s616_s14 = smov %s619_s17  ;;  %s617_s15 = smov %s623_s18 }
 0x15b   :  { %12 = sbr.rel (!%p10_p8) target bundleno = 3 (0x3), region = 63 }

// kernel: up_forward.4
= control target key start
LH: loop header
LB: loop body
LE: loop exit
PB: predicated region body
PF: predicated region fallthrough
CT: control target
= control target key end

     0   :  { %s5244_s21 = smov 0   ;;  %s6861_s0 = inlined_call_operand.vmem [shape: bf16[2,16,16,32], index: 0, kind: input, shape index: {}]   ;;  %s6862_s1 = inlined_call_operand.vmem [shape: bf16[2,16,16,32], index: 1, kind: input, shape index: {}]   ;;  %s6863_s2 = inlined_call_operand.vmem [shape: bf16[9,64,32], index: 2, kind: input, shape index: {}]   ;;  %s6864_s3 = inlined_call_operand.vmem [shape: f32[1,32], index: 3, kind: input, shape index: {}]   ;;  %s6865_s4 = inlined_call_operand.vmem [shape: f32[1,32], index: 4, kind: input, shape index: {}]   ;;  %s6866_s5 = inlined_call_operand.vmem [shape: f32[1,32], index: 5, kind: input, shape index: {}]   ;;  %s6867_s6 = inlined_call_operand.vmem [shape: bf16[2,256,32], index: 6, kind: output, shape index: {}]  }
   0x1 LB: > { %s4040_s22 = sadd.s32 4294967295, %s5205_s21   ;;  %p4044_p0 = scmp.ge.s32.totalorder %s5205_s21, 1  ;;  %s5205_s21 = sphi %s5244_s21, %s16_s21  }
   0x2   : > { %p222_p1 = scmp.lt.s32.totalorder %s5205_s21, 3 }
   0x4   : > { %p223_p2 = pnand %p4044_p0, %p222_p1 }
   0x6   : > { %226 = sbr.rel (%p223_p2) target bundleno = 726 (0x2d6), region = 44 }
   0xb   : > { %p257_p3 = scmp.lt.s32.totalorder %s4040_s22, 1  ;;  %v5255_v0 = vld [vmem:[%s6863_s2 + $0x38] sm:$0xff]   ;;  %vm273_vm0 = vcmask 523264   ;;  %vm276_vm1 = vcmask 517120   ;;  %v5260_v1 = vld [vmem:[%s6863_s2 + $0x30] sm:$0xff]   ;;  %v5207_v2 = vmov 0.0  }
   0xc   : > { %299 = vst.msk [vmem:[#allocation2 + $0xc0] sm:$0xff] %vm273_vm0, %v5207_v2  ;;  %300 = vst.msk [vmem:[#allocation2 + $0xc8] sm:$0xff] %vm273_vm0, %v5207_v2  ;;  %4703 = vmatprep.subr.bf16.mxu0 %v5255_v0  ;;  %5063 = vmatprep.subr.bf16.mxu1 %v5255_v0  ;;  %v5163_v3 = vld [vmem:[%s6863_s2 + $0x28] sm:$0xff]   ;;  %v5164_v22 = vld [vmem:[%s6863_s2 + $0x20] sm:$0xff]   ;;  %s5208_s14 = smov 32   ;;  %vm394_vm2 = vcmask 261120  }
   0xd   : > { %s6887_s22 = smov (!%p257_p3, %s4040_s22), 1  ;;  %301 = vst.msk [vmem:[#allocation2 + $0xd0] sm:$0x3] %vm276_vm1, %v5207_v2  ;;  %277 = vst.msk [vmem:[#allocation2 + $0x10] sm:$0x3] %vm276_vm1, %v5207_v2  ;;  %4704 = vmatpush3.bf16.msra.mxu0 %v5255_v0  ;;  %5067 = vmatpush3.bf16.msra.mxu1 %v5255_v0  ;;  %v5372_v45 = vld [vmem:[%s6863_s2 + $0x18] sm:$0xff]  }
   0xe   : > { %274 = vst.msk [vmem:[#allocation2] sm:$0xff] %vm273_vm0, %v5207_v2  ;;  %275 = vst.msk [vmem:[#allocation2 + $0x8] sm:$0xff] %vm273_vm0, %v5207_v2  ;;  %s5321_s27 = sshll.u32 %s6887_s22, 7  ;;  %4705 = vmatprep.subr.bf16.mxu0 %v5260_v1  ;;  %5064 = vmatprep.subr.bf16.mxu1 %v5260_v1  ;;  %v5383_v56 = vld [vmem:[%s6863_s2 + $0x58] sm:$0xff]   ;;  %vm619_vm3 = vcmask 523520   ;;  %vm3940_vm4 = vcmask 257024  }
   0xf   : > { %278 = vst.msk [vmem:[#allocation2 + $0x18] sm:$0xff] %vm273_vm0, %v5207_v2  ;;  %279 = vst.msk [vmem:[#allocation2 + $0x20] sm:$0xff] %vm273_vm0, %v5207_v2  ;;  %s5332_s8 = scalar_lea.vmem %s6862_s1, %s5321_s27  ;;  %s5353_s13 = scalar_lea.vmem %s6861_s0, %s5321_s27 }
  0x10   : > { %280 = vst.msk [vmem:[#allocation2 + $0x28] sm:$0x3] %vm276_vm1, %v5207_v2  ;;  %283 = vst.msk [vmem:[#allocation2 + $0x40] sm:$0x3] %vm276_vm1, %v5207_v2  ;;  %v4514_v4 = vld [vmem:[%s5332_s8 + $0x38] sm:$0xff]   ;;  %v4430_v5 = vld [vmem:[%s5332_s8] sm:$0xff]   ;;  %s6788_s22 = scalar_lea.vmem %s6867_s6, %s5321_s27 }
  0x11   : > { %281 = vst.msk [vmem:[#allocation2 + $0x30] sm:$0xff] %vm273_vm0, %v5207_v2  ;;  %282 = vst.msk [vmem:[#allocation2 + $0x38] sm:$0xff] %vm273_vm0, %v5207_v2  ;;  %v4515_v6 = vld [vmem:[%s5332_s8 + $0x40] sm:$0xff]   ;;  %v4459_v7 = vunpack.c.l.bf16 %v4514_v4  ;;  %v4460_v8 = vunpack.c.h.bf16 %v4514_v4  ;;  %v4431_v9 = vunpack.c.l.bf16 %v4430_v5  ;;  %v4432_v10 = vunpack.c.h.bf16 %v4430_v5  ;;  %v4516_v11 = vld [vmem:[%s5332_s8 + $0x48] sm:$0xff]   ;;  %4706 = vmatpush3.bf16.msra.mxu0 %v5260_v1  ;;  %5068 = vmatpush3.bf16.msra.mxu1 %v5260_v1 }
  0x12   : > { %284 = vst.msk [vmem:[#allocation2 + $0x48] sm:$0xff] %vm273_vm0, %v5207_v2  ;;  %285 = vst.msk [vmem:[#allocation2 + $0x50] sm:$0xff] %vm273_vm0, %v5207_v2  ;;  %v4517_v12 = vld [vmem:[%s5332_s8 + $0x50] sm:$0xff]   ;;  %v4463_v13 = vunpack.c.l.bf16 %v4515_v6  ;;  %v4464_v14 = vunpack.c.h.bf16 %v4515_v6  ;;  %v4467_v15 = vunpack.c.l.bf16 %v4516_v11  ;;  %v4468_v16 = vunpack.c.h.bf16 %v4516_v11  ;;  %v4508_v17 = vld [vmem:[%s5332_s8 + $0x8] sm:$0xff]   ;;  %4707 = vmatprep.subr.bf16.mxu0 %v5163_v3  ;;  %5065 = vmatprep.subr.bf16.mxu1 %v5163_v3 }
  0x13   : > { %286 = vst.msk [vmem:[#allocation2 + $0x58] sm:$0x3] %vm276_vm1, %v5207_v2  ;;  %289 = vst.msk [vmem:[#allocation2 + $0x70] sm:$0x3] %vm276_vm1, %v5207_v2  ;;  %v5081_v18 = vpack.i.bf16 %v4460_v8, %v4459_v7  ;;  %v5091_v19 = vpack.i.bf16 %v4432_v10, %v4431_v9  ;;  %v4509_v20 = vld [vmem:[%s5332_s8 + $0x10] sm:$0xff]   ;;  %v4518_v21 = vld [vmem:[%s5332_s8 + $0x58] sm:$0xff]   ;;  %v4471_v23 = vunpack.c.l.bf16 %v4517_v12  ;;  %v4472_v24 = vunpack.c.h.bf16 %v4517_v12 }
  0x14   : > { %287 = vst.msk [vmem:[#allocation2 + $0x60] sm:$0xff] %vm273_vm0, %v5207_v2  ;;  %288 = vst.msk [vmem:[#allocation2 + $0x68] sm:$0xff] %vm273_vm0, %v5207_v2  ;;  %v4519_v25 = vld [vmem:[%s5332_s8 + $0x60] sm:$0xff]   ;;  %v5086_v26 = vpack.i.bf16 %v4464_v14, %v4463_v13  ;;  %v5096_v27 = vpack.i.bf16 %v4468_v16, %v4467_v15  ;;  %v4435_v28 = vunpack.c.l.bf16 %v4508_v17  ;;  %v4436_v29 = vunpack.c.h.bf16 %v4508_v17  ;;  %v4510_v30 = vld [vmem:[%s5332_s8 + $0x18] sm:$0xff]  }
  0x15   : > { %290 = vst.msk [vmem:[#allocation2 + $0x78] sm:$0xff] %vm273_vm0, %v5207_v2  ;;  %291 = vst.msk [vmem:[#allocation2 + $0x80] sm:$0xff] %vm273_vm0, %v5207_v2  ;;  %5082 = vrot.lane.b32.xlu0 %v5081_v18, %s5208_s14  ;;  %5092 = vrot.lane.b32.xlu1 %v5091_v19, %s5208_s14  ;;  %v4439_v31 = vunpack.c.l.bf16 %v4509_v20  ;;  %v4440_v32 = vunpack.c.h.bf16 %v4509_v20  ;;  %v4475_v33 = vunpack.c.l.bf16 %v4518_v21  ;;  %v4476_v34 = vunpack.c.h.bf16 %v4518_v21  ;;  %v5360_v35 = vld [vmem:[%s5332_s8 + $0x20] sm:$0xff]   ;;  %v5363_v38 = vld [vmem:[%s5332_s8 + $0x68] sm:$0xff]  }
  0x16   : > { %292 = vst.msk [vmem:[#allocation2 + $0x88] sm:$0x3] %vm276_vm1, %v5207_v2  ;;  %295 = vst.msk [vmem:[#allocation2 + $0xa0] sm:$0x3] %vm276_vm1, %v5207_v2  ;;  %4708 = vmatpush3.bf16.msra.mxu0 %v5163_v3  ;;  %5069 = vmatpush3.bf16.msra.mxu1 %v5163_v3  ;;  %v4479_v36 = vunpack.c.l.bf16 %v4519_v25  ;;  %v4480_v37 = vunpack.c.h.bf16 %v4519_v25  ;;  %v4499_v39 = vld [vmem:[%s5353_s13 + $0x38] sm:$0xff]   ;;  %v4366_v40 = vld [vmem:[%s5353_s13] sm:$0xff]   ;;  %v4443_v41 = vunpack.c.l.bf16 %v4510_v30  ;;  %v4444_v42 = vunpack.c.h.bf16 %v4510_v30 }
  0x17   : > { %293 = vst.msk [vmem:[#allocation2 + $0x90] sm:$0xff] %vm273_vm0, %v5207_v2  ;;  %294 = vst.msk [vmem:[#allocation2 + $0x98] sm:$0xff] %vm273_vm0, %v5207_v2  ;;  %4709 = vmatprep.subr.bf16.mxu0 %v5164_v22  ;;  %5066 = vmatprep.subr.bf16.mxu1 %v5164_v22  ;;  %v4500_v43 = vld [vmem:[%s5353_s13 + $0x40] sm:$0xff]   ;;  %v4501_v44 = vld [vmem:[%s5353_s13 + $0x48] sm:$0xff]   ;;  %v5101_v46 = vpack.i.bf16 %v4472_v24, %v4471_v23  ;;  %v5106_v47 = vpack.i.bf16 %v4436_v29, %v4435_v28  ;;  %v4447_v52 = vunpack.c.l.bf16 %v5360_v35 }
  0x18   : > { %296 = vst.msk [vmem:[#allocation2 + $0xa8] sm:$0xff] %vm273_vm0, %v5207_v2  ;;  %297 = vst.msk [vmem:[#allocation2 + $0xb0] sm:$0xff] %vm273_vm0, %v5207_v2  ;;  %v4502_v48 = vld [vmem:[%s5353_s13 + $0x50] sm:$0xff]   ;;  %v4493_v49 = vld [vmem:[%s5353_s13 + $0x8] sm:$0xff]   ;;  %v5111_v50 = vpack.i.bf16 %v4440_v32, %v4439_v31  ;;  %v5116_v51 = vpack.i.bf16 %v4476_v34, %v4475_v33  ;;  %v5385_v57 = vpack.i.bf16 %v4480_v37, %v4479_v36  ;;  %v4448_v58 = vunpack.c.h.bf16 %v5360_v35 }
  0x19   : > { %298 = vst.msk [vmem:[#allocation2 + $0xb8] sm:$0x3] %vm276_vm1, %v5207_v2  ;;  %304 = vst.msk [vmem:[#allocation2 + $0xe8] sm:$0x3] %vm276_vm1, %v5207_v2  ;;  %5087 = vrot.lane.b32.xlu0 %v5086_v26, %s5208_s14  ;;  %5097 = vrot.lane.b32.xlu1 %v5096_v27, %s5208_s14  ;;  %v708_v53 = vld [vmem:[#allocation2 + $0x1] sm:$0xff]  ;;  %v709_v54 = vld [vmem:[#allocation2 + $0x9] sm:$0xff]  ;;  %v4483_v59 = vunpack.c.l.bf16 %v5363_v38  ;;  %v4395_v60 = vunpack.c.l.bf16 %v4499_v39  ;;  %v5392_v63 = vpack.i.bf16 %v4444_v42, %v4443_v41  ;;  %v4396_v0 = vunpack.c.h.bf16 %v4499_v39 }
  0x1a   : > { %302 = vst.msk [vmem:[#allocation2 + $0xd8] sm:$0xff] %vm273_vm0, %v5207_v2  ;;  %303 = vst.msk [vmem:[#allocation2 + $0xe0] sm:$0xff] %vm273_vm0, %v5207_v2  ;;  %4710 = vmatpush3.bf16.msra.mxu0 %v5164_v22  ;;  %v4494_v55 = vld [vmem:[%s5353_s13 + $0x10] sm:$0xff]   ;;  %5070 = vmatpush3.bf16.msra.mxu1 %v5164_v22  ;;  %v4503_v61 = vld [vmem:[%s5353_s13 + $0x58] sm:$0xff]   ;;  %v4367_v1 = vunpack.c.l.bf16 %v4366_v40  ;;  %v4484_v5 = vunpack.c.h.bf16 %v5363_v38  ;;  %v4399_v6 = vunpack.c.l.bf16 %v4500_v43  ;;  %v4400_v7 = vunpack.c.h.bf16 %v4500_v43 }
  0x1b   : > { %305 = vst.msk [vmem:[#allocation2 + $0xf0] sm:$0xff] %vm273_vm0, %v5207_v2  ;;  %306 = vst.msk [vmem:[#allocation2 + $0xf8] sm:$0xff] %vm273_vm0, %v5207_v2  ;;  %4743 = vmatprep.subr.bf16.mxu1 %v5372_v45  ;;  %v4504_v62 = vld [vmem:[%s5353_s13 + $0x60] sm:$0xff]   ;;  %4783 = vmatprep.subr.bf16.mxu0 %v5383_v56  ;;  %v4495_v3 = vld [vmem:[%s5353_s13 + $0x18] sm:$0xff]   ;;  %v4403_v8 = vunpack.c.l.bf16 %v4501_v44  ;;  %v4404_v9 = vunpack.c.h.bf16 %v4501_v44  ;;  %v4407_v10 = vunpack.c.l.bf16 %v4502_v48  ;;  %v4408_v11 = vunpack.c.h.bf16 %v4502_v48 }
  0x1c   : > { %307 = vst.msk [vmem:[#allocation2 + $0x100] sm:$0x3] %vm276_vm1, %v5207_v2  ;;  %310 = vst.msk [vmem:[#allocation2 + $0x118] sm:$0x3] %vm276_vm1, %v5207_v2  ;;  %v4496_v4 = vld [vmem:[%s5353_s13 + $0x20] sm:$0xff]   ;;  %v4371_v12 = vunpack.c.l.bf16 %v4493_v49  ;;  %v4505_v13 = vld [vmem:[%s5353_s13 + $0x68] sm:$0xff]   ;;  %v4372_v15 = vunpack.c.h.bf16 %v4493_v49  ;;  %v740_v16 = vpack.c.bf16 %v709_v54, %v708_v53  ;;  %v4375_v17 = vunpack.c.l.bf16 %v4494_v55 }
  0x1d   : > { %308 = vst.msk [vmem:[#allocation2 + $0x108] sm:$0xff] %vm273_vm0, %v5207_v2  ;;  %309 = vst.msk [vmem:[#allocation2 + $0x110] sm:$0xff] %vm273_vm0, %v5207_v2  ;;  %5102 = vrot.lane.b32.xlu0 %v5101_v46, %s5208_s14  ;;  %5107 = vrot.lane.b32.xlu1 %v5106_v47, %s5208_s14  ;;  %v5406_v14 = vld [vmem:[%s5332_s8 + $0x70] sm:$0xff]   ;;  %v4376_v18 = vunpack.c.h.bf16 %v4494_v55  ;;  %v4411_v19 = vunpack.c.l.bf16 %v4503_v61  ;;  %v4412_v20 = vunpack.c.h.bf16 %v4503_v61  ;;  %v4415_v21 = vunpack.c.l.bf16 %v4504_v62  ;;  %v4512_v28 = vld [vmem:[%s5332_s8 + $0x28] sm:$0xff]  }
  0x1e   : > { %311 = vst.msk [vmem:[#allocation2 + $0x120] sm:$0xff] %vm273_vm0, %v5207_v2  ;;  %312 = vst.msk [vmem:[#allocation2 + $0x128] sm:$0xff] %vm273_vm0, %v5207_v2  ;;  %v4416_v22 = vunpack.c.h.bf16 %v4504_v62  ;;  %v4506_v23 = vld [vmem:[%s5353_s13 + $0x70] sm:$0xff]   ;;  %v4379_v24 = vunpack.c.l.bf16 %v4495_v3  ;;  %v4380_v25 = vunpack.c.h.bf16 %v4495_v3  ;;  %v4383_v26 = vunpack.c.l.bf16 %v4496_v4  ;;  %4711 = vmatprep.mubr.msk.bf16.mxu0 %vm273_vm0, %v740_v16  ;;  %v4497_v33 = vld [vmem:[%s5353_s13 + $0x28] sm:$0xff]  }
  0x1f   : > { %313 = vst.msk [vmem:[#allocation2 + $0x130] sm:$0x3] %vm276_vm1, %v5207_v2  ;;  %316 = vst.msk [vmem:[#allocation2 + $0x148] sm:$0x3] %vm276_vm1, %v5207_v2  ;;  %v4384_v27 = vunpack.c.h.bf16 %v4496_v4  ;;  %v4419_v29 = vunpack.c.l.bf16 %v4505_v13  ;;  %v4420_v30 = vunpack.c.h.bf16 %v4505_v13  ;;  %v4423_v31 = vunpack.c.l.bf16 %v4506_v23  ;;  %v4498_v37 = vld [vmem:[%s5353_s13 + $0x30] sm:$0xff]  }
  0x20   : > { %314 = vst.msk [vmem:[#allocation2 + $0x138] sm:$0xff] %vm273_vm0, %v5207_v2  ;;  %315 = vst.msk [vmem:[#allocation2 + $0x140] sm:$0xff] %vm273_vm0, %v5207_v2  ;;  %v4424_v32 = vunpack.c.h.bf16 %v4506_v23  ;;  %v4387_v34 = vunpack.c.l.bf16 %v4497_v33  ;;  %v4388_v36 = vunpack.c.h.bf16 %v4497_v33  ;;  %v4487_v39 = vunpack.c.l.bf16 %v5406_v14  ;;  %v4513_v48 = vld [vmem:[%s5332_s8 + $0x30] sm:$0xff]  }
  0x21   : > { %317 = vst.msk [vmem:[#allocation2 + $0x150] sm:$0xff] %vm273_vm0, %v5207_v2  ;;  %318 = vst.msk [vmem:[#allocation2 + $0x158] sm:$0xff] %vm273_vm0, %v5207_v2  ;;  %5112 = vrot.lane.b32.xlu0 %v5111_v50, %s5208_s14  ;;  %5117 = vrot.lane.b32.xlu1 %v5116_v51, %s5208_s14  ;;  %v4391_v41 = vunpack.c.l.bf16 %v4498_v37  ;;  %v4392_v42 = vunpack.c.h.bf16 %v4498_v37  ;;  %v5131_v43 = vpack.i.bf16 %v4448_v58, %v4447_v52  ;;  %v4451_v46 = vunpack.c.l.bf16 %v4512_v28  ;;  %v4522_v52 = vld [vmem:[%s5332_s8 + $0x78] sm:$0xff]   ;;  %v5168_v16 = vld [vmem:[%s6863_s2 + $0x50] sm:$0xff]  }
  0x22   : > { %319 = vst.msk [vmem:[#allocation2 + $0x160] sm:$0x3] %vm276_vm1, %v5207_v2  ;;  %322 = vst.msk [vmem:[#allocation2 + $0x178] sm:$0x3] %vm276_vm1, %v5207_v2  ;;  %v5136_v44 = vpack.i.bf16 %v4484_v5, %v4483_v59  ;;  %v4452_v47 = vunpack.c.h.bf16 %v4512_v28  ;;  %v4455_v38 = vunpack.c.l.bf16 %v4513_v48  ;;  %v4456_v50 = vunpack.c.h.bf16 %v4513_v48 }
  0x23   : > { %320 = vst.msk [vmem:[#allocation2 + $0x168] sm:$0xff] %vm273_vm0, %v5207_v2  ;;  %321 = vst.msk [vmem:[#allocation2 + $0x170] sm:$0xff] %vm273_vm0, %v5207_v2  ;;  %v4491_v53 = vunpack.c.l.bf16 %v4522_v52  ;;  %v4492_v54 = vunpack.c.h.bf16 %v4522_v52 }
  0x24   : > { %323 = vst.msk [vmem:[#allocation2 + $0x180] sm:$0xff] %vm273_vm0, %v5207_v2  ;;  %324 = vst.msk [vmem:[#allocation2 + $0x188] sm:$0xff] %vm273_vm0, %v5207_v2  ;;  %v5146_v49 = vpack.i.bf16 %v4452_v47, %v4451_v46  ;;  %v5151_v51 = vpack.i.bf16 %v4456_v50, %v4455_v38  ;;  %v5172_v47 = vld [vmem:[%s6863_s2 + $0x40] sm:$0xff]  }
  0x25   : > { %325 = vst.msk [vmem:[#allocation2 + $0x190] sm:$0x3] %vm276_vm1, %v5207_v2  ;;  %328 = vst.msk [vmem:[#allocation2 + $0x1a8] sm:$0x3] %vm276_vm1, %v5207_v2  ;;  %5122 = vrot.lane.b32.xlu0 %v5385_v57, %s5208_s14  ;;  %5127 = vrot.lane.b32.xlu1 %v5392_v63, %s5208_s14  ;;  %v5156_v55 = vpack.i.bf16 %v4492_v54, %v4491_v53 }
  0x26   : > { %326 = vst.msk [vmem:[#allocation2 + $0x198] sm:$0xff] %vm273_vm0, %v5207_v2  ;;  %327 = vst.msk [vmem:[#allocation2 + $0x1a0] sm:$0xff] %vm273_vm0, %v5207_v2  ;;  %v4368_v2 = vunpack.c.h.bf16 %v4366_v40  ;;  %v4488_v40 = vunpack.c.h.bf16 %v5406_v14 }
  0x27   : > { %409 = vst.msk [vmem:[#allocation2 + $0xc1] sm:$0xff] %vm394_vm2, %v4395_v60  ;;  %410 = vst.msk [vmem:[#allocation2 + $0xc9] sm:$0xff] %vm394_vm2, %v4396_v0 }
  0x28   : > { %395 = vst.msk [vmem:[#allocation2 + $0x19] sm:$0xff] %vm394_vm2, %v4367_v1  ;;  %396 = vst.msk [vmem:[#allocation2 + $0x21] sm:$0xff] %vm394_vm2, %v4368_v2  ;;  %v5141_v35 = vpack.i.bf16 %v4488_v40, %v4487_v39 }
  0x29   : > { %411 = vst.msk [vmem:[#allocation2 + $0xd9] sm:$0xff] %vm394_vm2, %v4399_v6  ;;  %412 = vst.msk [vmem:[#allocation2 + $0xe1] sm:$0xff] %vm394_vm2, %v4400_v7  ;;  %5132 = vrot.lane.b32.xlu0 %v5131_v43, %s5208_s14  ;;  %5137 = vrot.lane.b32.xlu1 %v5136_v44, %s5208_s14 }
  0x2a   : > { %413 = vst.msk [vmem:[#allocation2 + $0xf1] sm:$0xff] %vm394_vm2, %v4403_v8  ;;  %414 = vst.msk [vmem:[#allocation2 + $0xf9] sm:$0xff] %vm394_vm2, %v4404_v9 }
  0x2b   : > { %415 = vst.msk [vmem:[#allocation2 + $0x109] sm:$0xff] %vm394_vm2, %v4407_v10  ;;  %416 = vst.msk [vmem:[#allocation2 + $0x111] sm:$0xff] %vm394_vm2, %v4408_v11 }
  0x2c   : > { %397 = vst.msk [vmem:[#allocation2 + $0x31] sm:$0xff] %vm394_vm2, %v4371_v12  ;;  %398 = vst.msk [vmem:[#allocation2 + $0x39] sm:$0xff] %vm394_vm2, %v4372_v15 }
  0x2d   : > { %399 = vst.msk [vmem:[#allocation2 + $0x49] sm:$0xff] %vm394_vm2, %v4375_v17  ;;  %400 = vst.msk [vmem:[#allocation2 + $0x51] sm:$0xff] %vm394_vm2, %v4376_v18  ;;  %5142 = vrot.lane.b32.xlu0 %v5141_v35, %s5208_s14  ;;  %5147 = vrot.lane.b32.xlu1 %v5146_v49, %s5208_s14 }
  0x2e   : > { %417 = vst.msk [vmem:[#allocation2 + $0x121] sm:$0xff] %vm394_vm2, %v4411_v19  ;;  %418 = vst.msk [vmem:[#allocation2 + $0x129] sm:$0xff] %vm394_vm2, %v4412_v20 }
  0x2f   : > { %419 = vst.msk [vmem:[#allocation2 + $0x139] sm:$0xff] %vm394_vm2, %v4415_v21  ;;  %420 = vst.msk [vmem:[#allocation2 + $0x141] sm:$0xff] %vm394_vm2, %v4416_v22 }
  0x30   : > { %401 = vst.msk [vmem:[#allocation2 + $0x61] sm:$0xff] %vm394_vm2, %v4379_v24  ;;  %402 = vst.msk [vmem:[#allocation2 + $0x69] sm:$0xff] %vm394_vm2, %v4380_v25 }
  0x31   : > { %403 = vst.msk [vmem:[#allocation2 + $0x79] sm:$0xff] %vm394_vm2, %v4383_v26  ;;  %404 = vst.msk [vmem:[#allocation2 + $0x81] sm:$0xff] %vm394_vm2, %v4384_v27  ;;  %5152 = vrot.lane.b32.xlu0 %v5151_v51, %s5208_s14  ;;  %5157 = vrot.lane.b32.xlu1 %v5156_v55, %s5208_s14 }
  0x32   : > { %421 = vst.msk [vmem:[#allocation2 + $0x151] sm:$0xff] %vm394_vm2, %v4419_v29  ;;  %422 = vst.msk [vmem:[#allocation2 + $0x159] sm:$0xff] %vm394_vm2, %v4420_v30  ;;  %v5167_v29 = vld [vmem:[%s6863_s2 + $0x10] sm:$0xff]  }
  0x33   : > { %423 = vst.msk [vmem:[#allocation2 + $0x169] sm:$0xff] %vm394_vm2, %v4423_v31  ;;  %424 = vst.msk [vmem:[#allocation2 + $0x171] sm:$0xff] %vm394_vm2, %v4424_v32  ;;  %v5170_v32 = vld [vmem:[%s6863_s2 + $0x48] sm:$0xff]  }
  0x34   : > { %405 = vst.msk [vmem:[#allocation2 + $0x91] sm:$0xff] %vm394_vm2, %v4387_v34  ;;  %406 = vst.msk [vmem:[#allocation2 + $0x99] sm:$0xff] %vm394_vm2, %v4388_v36 }
  0x35   : > { %407 = vst.msk [vmem:[#allocation2 + $0xa9] sm:$0xff] %vm394_vm2, %v4391_v41  ;;  %408 = vst.msk [vmem:[#allocation2 + $0xb1] sm:$0xff] %vm394_vm2, %v4392_v42 }
  0x87   : > { %v5083_v57 = vpop.permute.xlu0 %5082  ;;  %v5093_v58 = vpop.permute.xlu1 %5092 }
  0x88   : > { %v5085_v59 = vunpack.i.h.bf16 %v5083_v57  ;;  %v5084_v60 = vunpack.i.l.bf16 %v5083_v57  ;;  %v5095_v61 = vunpack.i.h.bf16 %v5093_v58  ;;  %v5094_v62 = vunpack.i.l.bf16 %v5093_v58  ;;  %v5171_v57 = vld [vmem:[%s6863_s2] sm:$0xff]  }
  0x8a   : > { %634 = vst.msk [vmem:[#allocation2 + $0xc1] sm:$0xff] %vm619_vm3, %v5084_v60  ;;  %635 = vst.msk [vmem:[#allocation2 + $0xc9] sm:$0xff] %vm619_vm3, %v5085_v59 }
  0x8b   : > { %620 = vst.msk [vmem:[#allocation2 + $0x19] sm:$0xff] %vm619_vm3, %v5094_v62  ;;  %621 = vst.msk [vmem:[#allocation2 + $0x21] sm:$0xff] %vm619_vm3, %v5095_v61  ;;  %v5088_v63 = vpop.permute.xlu0 %5087  ;;  %v5098_v0 = vpop.permute.xlu1 %5097  ;;  %v5536_v61 = vld [vmem:[%s6863_s2 + $0x98] sm:$0xff]  }
  0x8c   : > { %v5090_v1 = vunpack.i.h.bf16 %v5088_v63  ;;  %v5089_v2 = vunpack.i.l.bf16 %v5088_v63  ;;  %v5100_v3 = vunpack.i.h.bf16 %v5098_v0  ;;  %v5099_v4 = vunpack.i.l.bf16 %v5098_v0 }
  0x8e   : > { %636 = vst.msk [vmem:[#allocation2 + $0xd9] sm:$0xff] %vm619_vm3, %v5089_v2  ;;  %637 = vst.msk [vmem:[#allocation2 + $0xe1] sm:$0xff] %vm619_vm3, %v5090_v1 }
  0x8f   : > { %638 = vst.msk [vmem:[#allocation2 + $0xf1] sm:$0xff] %vm619_vm3, %v5099_v4  ;;  %639 = vst.msk [vmem:[#allocation2 + $0xf9] sm:$0xff] %vm619_vm3, %v5100_v3  ;;  %v5103_v5 = vpop.permute.xlu0 %5102  ;;  %v5108_v6 = vpop.permute.xlu1 %5107 }
  0x90   : > { %v5105_v7 = vunpack.i.h.bf16 %v5103_v5  ;;  %v5104_v8 = vunpack.i.l.bf16 %v5103_v5  ;;  %v5110_v9 = vunpack.i.h.bf16 %v5108_v6  ;;  %v5109_v10 = vunpack.i.l.bf16 %v5108_v6  ;;  %v5553_v5 = vld [vmem:[%s6863_s2 + $0x78] sm:$0xff]  }
  0x91   : > { %v724_v13 = vld [vmem:[#allocation2 + $0xc1] sm:$0xff]  ;;  %v725_v15 = vld [vmem:[#allocation2 + $0xc9] sm:$0xff] }
  0x92   : > { %v710_v11 = vld [vmem:[#allocation2 + $0x19] sm:$0xff]  ;;  %v711_v12 = vld [vmem:[#allocation2 + $0x21] sm:$0xff]  ;;  %640 = vst.msk [vmem:[#allocation2 + $0x109] sm:$0xff] %vm619_vm3, %v5104_v8  ;;  %641 = vst.msk [vmem:[#allocation2 + $0x111] sm:$0xff] %vm619_vm3, %v5105_v7  ;;  %v5480_v18 = vpack.c.bf16 %v725_v15, %v724_v13 }
  0x93   : > { %622 = vst.msk [vmem:[#allocation2 + $0x31] sm:$0xff] %vm619_vm3, %v5109_v10  ;;  %623 = vst.msk [vmem:[#allocation2 + $0x39] sm:$0xff] %vm619_vm3, %v5110_v9  ;;  %v5475_v14 = vpack.c.bf16 %v711_v12, %v710_v11  ;;  %v5113_v17 = vpop.permute.xlu0 %5112  ;;  %v5118_v19 = vpop.permute.xlu1 %5117 }
  0x94   : > { %v5115_v20 = vunpack.i.h.bf16 %v5113_v17  ;;  %v5114_v21 = vunpack.i.l.bf16 %v5113_v17  ;;  %v5120_v22 = vunpack.i.h.bf16 %v5118_v19  ;;  %v5119_v23 = vunpack.i.l.bf16 %v5118_v19  ;;  %4727 = vmatprep.mubr.msk.bf16.mxu1 %vm273_vm0, %v5480_v18 }
  0x95   : > { %4712 = vmatmul.mubr.msk.bf16.vlgmr.msra.gmra.mxu0 %vm273_vm0, %v5475_v14  ;;  %v726_v24 = vld [vmem:[#allocation2 + $0xd9] sm:$0xff]  ;;  %v727_v25 = vld [vmem:[#allocation2 + $0xe1] sm:$0xff] }
  0x96   : > { %4784 = vmatpush3.bf16.msra.mxu0 %v5383_v56  ;;  %v728_v26 = vld [vmem:[#allocation2 + $0xf1] sm:$0xff]  ;;  %624 = vst.msk [vmem:[#allocation2 + $0x49] sm:$0xff] %vm619_vm3, %v5114_v21  ;;  %625 = vst.msk [vmem:[#allocation2 + $0x51] sm:$0xff] %vm619_vm3, %v5115_v20  ;;  %v5491_v27 = vpack.c.bf16 %v727_v25, %v726_v24  ;;  %v729_v28 = vld [vmem:[#allocation2 + $0xf9] sm:$0xff] }
  0x97   : > { %642 = vst.msk [vmem:[#allocation2 + $0x121] sm:$0xff] %vm619_vm3, %v5119_v23  ;;  %643 = vst.msk [vmem:[#allocation2 + $0x129] sm:$0xff] %vm619_vm3, %v5120_v22  ;;  %4785 = vmatprep.subr.bf16.mxu0 %v5168_v16  ;;  %v5123_v30 = vpop.permute.xlu0 %5122  ;;  %v5128_v31 = vpop.permute.xlu1 %5127  ;;  %v5496_v56 = vpack.c.bf16 %v729_v28, %v728_v26  ;;  %v652_v22 = vld [vmem:[#allocation2] sm:$0xff]  ;;  %v653_v24 = vld [vmem:[#allocation2 + $0x8] sm:$0xff] }
  0x98   : > { %v5125_v33 = vunpack.i.h.bf16 %v5123_v30  ;;  %v5124_v34 = vunpack.i.l.bf16 %v5123_v30  ;;  %4728 = vmatmul.mubr.msk.bf16.vlgmr.msra.gmra.mxu1 %vm273_vm0, %v5491_v27  ;;  %v5130_v36 = vunpack.i.h.bf16 %v5128_v31  ;;  %v5129_v37 = vunpack.i.l.bf16 %v5128_v31  ;;  %v1231_v25 = vld [vmem:[#allocation2 + $0x2] sm:$0xff]  ;;  %v1232_v26 = vld [vmem:[#allocation2 + $0xa] sm:$0xff] }
  0x99   : > { %4744 = vmatpush3.bf16.msra.mxu1 %v5372_v45  ;;  %4731 = vmatprep.mubr.msk.bf16.mxu1 %vm273_vm0, %v5496_v56  ;;  %v5169_v45 = vld [vmem:[%s6863_s2 + $0x8] sm:$0xff]   ;;  %v731_v46 = vld [vmem:[#allocation2 + $0x111] sm:$0xff] }
  0x9a   : > { %v712_v39 = vld [vmem:[#allocation2 + $0x31] sm:$0xff]  ;;  %v713_v40 = vld [vmem:[#allocation2 + $0x39] sm:$0xff]  ;;  %644 = vst.msk [vmem:[#allocation2 + $0x139] sm:$0xff] %vm619_vm3, %v5124_v34  ;;  %645 = vst.msk [vmem:[#allocation2 + $0x141] sm:$0xff] %vm619_vm3, %v5125_v33  ;;  %4745 = vmatprep.subr.bf16.mxu1 %v5167_v29  ;;  %4786 = vmatpush3.bf16.msra.mxu0 %v5168_v16  ;;  %v684_v33 = vpack.c.bf16 %v653_v24, %v652_v22  ;;  %v1263_v34 = vpack.c.bf16 %v1232_v26, %v1231_v25 }
  0x9b   : > { %626 = vst.msk [vmem:[#allocation2 + $0x61] sm:$0xff] %vm619_vm3, %v5129_v37  ;;  %627 = vst.msk [vmem:[#allocation2 + $0x69] sm:$0xff] %vm619_vm3, %v5130_v36  ;;  %v5510_v41 = vpack.c.bf16 %v713_v40, %v712_v39  ;;  %v5133_v42 = vpop.permute.xlu0 %5132  ;;  %v5138_v43 = vpop.permute.xlu1 %5137  ;;  %v730_v44 = vld [vmem:[#allocation2 + $0x109] sm:$0xff]  ;;  %4787 = vmatprep.subr.bf16.mxu0 %v5170_v32  ;;  %v5652_v22 = vld [vmem:[%s6863_s2 + $0xd8] sm:$0xff]  }
  0x9c   : > { %v5135_v48 = vunpack.i.h.bf16 %v5133_v42  ;;  %v5134_v35 = vunpack.i.l.bf16 %v5133_v42  ;;  %v5140_v49 = vunpack.i.h.bf16 %v5138_v43  ;;  %v5139_v38 = vunpack.i.l.bf16 %v5138_v43 }
  0x9d   : > { %4715 = vmatprep.mubr.msk.bf16.mxu0 %vm273_vm0, %v5510_v41  ;;  %v714_v50 = vld [vmem:[#allocation2 + $0x49] sm:$0xff]  ;;  %v715_v51 = vld [vmem:[#allocation2 + $0x51] sm:$0xff]  ;;  %4746 = vmatpush3.bf16.msra.mxu1 %v5167_v29  ;;  %v5526_v54 = vpack.c.bf16 %v731_v46, %v730_v44  ;;  %v655_v46 = vld [vmem:[#allocation2 + $0x20] sm:$0xff] }
  0x9e   : > { %v732_v52 = vld [vmem:[#allocation2 + $0x121] sm:$0xff]  ;;  %628 = vst.msk [vmem:[#allocation2 + $0x79] sm:$0xff] %vm619_vm3, %v5134_v35  ;;  %629 = vst.msk [vmem:[#allocation2 + $0x81] sm:$0xff] %vm619_vm3, %v5135_v48  ;;  %v5524_v53 = vpack.c.bf16 %v715_v51, %v714_v50  ;;  %v733_v55 = vld [vmem:[#allocation2 + $0x129] sm:$0xff]  ;;  %4747 = vmatprep.subr.bf16.mxu1 %v5169_v45  ;;  %4788 = vmatpush3.bf16.msra.mxu0 %v5170_v32 }
  0x9f   : > { %646 = vst.msk [vmem:[#allocation2 + $0x151] sm:$0xff] %vm619_vm3, %v5139_v38  ;;  %647 = vst.msk [vmem:[#allocation2 + $0x159] sm:$0xff] %vm619_vm3, %v5140_v49  ;;  %v5143_v58 = vpop.permute.xlu0 %5142  ;;  %v5148_v59 = vpop.permute.xlu1 %5147  ;;  %v5531_v60 = vpack.c.bf16 %v733_v55, %v732_v52  ;;  %4789 = vmatprep.subr.bf16.mxu0 %v5172_v47  ;;  %v654_v44 = vld [vmem:[#allocation2 + $0x18] sm:$0xff]  ;;  %v1234_v48 = vld [vmem:[#allocation2 + $0x22] sm:$0xff] }
  0xa0   : > { %v5145_v62 = vunpack.i.h.bf16 %v5143_v58  ;;  %v5144_v63 = vunpack.i.l.bf16 %v5143_v58  ;;  %4716 = vmatmul.mubr.msk.bf16.gmra.mxu0 %vm273_vm0, %v5524_v53  ;;  %4732 = vmatmul.mubr.msk.bf16.gmra.mxu1 %vm273_vm0, %v5526_v54  ;;  %v5150_v0 = vunpack.i.h.bf16 %v5148_v59  ;;  %v5149_v1 = vunpack.i.l.bf16 %v5148_v59  ;;  %v656_v35 = vld [vmem:[#allocation2 + $0x30] sm:$0xff]  ;;  %v657_v49 = vld [vmem:[#allocation2 + $0x38] sm:$0xff] }
  0xa1   : > { %4735 = vmatprep.mubr.msk.bf16.mxu1 %vm273_vm0, %v5531_v60  ;;  %4748 = vmatpush3.bf16.msra.mxu1 %v5169_v45  ;;  %v734_v7 = vld [vmem:[#allocation2 + $0x139] sm:$0xff]  ;;  %v735_v8 = vld [vmem:[#allocation2 + $0x141] sm:$0xff]  ;;  %v5592_v51 = vpack.c.bf16 %v655_v46, %v654_v44  ;;  %v5596_v55 = vpack.c.bf16 %v657_v49, %v656_v35  ;;  %v5176_v58 = vld [vmem:[%s6863_s2 + $0x90] sm:$0xff]  }
  0xa2   : > { %v716_v2 = vld [vmem:[#allocation2 + $0x61] sm:$0xff]  ;;  %v717_v3 = vld [vmem:[#allocation2 + $0x69] sm:$0xff]  ;;  %648 = vst.msk [vmem:[#allocation2 + $0x169] sm:$0xff] %vm619_vm3, %v5144_v63  ;;  %649 = vst.msk [vmem:[#allocation2 + $0x171] sm:$0xff] %vm619_vm3, %v5145_v62  ;;  %4749 = vmatprep.subr.bf16.mxu1 %v5171_v57  ;;  %4790 = vmatpush3.bf16.msra.mxu0 %v5172_v47  ;;  %v5562_v16 = vpack.c.bf16 %v735_v8, %v734_v7 }
  0xa3   : > { %630 = vst.msk [vmem:[#allocation2 + $0x91] sm:$0xff] %vm619_vm3, %v5149_v1  ;;  %631 = vst.msk [vmem:[#allocation2 + $0x99] sm:$0xff] %vm619_vm3, %v5150_v0  ;;  %v5548_v4 = vpack.c.bf16 %v717_v3, %v716_v2  ;;  %v5153_v6 = vpop.permute.xlu0 %5152  ;;  %4863 = vmatprep.subr.bf16.mxu0 %v5536_v61  ;;  %v5158_v30 = vpop.permute.xlu1 %5157  ;;  %v4507_v45 = vld [vmem:[%s5353_s13 + $0x78] sm:$0xff]   ;;  %v5177_v62 = vld [vmem:[%s6863_s2 + $0x68] sm:$0xff]  }
  0xa4   : > { %v5155_v9 = vunpack.i.h.bf16 %v5153_v6  ;;  %v5154_v10 = vunpack.i.l.bf16 %v5153_v6  ;;  %v5160_v39 = vunpack.i.h.bf16 %v5158_v30  ;;  %v5159_v40 = vunpack.i.l.bf16 %v5158_v30  ;;  %v1233_v47 = vld [vmem:[#allocation2 + $0x1a] sm:$0xff]  ;;  %v1235_v38 = vld [vmem:[#allocation2 + $0x32] sm:$0xff]  ;;  %v658_v63 = vld [vmem:[#allocation2 + $0x48] sm:$0xff] }
  0xa5   : > { %4719 = vmatprep.mubr.msk.bf16.mxu0 %vm273_vm0, %v5548_v4  ;;  %v718_v11 = vld [vmem:[#allocation2 + $0x79] sm:$0xff]  ;;  %v719_v12 = vld [vmem:[#allocation2 + $0x81] sm:$0xff]  ;;  %4750 = vmatpush3.bf16.msra.mxu1 %v5171_v57  ;;  %v4427_v42 = vunpack.c.l.bf16 %v4507_v45  ;;  %v4428_v43 = vunpack.c.h.bf16 %v4507_v45  ;;  %v5594_v52 = vpack.c.bf16 %v1234_v48, %v1233_v47  ;;  %v5175_v57 = vld [vmem:[%s6863_s2 + $0x70] sm:$0xff]  }
  0xa6   : > { %v736_v13 = vld [vmem:[#allocation2 + $0x151] sm:$0xff]  ;;  %632 = vst.msk [vmem:[#allocation2 + $0xa9] sm:$0xff] %vm619_vm3, %v5154_v10  ;;  %633 = vst.msk [vmem:[#allocation2 + $0xb1] sm:$0xff] %vm619_vm3, %v5155_v9  ;;  %v5560_v15 = vpack.c.bf16 %v719_v12, %v718_v11  ;;  %v737_v17 = vld [vmem:[#allocation2 + $0x159] sm:$0xff]  ;;  %4823 = vmatprep.subr.bf16.mxu1 %v5553_v5 }
  0xa7   : > { %v5565_v19 = vpack.c.bf16 %v737_v17, %v736_v13  ;;  %425 = vst.msk [vmem:[#allocation2 + $0x181] sm:$0xff] %vm394_vm2, %v4427_v42  ;;  %426 = vst.msk [vmem:[#allocation2 + $0x189] sm:$0xff] %vm394_vm2, %v4428_v43  ;;  %v1236_v50 = vld [vmem:[#allocation2 + $0x3a] sm:$0xff]  ;;  %v659_v0 = vld [vmem:[#allocation2 + $0x50] sm:$0xff] }
  0xa8   : > { %4720 = vmatmul.mubr.msk.bf16.gmra.mxu0 %vm273_vm0, %v5560_v15  ;;  %4736 = vmatmul.mubr.msk.bf16.gmra.mxu1 %vm273_vm0, %v5562_v16  ;;  %650 = vst.msk [vmem:[#allocation2 + $0x181] sm:$0xff] %vm619_vm3, %v5159_v40  ;;  %651 = vst.msk [vmem:[#allocation2 + $0x189] sm:$0xff] %vm619_vm3, %v5160_v39  ;;  %v5608_v59 = vpack.c.bf16 %v1236_v50, %v1235_v38  ;;  %v5178_v1 = vld [vmem:[%s6863_s2 + $0x88] sm:$0xff]   ;;  %v1238_v3 = vld [vmem:[#allocation2 + $0x52] sm:$0xff]  ;;  %v5622_v9 = vpack.c.bf16 %v659_v0, %v658_v63 }
  0xa9   : > { %4739 = vmatprep.mubr.msk.bf16.mxu1 %vm273_vm0, %v5565_v19  ;;  %v738_v28 = vld [vmem:[#allocation2 + $0x169] sm:$0xff]  ;;  %v739_v29 = vld [vmem:[#allocation2 + $0x171] sm:$0xff]  ;;  %v5179_v12 = vld [vmem:[%s6863_s2 + $0x60] sm:$0xff]  }
  0xaa   : > { %v720_v20 = vld [vmem:[#allocation2 + $0x91] sm:$0xff]  ;;  %v721_v21 = vld [vmem:[#allocation2 + $0x99] sm:$0xff]  ;;  %v5579_v37 = vpack.c.bf16 %v739_v29, %v738_v28  ;;  %v661_v6 = vld [vmem:[#allocation2 + $0x68] sm:$0xff] }
  0xab   : > { %v5573_v23 = vpack.c.bf16 %v721_v21, %v720_v20  ;;  %v1237_v2 = vld [vmem:[#allocation2 + $0x4a] sm:$0xff]  ;;  %v1239_v7 = vld [vmem:[#allocation2 + $0x62] sm:$0xff]  ;;  %v5647_v17 = vld [vmem:[%s6863_s2 + $0xb8] sm:$0xff]  }
  0xac   : > { %v1240_v8 = vld [vmem:[#allocation2 + $0x6a] sm:$0xff]  ;;  %v5624_v10 = vpack.c.bf16 %v1238_v3, %v1237_v2  ;;  %v5180_v13 = vld [vmem:[%s6863_s2 + $0x80] sm:$0xff]   ;;  %v662_v20 = vld [vmem:[#allocation2 + $0x78] sm:$0xff] }
  0xad   : > { %4723 = vmatprep.mubr.msk.bf16.mxu0 %vm273_vm0, %v5573_v23  ;;  %v722_v31 = vld [vmem:[#allocation2 + $0xa9] sm:$0xff]  ;;  %v723_v32 = vld [vmem:[#allocation2 + $0xb1] sm:$0xff]  ;;  %v5628_v11 = vpack.c.bf16 %v1240_v8, %v1239_v7  ;;  %v663_v21 = vld [vmem:[#allocation2 + $0x80] sm:$0xff] }
  0xae   : > { %v5577_v36 = vpack.c.bf16 %v723_v32, %v722_v31  ;;  %v1241_v24 = vld [vmem:[#allocation2 + $0x7a] sm:$0xff]  ;;  %v1242_v25 = vld [vmem:[#allocation2 + $0x82] sm:$0xff]  ;;  %v664_v26 = vld [vmem:[#allocation2 + $0x90] sm:$0xff]  ;;  %v5654_v31 = vpack.c.bf16 %v663_v21, %v662_v20 }
  0xaf   : > { %v665_v28 = vld [vmem:[#allocation2 + $0x98] sm:$0xff]  ;;  %v5656_v32 = vpack.c.bf16 %v1242_v25, %v1241_v24  ;;  %v666_v39 = vld [vmem:[#allocation2 + $0xa8] sm:$0xff]  ;;  %v668_v40 = vld [vmem:[#allocation2 + $0xc0] sm:$0xff] }
  0xb0   : > { %4724 = vmatmul.mubr.msk.bf16.gmra.mxu0 %vm273_vm0, %v5577_v36  ;;  %4740 = vmatmul.mubr.msk.bf16.gmra.mxu1 %vm273_vm0, %v5579_v37  ;;  %v1243_v29 = vld [vmem:[#allocation2 + $0x92] sm:$0xff]  ;;  %v1244_v30 = vld [vmem:[#allocation2 + $0x9a] sm:$0xff]  ;;  %v1245_v42 = vld [vmem:[#allocation2 + $0xaa] sm:$0xff] }
  0xb1   : > { %4751 = vmatprep.mubr.msk.bf16.mxu1 %vm273_vm0, %v684_v33  ;;  %4791 = vmatprep.mubr.msk.bf16.mxu0 %vm273_vm0, %v1263_v34  ;;  %v5658_v33 = vpack.c.bf16 %v665_v28, %v664_v26  ;;  %v5660_v34 = vpack.c.bf16 %v1244_v30, %v1243_v29  ;;  %v667_v45 = vld [vmem:[#allocation2 + $0xb0] sm:$0xff]  ;;  %v669_v44 = vld [vmem:[#allocation2 + $0xc8] sm:$0xff]  ;;  %v670_v50 = vld [vmem:[#allocation2 + $0xd8] sm:$0xff] }
  0xb2   : > { %v1246_v43 = vld [vmem:[#allocation2 + $0xb2] sm:$0xff]  ;;  %v1247_v46 = vld [vmem:[#allocation2 + $0xc2] sm:$0xff]  ;;  %v1248_v47 = vld [vmem:[#allocation2 + $0xca] sm:$0xff]  ;;  %v5672_v48 = vpack.c.bf16 %v667_v45, %v666_v39  ;;  %v5676_v49 = vpack.c.bf16 %v669_v44, %v668_v40 }
  0xb3   : > { %v5674_v35 = vpack.c.bf16 %v1246_v43, %v1245_v42  ;;  %v5678_v38 = vpack.c.bf16 %v1248_v47, %v1247_v46  ;;  %v672_v63 = vld [vmem:[#allocation2 + $0xf0] sm:$0xff]  ;;  %v673_v0 = vld [vmem:[#allocation2 + $0xf8] sm:$0xff]  ;;  %v674_v8 = vld [vmem:[#allocation2 + $0x108] sm:$0xff] }
  0xb4   : > { %v1252_v2 = vld [vmem:[#allocation2 + $0xfa] sm:$0xff]  ;;  %v1254_v20 = vld [vmem:[#allocation2 + $0x112] sm:$0xff]  ;;  %v677_v24 = vld [vmem:[#allocation2 + $0x128] sm:$0xff] }
  0xb5   : > { %v676_v21 = vld [vmem:[#allocation2 + $0x120] sm:$0xff]  ;;  %v1256_v26 = vld [vmem:[#allocation2 + $0x12a] sm:$0xff]  ;;  %v678_v40 = vld [vmem:[#allocation2 + $0x138] sm:$0xff] }
  0xb6   : > { %v1255_v25 = vld [vmem:[#allocation2 + $0x122] sm:$0xff]  ;;  %v5708_v30 = vpack.c.bf16 %v677_v24, %v676_v21  ;;  %v1257_v42 = vld [vmem:[#allocation2 + $0x13a] sm:$0xff]  ;;  %v680_v44 = vld [vmem:[#allocation2 + $0x150] sm:$0xff] }
  0xb7   : > { %v5710_v39 = vpack.c.bf16 %v1256_v26, %v1255_v25  ;;  %v679_v45 = vld [vmem:[#allocation2 + $0x140] sm:$0xff]  ;;  %v681_v46 = vld [vmem:[#allocation2 + $0x158] sm:$0xff]  ;;  %v5184_v21 = vld [vmem:[%s6863_s2 + $0xd0] sm:$0xff]  }
  0xb8   : > { %4752 = vmatmul.mubr.msk.bf16.vlgmr.msra.gmra.mxu1 %vm273_vm0, %v5592_v51  ;;  %4792 = vmatmul.mubr.msk.bf16.vlgmr.msra.gmra.mxu0 %vm273_vm0, %v5594_v52  ;;  %v1258_v43 = vld [vmem:[#allocation2 + $0x142] sm:$0xff]  ;;  %v1259_v47 = vld [vmem:[#allocation2 + $0x152] sm:$0xff] }
  0xb9   : > { %4824 = vmatpush3.bf16.msra.mxu1 %v5553_v5  ;;  %4755 = vmatprep.mubr.msk.bf16.mxu1 %vm273_vm0, %v5596_v55  ;;  %v660_v5 = vld [vmem:[#allocation2 + $0x60] sm:$0xff] }
  0xba   : > { %4795 = vmatprep.mubr.msk.bf16.mxu0 %vm273_vm0, %v5608_v59  ;;  %4864 = vmatpush3.bf16.msra.mxu0 %v5536_v61  ;;  %v5626_v61 = vpack.c.bf16 %v661_v6, %v660_v5  ;;  %v5692_v6 = vpack.c.bf16 %v673_v0, %v672_v63  ;;  %v682_v0 = vld [vmem:[#allocation2 + $0x168] sm:$0xff]  ;;  %v2551_v24 = vld [vmem:[#allocation2 + $0x1a0] sm:$0xff] }
  0xbb   : > { %4825 = vmatprep.subr.bf16.mxu1 %v5175_v57  ;;  %4865 = vmatprep.subr.bf16.mxu0 %v5176_v58 }
  0xbd   : > { %4826 = vmatpush3.bf16.msra.mxu1 %v5175_v57  ;;  %v671_v57 = vld [vmem:[#allocation2 + $0xe0] sm:$0xff] }
  0xbe   : > { %4866 = vmatpush3.bf16.msra.mxu0 %v5176_v58  ;;  %4827 = vmatprep.subr.bf16.mxu1 %v5177_v62  ;;  %v1249_v58 = vld [vmem:[#allocation2 + $0xda] sm:$0xff]  ;;  %v5688_v3 = vpack.c.bf16 %v671_v57, %v670_v50  ;;  %v5720_v57 = vpack.c.bf16 %v679_v45, %v678_v40 }
  0xbf   : > { %4867 = vmatprep.subr.bf16.mxu0 %v5178_v1  ;;  %v1260_v50 = vld [vmem:[#allocation2 + $0x15a] sm:$0xff] }
  0xc0   : > { %4756 = vmatmul.mubr.msk.bf16.gmra.mxu1 %vm273_vm0, %v5622_v9  ;;  %4796 = vmatmul.mubr.msk.bf16.gmra.mxu0 %vm273_vm0, %v5624_v10  ;;  %v5726_v63 = vpack.c.bf16 %v1260_v50, %v1259_v47 }
  0xc1   : > { %4759 = vmatprep.mubr.msk.bf16.mxu1 %vm273_vm0, %v5626_v61  ;;  %4799 = vmatprep.mubr.msk.bf16.mxu0 %vm273_vm0, %v5628_v11 }
  0xc2   : > { %4828 = vmatpush3.bf16.msra.mxu1 %v5177_v62  ;;  %4868 = vmatpush3.bf16.msra.mxu0 %v5178_v1  ;;  %v1250_v62 = vld [vmem:[#allocation2 + $0xe2] sm:$0xff]  ;;  %v1251_v1 = vld [vmem:[#allocation2 + $0xf2] sm:$0xff] }
  0xc3   : > { %4829 = vmatprep.subr.bf16.mxu1 %v5179_v12  ;;  %4869 = vmatprep.subr.bf16.mxu0 %v5180_v13  ;;  %v5690_v5 = vpack.c.bf16 %v1250_v62, %v1249_v58  ;;  %v5694_v7 = vpack.c.bf16 %v1252_v2, %v1251_v1  ;;  %v5722_v58 = vpack.c.bf16 %v1258_v43, %v1257_v42  ;;  %v683_v1 = vld [vmem:[#allocation2 + $0x170] sm:$0xff]  ;;  %v2843_v42 = vld [vmem:[#allocation2 + $0x39] sm:$0xff] }
  0xc4   : > { %v5724_v62 = vpack.c.bf16 %v681_v46, %v680_v44  ;;  %v1261_v2 = vld [vmem:[#allocation2 + $0x16a] sm:$0xff]  ;;  %v3164_v43 = vld [vmem:[#allocation2 + $0x32] sm:$0xff]  ;;  %v3165_v44 = vld [vmem:[#allocation2 + $0x3a] sm:$0xff] }
  0xc6   : > { %4830 = vmatpush3.bf16.msra.mxu1 %v5179_v12  ;;  %4870 = vmatpush3.bf16.msra.mxu0 %v5180_v13  ;;  %v675_v12 = vld [vmem:[#allocation2 + $0x110] sm:$0xff] }
  0xc7   : > { %4903 = vmatprep.subr.bf16.mxu1 %v5647_v17  ;;  %4943 = vmatprep.subr.bf16.mxu0 %v5652_v22  ;;  %v1253_v13 = vld [vmem:[#allocation2 + $0x10a] sm:$0xff]  ;;  %v5704_v28 = vpack.c.bf16 %v675_v12, %v674_v8  ;;  %v1262_v8 = vld [vmem:[#allocation2 + $0x172] sm:$0xff]  ;;  %v5736_v12 = vpack.c.bf16 %v683_v1, %v682_v0 }
  0xc8   : > { %4760 = vmatmul.mubr.msk.bf16.gmra.mxu1 %vm273_vm0, %v5654_v31  ;;  %4800 = vmatmul.mubr.msk.bf16.gmra.mxu0 %vm273_vm0, %v5656_v32  ;;  %v5706_v29 = vpack.c.bf16 %v1254_v20, %v1253_v13  ;;  %v5738_v13 = vpack.c.bf16 %v1262_v8, %v1261_v2  ;;  %v5183_v20 = vld [vmem:[%s6863_s2 + $0xb0] sm:$0xff]  }
  0xc9   : > { %4763 = vmatprep.mubr.msk.bf16.mxu1 %vm273_vm0, %v5658_v33  ;;  %4803 = vmatprep.mubr.msk.bf16.mxu0 %vm273_vm0, %v5660_v34  ;;  %v2844_v2 = vld [vmem:[#allocation2 + $0x49] sm:$0xff]  ;;  %v2845_v8 = vld [vmem:[#allocation2 + $0x51] sm:$0xff] }
  0xd0   : > { %4764 = vmatmul.mubr.msk.bf16.gmra.mxu1 %vm273_vm0, %v5672_v48  ;;  %4804 = vmatmul.mubr.msk.bf16.gmra.mxu0 %vm273_vm0, %v5674_v35 }
  0xd1   : > { %4767 = vmatprep.mubr.msk.bf16.mxu1 %vm273_vm0, %v5676_v49  ;;  %4807 = vmatprep.mubr.msk.bf16.mxu0 %vm273_vm0, %v5678_v38 }
  0xd8   : > { %4768 = vmatmul.mubr.msk.bf16.gmra.mxu1 %vm273_vm0, %v5688_v3  ;;  %4808 = vmatmul.mubr.msk.bf16.gmra.mxu0 %vm273_vm0, %v5690_v5 }
  0xd9   : > { %4771 = vmatprep.mubr.msk.bf16.mxu1 %vm273_vm0, %v5692_v6  ;;  %4811 = vmatprep.mubr.msk.bf16.mxu0 %vm273_vm0, %v5694_v7 }
  0xe0   : > { %4772 = vmatmul.mubr.msk.bf16.gmra.mxu1 %vm273_vm0, %v5704_v28  ;;  %4812 = vmatmul.mubr.msk.bf16.gmra.mxu0 %vm273_vm0, %v5706_v29 }
  0xe1   : > { %4775 = vmatprep.mubr.msk.bf16.mxu1 %vm273_vm0, %v5708_v30  ;;  %4815 = vmatprep.mubr.msk.bf16.mxu0 %vm273_vm0, %v5710_v39 }
  0xe8   : > { %4776 = vmatmul.mubr.msk.bf16.gmra.mxu1 %vm273_vm0, %v5720_v57  ;;  %4816 = vmatmul.mubr.msk.bf16.gmra.mxu0 %vm273_vm0, %v5722_v58 }
  0xe9   : > { %4779 = vmatprep.mubr.msk.bf16.mxu1 %vm273_vm0, %v5724_v62  ;;  %4819 = vmatprep.mubr.msk.bf16.mxu0 %vm273_vm0, %v5726_v63 }
  0xf0   : > { %4780 = vmatmul.mubr.msk.bf16.gmra.mxu1 %vm273_vm0, %v5736_v12  ;;  %4820 = vmatmul.mubr.msk.bf16.gmra.mxu0 %vm273_vm0, %v5738_v13 }
  0xf1   : > { %4831 = vmatprep.mubr.msk.bf16.mxu1 %vm273_vm0, %v5592_v51  ;;  %4871 = vmatprep.mubr.msk.bf16.mxu0 %vm273_vm0, %v5475_v14  ;;  %v5185_v14 = vld [vmem:[%s6863_s2 + $0xa8] sm:$0xff]   ;;  %v5188_v51 = vld [vmem:[%s6863_s2 + $0xc0] sm:$0xff]  }
  0xf8   : > { %4832 = vmatmul.mubr.msk.bf16.vlgmr.msra.gmra.mxu1 %vm273_vm0, %v5596_v55  ;;  %4872 = vmatmul.mubr.msk.bf16.vlgmr.msra.gmra.mxu0 %vm273_vm0, %v5510_v41  ;;  %v5186_v41 = vld [vmem:[%s6863_s2 + $0xc8] sm:$0xff]  }
  0xf9   : > { %4904 = vmatpush3.bf16.msra.mxu1 %v5647_v17  ;;  %4835 = vmatprep.mubr.msk.bf16.mxu1 %vm273_vm0, %v5622_v9  ;;  %v5189_v17 = vld [vmem:[%s6863_s2 + $0xf8] sm:$0xff]  }
  0xfa   : > { %4875 = vmatprep.mubr.msk.bf16.mxu0 %vm273_vm0, %v5524_v53  ;;  %4944 = vmatpush3.bf16.msra.mxu0 %v5652_v22  ;;  %v5187_v53 = vld [vmem:[%s6863_s2 + $0xa0] sm:$0xff]   ;;  %v5190_v22 = vld [vmem:[%s6863_s2 + $0x118] sm:$0xff]  }
  0xfb   : > { %4905 = vmatprep.subr.bf16.mxu1 %v5183_v20  ;;  %4945 = vmatprep.subr.bf16.mxu0 %v5184_v21 }
  0xfd   : > { %4906 = vmatpush3.bf16.msra.mxu1 %v5183_v20  ;;  %v2846_v20 = vld [vmem:[#allocation2 + $0x61] sm:$0xff] }
  0xfe   : > { %4946 = vmatpush3.bf16.msra.mxu0 %v5184_v21  ;;  %4907 = vmatprep.subr.bf16.mxu1 %v5185_v14 }
  0xff   : > { %4947 = vmatprep.subr.bf16.mxu0 %v5186_v41 }
 0x100   : > { %4836 = vmatmul.mubr.msk.bf16.gmra.mxu1 %vm273_vm0, %v5626_v61  ;;  %4876 = vmatmul.mubr.msk.bf16.gmra.mxu0 %vm273_vm0, %v5548_v4 }
 0x101   : > { %4839 = vmatprep.mubr.msk.bf16.mxu1 %vm273_vm0, %v5654_v31  ;;  %4879 = vmatprep.mubr.msk.bf16.mxu0 %vm273_vm0, %v5560_v15  ;;  %v5191_v15 = vld [vmem:[%s6863_s2 + $0xf0] sm:$0xff]  }
 0x102   : > { %4908 = vmatpush3.bf16.msra.mxu1 %v5185_v14  ;;  %4948 = vmatpush3.bf16.msra.mxu0 %v5186_v41  ;;  %v2847_v41 = vld [vmem:[#allocation2 + $0x69] sm:$0xff] }
 0x103   : > { %4909 = vmatprep.subr.bf16.mxu1 %v5187_v53  ;;  %4949 = vmatprep.subr.bf16.mxu0 %v5188_v51 }
 0x106   : > { %4910 = vmatpush3.bf16.msra.mxu1 %v5187_v53  ;;  %4950 = vmatpush3.bf16.msra.mxu0 %v5188_v51  ;;  %v3168_v53 = vld [vmem:[#allocation2 + $0x62] sm:$0xff]  ;;  %v3169_v51 = vld [vmem:[#allocation2 + $0x6a] sm:$0xff] }
 0x107   : > { %4983 = vmatprep.subr.bf16.mxu1 %v5189_v17  ;;  %5023 = vmatprep.subr.bf16.mxu0 %v5190_v22 }
 0x108   : > { %4840 = vmatmul.mubr.msk.bf16.gmra.mxu1 %vm273_vm0, %v5658_v33  ;;  %4880 = vmatmul.mubr.msk.bf16.gmra.mxu0 %vm273_vm0, %v5573_v23  ;;  %v5194_v23 = vld [vmem:[%s6863_s2 + $0x108] sm:$0xff]  }
 0x109   : > { %4843 = vmatprep.mubr.msk.bf16.mxu1 %vm273_vm0, %v5672_v48  ;;  %4883 = vmatprep.mubr.msk.bf16.mxu0 %vm273_vm0, %v5577_v36  ;;  %v5195_v36 = vld [vmem:[%s6863_s2 + $0xe0] sm:$0xff]  }
 0x110   : > { %4844 = vmatmul.mubr.msk.bf16.gmra.mxu1 %vm273_vm0, %v5676_v49  ;;  %4884 = vmatmul.mubr.msk.bf16.gmra.mxu0 %vm273_vm0, %v5480_v18  ;;  %v1583_v18 = vld [vmem:[#allocation2 + $0x180] sm:$0xff] }
 0x111   : > { %4847 = vmatprep.mubr.msk.bf16.mxu1 %vm273_vm0, %v5688_v3  ;;  %4887 = vmatprep.mubr.msk.bf16.mxu0 %vm273_vm0, %v5491_v27  ;;  %v1584_v27 = vld [vmem:[#allocation2 + $0x188] sm:$0xff] }
 0x118   : > { %4848 = vmatmul.mubr.msk.bf16.gmra.mxu1 %vm273_vm0, %v5692_v6  ;;  %4888 = vmatmul.mubr.msk.bf16.gmra.mxu0 %vm273_vm0, %v5496_v56  ;;  %v1905_v56 = vld [vmem:[#allocation2 + $0x181] sm:$0xff] }
 0x119   : > { %4851 = vmatprep.mubr.msk.bf16.mxu1 %vm273_vm0, %v5704_v28  ;;  %4891 = vmatprep.mubr.msk.bf16.mxu0 %vm273_vm0, %v5526_v54  ;;  %v1906_v54 = vld [vmem:[#allocation2 + $0x189] sm:$0xff] }
 0x11a   : > { %v5832_v4 = vpack.c.bf16 %v1906_v54, %v1905_v56  ;;  %v2876_v56 = vpack.c.bf16 %v2847_v41, %v2846_v20  ;;  %v3198_v54 = vpack.c.bf16 %v3169_v51, %v3168_v53 }
 0x120   : > { %4852 = vmatmul.mubr.msk.bf16.gmra.mxu1 %vm273_vm0, %v5708_v30  ;;  %4892 = vmatmul.mubr.msk.bf16.gmra.mxu0 %vm273_vm0, %v5531_v60  ;;  %v5830_v60 = vpack.c.bf16 %v1584_v27, %v1583_v18  ;;  %v2875_v18 = vpack.c.bf16 %v2845_v8, %v2844_v2 }
 0x121   : > { %4855 = vmatprep.mubr.msk.bf16.mxu1 %vm273_vm0, %v5720_v57  ;;  %4895 = vmatprep.mubr.msk.bf16.mxu0 %vm273_vm0, %v5562_v16  ;;  %v5192_v16 = vld [vmem:[%s6863_s2 + $0x110] sm:$0xff]  }
 0x128   : > { %4856 = vmatmul.mubr.msk.bf16.gmra.mxu1 %vm273_vm0, %v5724_v62  ;;  %4896 = vmatmul.mubr.msk.bf16.gmra.mxu0 %vm273_vm0, %v5565_v19  ;;  %v5193_v19 = vld [vmem:[%s6863_s2 + $0xe8] sm:$0xff]  }
 0x129   : > { %4859 = vmatprep.mubr.msk.bf16.mxu1 %vm273_vm0, %v5736_v12  ;;  %4899 = vmatprep.mubr.msk.bf16.mxu0 %vm273_vm0, %v5579_v37  ;;  %v5196_v37 = vld [vmem:[%s6863_s2 + $0x100] sm:$0xff]  }
 0x130   : > { %4860 = vmatmul.mubr.msk.bf16.gmra.mxu1 %vm273_vm0, %v5830_v60  ;;  %4900 = vmatmul.mubr.msk.bf16.gmra.mxu0 %vm273_vm0, %v5832_v4 }
 0x131   : > { %4911 = vmatprep.mubr.msk.bf16.mxu1 %vm273_vm0, %v5594_v52  ;;  %4951 = vmatprep.mubr.msk.bf16.mxu0 %vm273_vm0, %v5596_v55 }
 0x138   : > { %4912 = vmatmul.mubr.msk.bf16.vlgmr.msra.gmra.mxu1 %vm273_vm0, %v5608_v59  ;;  %4952 = vmatmul.mubr.msk.bf16.vlgmr.msra.gmra.mxu0 %vm273_vm0, %v5622_v9 }
 0x139   : > { %4984 = vmatpush3.bf16.msra.mxu1 %v5189_v17  ;;  %4915 = vmatprep.mubr.msk.bf16.mxu1 %vm273_vm0, %v5624_v10 }
 0x13a   : > { %4955 = vmatprep.mubr.msk.bf16.mxu0 %vm273_vm0, %v5626_v61  ;;  %5024 = vmatpush3.bf16.msra.mxu0 %v5190_v22 }
 0x13b   : > { %4985 = vmatprep.subr.bf16.mxu1 %v5191_v15  ;;  %5025 = vmatprep.subr.bf16.mxu0 %v5192_v16 }
 0x13d   : > { %4986 = vmatpush3.bf16.msra.mxu1 %v5191_v15 }
 0x13e   : > { %5026 = vmatpush3.bf16.msra.mxu0 %v5192_v16  ;;  %4987 = vmatprep.subr.bf16.mxu1 %v5193_v19 }
 0x13f   : > { %5027 = vmatprep.subr.bf16.mxu0 %v5194_v23 }
 0x140   : > { %4916 = vmatmul.mubr.msk.bf16.gmra.mxu1 %vm273_vm0, %v5628_v11  ;;  %4956 = vmatmul.mubr.msk.bf16.gmra.mxu0 %vm273_vm0, %v5654_v31 }
 0x141   : > { %4919 = vmatprep.mubr.msk.bf16.mxu1 %vm273_vm0, %v5656_v32  ;;  %4959 = vmatprep.mubr.msk.bf16.mxu0 %vm273_vm0, %v5658_v33 }
 0x142   : > { %4988 = vmatpush3.bf16.msra.mxu1 %v5193_v19  ;;  %5028 = vmatpush3.bf16.msra.mxu0 %v5194_v23 }
 0x143   : > { %4989 = vmatprep.subr.bf16.mxu1 %v5195_v36  ;;  %5029 = vmatprep.subr.bf16.mxu0 %v5196_v37 }
 0x146   : > { %4990 = vmatpush3.bf16.msra.mxu1 %v5195_v36  ;;  %5030 = vmatpush3.bf16.msra.mxu0 %v5196_v37  ;;  %v2848_v36 = vld [vmem:[#allocation2 + $0x79] sm:$0xff]  ;;  %v2849_v37 = vld [vmem:[#allocation2 + $0x81] sm:$0xff] }
 0x148   : > { %4920 = vmatmul.mubr.msk.bf16.gmra.mxu1 %vm273_vm0, %v5660_v34  ;;  %4960 = vmatmul.mubr.msk.bf16.gmra.mxu0 %vm273_vm0, %v5672_v48 }
 0x149   : > { %4923 = vmatprep.mubr.msk.bf16.mxu1 %vm273_vm0, %v5674_v35  ;;  %4963 = vmatprep.mubr.msk.bf16.mxu0 %vm273_vm0, %v5676_v49 }
 0x150   : > { %4924 = vmatmul.mubr.msk.bf16.gmra.mxu1 %vm273_vm0, %v5678_v38  ;;  %4964 = vmatmul.mubr.msk.bf16.gmra.mxu0 %vm273_vm0, %v5688_v3 }
 0x151   : > { %4927 = vmatprep.mubr.msk.bf16.mxu1 %vm273_vm0, %v5690_v5  ;;  %4967 = vmatprep.mubr.msk.bf16.mxu0 %vm273_vm0, %v5692_v6 }
 0x155   : > { %v5892_v52 = vpop.f32.mrf.mxu0 }
 0x157   : > { %v5894_v55 = vpop.f32.mrf.mxu0 }
 0x158   : > { %v5896_v59 = vpop.f32.mrf.mxu1  ;;  %4928 = vmatmul.mubr.msk.bf16.gmra.mxu1 %vm273_vm0, %v5694_v7  ;;  %4968 = vmatmul.mubr.msk.bf16.gmra.mxu0 %vm273_vm0, %v5704_v28  ;;  %v2550_v7 = vld [vmem:[#allocation2 + $0x198] sm:$0xff]  ;;  %v2227_v28 = vld [vmem:[#allocation2 + $0x182] sm:$0xff] }
 0x159   : > { %4931 = vmatprep.mubr.msk.bf16.mxu1 %vm273_vm0, %v5706_v29  ;;  %4971 = vmatprep.mubr.msk.bf16.mxu0 %vm273_vm0, %v5708_v30  ;;  %v5906_v9 = vpop.f32.mrf.mxu0  ;;  %v2228_v29 = vld [vmem:[#allocation2 + $0x18a] sm:$0xff]  ;;  %v2567_v45 = vpack.c.bf16 %v2551_v24, %v2550_v7 }
 0x15a   : > { %v5908_v10 = vpop.f32.mrf.mxu1  ;;  %v2842_v30 = vld [vmem:[#allocation2 + $0x31] sm:$0xff]  ;;  %v5964_v50 = vpack.c.bf16 %v2228_v29, %v2227_v28  ;;  %v3170_v28 = vld [vmem:[#allocation2 + $0x7a] sm:$0xff]  ;;  %v3171_v29 = vld [vmem:[#allocation2 + $0x82] sm:$0xff] }
 0x15b   : > { %v5912_v11 = vpop.f32.mrf.mxu0 }
 0x15c   : > { %v5910_v61 = vpop.f32.mrf.mxu1 }
 0x15e   : > { %v5914_v31 = vpop.f32.mrf.mxu1 }
 0x160   : > { %v5916_v32 = vpop.f32.mrf.mxu0  ;;  %v5918_v33 = vpop.f32.mrf.mxu1  ;;  %4932 = vmatmul.mubr.msk.bf16.gmra.mxu1 %vm273_vm0, %v5710_v39  ;;  %4972 = vmatmul.mubr.msk.bf16.gmra.mxu0 %vm273_vm0, %v5720_v57  ;;  %v2874_v57 = vpack.c.bf16 %v2843_v42, %v2842_v30  ;;  %v2850_v30 = vld [vmem:[#allocation2 + $0x91] sm:$0xff] }
 0x161   : > { %4935 = vmatprep.mubr.msk.bf16.mxu1 %vm273_vm0, %v5722_v58  ;;  %4975 = vmatprep.mubr.msk.bf16.mxu0 %vm273_vm0, %v5724_v62  ;;  %v3196_v58 = vpack.c.bf16 %v3165_v44, %v3164_v43  ;;  %v2851_v43 = vld [vmem:[#allocation2 + $0x99] sm:$0xff] }
 0x162   : > { %v5928_v34 = vpop.f32.mrf.mxu0  ;;  %v5930_v48 = vpop.f32.mrf.mxu1  ;;  %v3172_v44 = vld [vmem:[#allocation2 + $0x92] sm:$0xff]  ;;  %v2878_v41 = vpack.c.bf16 %v2851_v43, %v2850_v30 }
 0x164   : > { %v5932_v35 = vpop.f32.mrf.mxu0  ;;  %v5934_v49 = vpop.f32.mrf.mxu1 }
 0x166   : > { %v5936_v38 = vpop.f32.mrf.mxu0  ;;  %v5938_v3 = vpop.f32.mrf.mxu1 }
 0x168   : > { %v5940_v5 = vpop.f32.mrf.mxu0  ;;  %v5942_v6 = vpop.f32.mrf.mxu1  ;;  %4936 = vmatmul.mubr.msk.bf16.gmra.mxu1 %vm273_vm0, %v5726_v63  ;;  %4976 = vmatmul.mubr.msk.bf16.gmra.mxu0 %vm273_vm0, %v5736_v12  ;;  %v3166_v12 = vld [vmem:[#allocation2 + $0x4a] sm:$0xff] }
 0x169   : > { %4939 = vmatprep.mubr.msk.bf16.mxu1 %vm273_vm0, %v5738_v13  ;;  %4979 = vmatprep.mubr.msk.bf16.mxu0 %vm273_vm0, %v5830_v60  ;;  %v3167_v13 = vld [vmem:[#allocation2 + $0x52] sm:$0xff] }
 0x16a   : > { %v5952_v25 = vpop.f32.mrf.mxu0  ;;  %v5954_v26 = vpop.f32.mrf.mxu1  ;;  %v3197_v27 = vpack.c.bf16 %v3167_v13, %v3166_v12  ;;  %v2877_v12 = vpack.c.bf16 %v2849_v37, %v2848_v36  ;;  %v3199_v13 = vpack.c.bf16 %v3171_v29, %v3170_v28  ;;  %v2854_v36 = vld [vmem:[#allocation2 + $0xc1] sm:$0xff]  ;;  %v2855_v28 = vld [vmem:[#allocation2 + $0xc9] sm:$0xff] }
 0x16b   : > { %v3176_v29 = vld [vmem:[#allocation2 + $0xc2] sm:$0xff] }
 0x16c   : > { %v5956_v39 = vpop.f32.mrf.mxu0  ;;  %v5958_v40 = vpop.f32.mrf.mxu1 }
 0x16e   : > { %v5960_v46 = vpop.f32.mrf.mxu0  ;;  %v5962_v47 = vpop.f32.mrf.mxu1 }
 0x170   : > { %v5966_v62 = vpop.f32.mrf.mxu0  ;;  %v5968_v63 = vpop.f32.mrf.mxu1  ;;  %4940 = vmatmul.mubr.msk.bf16.gmra.mxu1 %vm273_vm0, %v5964_v50  ;;  %4980 = vmatmul.mubr.msk.bf16.gmra.mxu0 %vm273_vm0, %v2567_v45 }
 0x171   : > { %4991 = vmatprep.mubr.msk.bf16.mxu1 %vm273_vm0, %v2874_v57  ;;  %5031 = vmatprep.mubr.msk.bf16.mxu0 %vm273_vm0, %v3196_v58 }
 0x172   : > { %v5975_v0 = vpop.f32.mrf.mxu0  ;;  %v5977_v1 = vpop.f32.mrf.mxu1 }
 0x174   : > { %v5979_v21 = vpop.f32.mrf.mxu0  ;;  %v5981_v14 = vpop.f32.mrf.mxu1 }
 0x176   : > { %v5983_v17 = vpop.f32.mrf.mxu0  ;;  %v5985_v22 = vpop.f32.mrf.mxu1 }
 0x178   : > { %v4753_v60 = vpop.f32.mrf.mxu1  ;;  %v4793_v15 = vpop.f32.mrf.mxu0  ;;  %4992 = vmatmul.mubr.msk.bf16.vlgmr.msra.gmra.mxu1 %vm273_vm0, %v2875_v18  ;;  %5032 = vmatmul.mubr.msk.bf16.vlgmr.msra.gmra.mxu0 %vm273_vm0, %v3197_v27 }
 0x179   : > { %v1113_v16 = vadd.f32 %v4753_v60, %v5892_v52  ;;  %4995 = vmatprep.mubr.msk.bf16.mxu1 %vm273_vm0, %v2876_v56  ;;  %5035 = vmatprep.mubr.msk.bf16.mxu0 %vm273_vm0, %v3198_v54  ;;  %v3173_v52 = vld [vmem:[#allocation2 + $0x9a] sm:$0xff]  ;;  %v2852_v60 = vld [vmem:[#allocation2 + $0xa9] sm:$0xff] }
 0x17a   : > { %v1104_v19 = vpop.f32.mrf.mxu1  ;;  %v1394_v23 = vpop.f32.mrf.mxu0  ;;  %v3200_v53 = vpack.c.bf16 %v3173_v52, %v3172_v44 }
 0x17b   : > { %v5992_v7 = vadd.f32 %v4793_v15, %v1113_v16  ;;  %v1105_v24 = vadd.f32 %v1104_v19, %v5894_v55  ;;  %v3174_v19 = vld [vmem:[#allocation2 + $0xaa] sm:$0xff] }
 0x17c   : > { %v4754_v45 = vpop.f32.mrf.mxu1  ;;  %v4794_v42 = vpop.f32.mrf.mxu0 }
 0x17d   : > { %v5995_v57 = vadd.f32 %v1394_v23, %v1105_v24  ;;  %v1116_v58 = vadd.f32 %v4754_v45, %v5906_v9  ;;  %v3175_v23 = vld [vmem:[#allocation2 + $0xb2] sm:$0xff] }
 0x17e   : > { %v1107_v2 = vpop.f32.mrf.mxu1  ;;  %v1397_v8 = vpop.f32.mrf.mxu0  ;;  %v3201_v52 = vpack.c.bf16 %v3175_v23, %v3174_v19  ;;  %v2859_v19 = vld [vmem:[#allocation2 + $0xf9] sm:$0xff] }
 0x17f   : > { %v5998_v20 = vadd.f32 %v4794_v42, %v1116_v58  ;;  %v1108_v55 = vadd.f32 %v1107_v2, %v5912_v11  ;;  %v2853_v11 = vld [vmem:[#allocation2 + $0xb1] sm:$0xff]  ;;  %v2880_v2 = vpack.c.bf16 %v2855_v28, %v2854_v36 }
 0x180   : > { %v4757_v51 = vpop.f32.mrf.mxu1  ;;  %v4797_v18 = vpop.f32.mrf.mxu0  ;;  %4996 = vmatmul.mubr.msk.bf16.gmra.mxu1 %vm273_vm0, %v2877_v12  ;;  %5036 = vmatmul.mubr.msk.bf16.gmra.mxu0 %vm273_vm0, %v3199_v13  ;;  %v2879_v44 = vpack.c.bf16 %v2853_v11, %v2852_v60  ;;  %v2858_v60 = vld [vmem:[#allocation2 + $0xf1] sm:$0xff] }
 0x181   : > { %v6003_v27 = vadd.f32 %v1397_v8, %v1108_v55  ;;  %v1129_v9 = vadd.f32 %v4757_v51, %v5916_v32  ;;  %4999 = vmatprep.mubr.msk.bf16.mxu1 %vm273_vm0, %v2878_v41  ;;  %5039 = vmatprep.mubr.msk.bf16.mxu0 %vm273_vm0, %v3200_v53  ;;  %v3177_v32 = vld [vmem:[#allocation2 + $0xca] sm:$0xff]  ;;  %v2856_v51 = vld [vmem:[#allocation2 + $0xd9] sm:$0xff] }
 0x182   : > { %v1120_v56 = vpop.f32.mrf.mxu1  ;;  %v1410_v54 = vpop.f32.mrf.mxu0  ;;  %v3202_v8 = vpack.c.bf16 %v3177_v32, %v3176_v29  ;;  %v3180_v23 = vld [vmem:[#allocation2 + $0xf2] sm:$0xff] }
 0x183   : > { %v6008_v15 = vadd.f32 %v4797_v18, %v1129_v9  ;;  %v1121_v16 = vadd.f32 %v1120_v56, %v5928_v34  ;;  %v3178_v56 = vld [vmem:[#allocation2 + $0xda] sm:$0xff] }
 0x184   : > { %v4758_v37 = vpop.f32.mrf.mxu1  ;;  %v4798_v24 = vpop.f32.mrf.mxu0 }
 0x185   : > { %v6011_v30 = vadd.f32 %v1410_v54, %v1121_v16  ;;  %v1132_v45 = vadd.f32 %v4758_v37, %v5932_v35  ;;  %v3179_v54 = vld [vmem:[#allocation2 + $0xe2] sm:$0xff] }
 0x186   : > { %v1123_v42 = vpop.f32.mrf.mxu1  ;;  %v1413_v43 = vpop.f32.mrf.mxu0  ;;  %v3203_v32 = vpack.c.bf16 %v3179_v54, %v3178_v56  ;;  %v2863_v56 = vld [vmem:[#allocation2 + $0x129] sm:$0xff] }
 0x187   : > { %v6014_v58 = vadd.f32 %v4798_v24, %v1132_v45  ;;  %v1124_v34 = vadd.f32 %v1123_v42, %v5936_v38  ;;  %v2857_v38 = vld [vmem:[#allocation2 + $0xe1] sm:$0xff]  ;;  %v2882_v42 = vpack.c.bf16 %v2859_v19, %v2858_v60 }
 0x188   : > { %v4761_v12 = vpop.f32.mrf.mxu1  ;;  %v4801_v13 = vpop.f32.mrf.mxu0  ;;  %5000 = vmatmul.mubr.msk.bf16.gmra.mxu1 %vm273_vm0, %v2879_v44  ;;  %5040 = vmatmul.mubr.msk.bf16.gmra.mxu0 %vm273_vm0, %v3201_v52  ;;  %v2881_v29 = vpack.c.bf16 %v2857_v38, %v2856_v51  ;;  %v2862_v51 = vld [vmem:[#allocation2 + $0x121] sm:$0xff] }
 0x189   : > { %v6019_v55 = vadd.f32 %v1413_v43, %v1124_v34  ;;  %v1145_v35 = vadd.f32 %v4761_v12, %v5940_v5  ;;  %5003 = vmatprep.mubr.msk.bf16.mxu1 %vm273_vm0, %v2880_v2  ;;  %5043 = vmatprep.mubr.msk.bf16.mxu0 %vm273_vm0, %v3202_v8  ;;  %v3181_v5 = vld [vmem:[#allocation2 + $0xfa] sm:$0xff]  ;;  %v2860_v12 = vld [vmem:[#allocation2 + $0x109] sm:$0xff] }
 0x18a   : > { %v1136_v41 = vpop.f32.mrf.mxu1  ;;  %v1426_v53 = vpop.f32.mrf.mxu0  ;;  %v3204_v43 = vpack.c.bf16 %v3181_v5, %v3180_v23  ;;  %v3184_v54 = vld [vmem:[#allocation2 + $0x122] sm:$0xff] }
 0x18b   : > { %v6024_v18 = vadd.f32 %v4801_v13, %v1145_v35  ;;  %v1137_v9 = vadd.f32 %v1136_v41, %v5952_v25  ;;  %v3182_v41 = vld [vmem:[#allocation2 + $0x10a] sm:$0xff] }
 0x18c   : > { %v4762_v11 = vpop.f32.mrf.mxu1  ;;  %v4802_v16 = vpop.f32.mrf.mxu0 }
 0x18d   : > { %v6027_v36 = vadd.f32 %v1426_v53, %v1137_v9  ;;  %v1148_v37 = vadd.f32 %v4762_v11, %v5956_v39  ;;  %v3183_v53 = vld [vmem:[#allocation2 + $0x112] sm:$0xff] }
 0x18e   : > { %v1139_v24 = vpop.f32.mrf.mxu1  ;;  %v1429_v28 = vpop.f32.mrf.mxu0  ;;  %v3205_v5 = vpack.c.bf16 %v3183_v53, %v3182_v41  ;;  %v2867_v41 = vld [vmem:[#allocation2 + $0x159] sm:$0xff] }
 0x18f   : > { %v6030_v45 = vadd.f32 %v4802_v16, %v1148_v37  ;;  %v1140_v25 = vadd.f32 %v1139_v24, %v5960_v46  ;;  %v2861_v46 = vld [vmem:[#allocation2 + $0x111] sm:$0xff]  ;;  %v2884_v24 = vpack.c.bf16 %v2863_v56, %v2862_v51 }
 0x190   : > { %v4765_v44 = vpop.f32.mrf.mxu1  ;;  %v4805_v52 = vpop.f32.mrf.mxu0  ;;  %5004 = vmatmul.mubr.msk.bf16.gmra.mxu1 %vm273_vm0, %v2881_v29  ;;  %5044 = vmatmul.mubr.msk.bf16.gmra.mxu0 %vm273_vm0, %v3203_v32  ;;  %v2883_v23 = vpack.c.bf16 %v2861_v46, %v2860_v12  ;;  %v2866_v12 = vld [vmem:[#allocation2 + $0x151] sm:$0xff] }
 0x191   : > { %v6035_v34 = vadd.f32 %v1429_v28, %v1140_v25  ;;  %v1161_v39 = vadd.f32 %v4765_v44, %v5966_v62  ;;  %5007 = vmatprep.mubr.msk.bf16.mxu1 %vm273_vm0, %v2882_v42  ;;  %5047 = vmatprep.mubr.msk.bf16.mxu0 %vm273_vm0, %v3204_v43  ;;  %v3185_v62 = vld [vmem:[#allocation2 + $0x12a] sm:$0xff]  ;;  %v2864_v44 = vld [vmem:[#allocation2 + $0x139] sm:$0xff] }
 0x192   : > { %v1152_v2 = vpop.f32.mrf.mxu1  ;;  %v1442_v8 = vpop.f32.mrf.mxu0  ;;  %v3206_v28 = vpack.c.bf16 %v3185_v62, %v3184_v54  ;;  %v3188_v53 = vld [vmem:[#allocation2 + $0x152] sm:$0xff] }
 0x193   : > { %v6040_v13 = vadd.f32 %v4805_v52, %v1161_v39  ;;  %v1153_v35 = vadd.f32 %v1152_v2, %v5975_v0  ;;  %v3186_v2 = vld [vmem:[#allocation2 + $0x13a] sm:$0xff] }
 0x194   : > { %v4766_v38 = vpop.f32.mrf.mxu1  ;;  %v4806_v9 = vpop.f32.mrf.mxu0 }
 0x195   : > { %v6043_v60 = vadd.f32 %v1442_v8, %v1153_v35  ;;  %v1164_v11 = vadd.f32 %v4766_v38, %v5979_v21  ;;  %v3187_v8 = vld [vmem:[#allocation2 + $0x142] sm:$0xff] }
 0x196   : > { %v1155_v16 = vpop.f32.mrf.mxu1  ;;  %v1445_v19 = vpop.f32.mrf.mxu0  ;;  %v3207_v62 = vpack.c.bf16 %v3187_v8, %v3186_v2 }
 0x197   : > { %v6046_v37 = vadd.f32 %v4806_v9, %v1164_v11  ;;  %v1156_v0 = vadd.f32 %v1155_v16, %v5983_v17  ;;  %v2865_v17 = vld [vmem:[#allocation2 + $0x141] sm:$0xff]  ;;  %v2886_v16 = vpack.c.bf16 %v2867_v41, %v2866_v12 }
 0x198   : > { %v4769_v29 = vpop.f32.mrf.mxu1  ;;  %v4809_v32 = vpop.f32.mrf.mxu0  ;;  %5008 = vmatmul.mubr.msk.bf16.gmra.mxu1 %vm273_vm0, %v2883_v23  ;;  %5048 = vmatmul.mubr.msk.bf16.gmra.mxu0 %vm273_vm0, %v3205_v5  ;;  %v2885_v54 = vpack.c.bf16 %v2865_v17, %v2864_v44 }
 0x199   : > { %v6051_v25 = vadd.f32 %v1445_v19, %v1156_v0  ;;  %v1177_v21 = vadd.f32 %v4769_v29, %v5896_v59  ;;  %5011 = vmatprep.mubr.msk.bf16.mxu1 %vm273_vm0, %v2884_v24  ;;  %5051 = vmatprep.mubr.msk.bf16.mxu0 %vm273_vm0, %v3206_v28  ;;  %v3189_v59 = vld [vmem:[#allocation2 + $0x15a] sm:$0xff]  ;;  %v2868_v29 = vld [vmem:[#allocation2 + $0x169] sm:$0xff] }
 0x19a   : > { %v1168_v42 = vpop.f32.mrf.mxu1  ;;  %v1458_v43 = vpop.f32.mrf.mxu0  ;;  %v3208_v19 = vpack.c.bf16 %v3189_v59, %v3188_v53 }
 0x19b   : > { %v6056_v52 = vadd.f32 %v4809_v32, %v1177_v21  ;;  %v1169_v39 = vadd.f32 %v1168_v42, %v5908_v10  ;;  %v2869_v21 = vld [vmem:[#allocation2 + $0x171] sm:$0xff] }
 0x19c   : > { %v4770_v46 = vpop.f32.mrf.mxu1  ;;  %v4810_v35 = vpop.f32.mrf.mxu0  ;;  %v3190_v42 = vld [vmem:[#allocation2 + $0x16a] sm:$0xff]  ;;  %v2887_v12 = vpack.c.bf16 %v2869_v21, %v2868_v29 }
 0x19d   : > { %v6059_v51 = vadd.f32 %v1458_v43, %v1169_v39  ;;  %v1180_v38 = vadd.f32 %v4770_v46, %v5910_v61  ;;  %v3191_v43 = vld [vmem:[#allocation2 + $0x172] sm:$0xff] }
 0x19e   : > { %v1171_v9 = vpop.f32.mrf.mxu1  ;;  %v1461_v56 = vpop.f32.mrf.mxu0  ;;  %v3209_v46 = vpack.c.bf16 %v3191_v43, %v3190_v42 }
 0x19f   : > { %v6062_v11 = vadd.f32 %v4810_v35, %v1180_v38  ;;  %v1172_v10 = vadd.f32 %v1171_v9, %v5914_v31 }
 0x1a0   : > { %v4773_v23 = vpop.f32.mrf.mxu1  ;;  %v4813_v5 = vpop.f32.mrf.mxu0  ;;  %5012 = vmatmul.mubr.msk.bf16.gmra.mxu1 %vm273_vm0, %v2885_v54  ;;  %5052 = vmatmul.mubr.msk.bf16.gmra.mxu0 %vm273_vm0, %v3207_v62 }
 0x1a1   : > { %v6067_v0 = vadd.f32 %v1461_v56, %v1172_v10  ;;  %v1193_v61 = vadd.f32 %v4773_v23, %v5918_v33  ;;  %5015 = vmatprep.mubr.msk.bf16.mxu1 %vm273_vm0, %v2886_v16  ;;  %5055 = vmatprep.mubr.msk.bf16.mxu0 %vm273_vm0, %v3208_v19  ;;  %v3194_v56 = vld [vmem:[#allocation2 + $0x19a] sm:$0xff] }
 0x1a2   : > { %v1184_v24 = vpop.f32.mrf.mxu1  ;;  %v1474_v28 = vpop.f32.mrf.mxu0 }
 0x1a3   : > { %v6072_v31 = vadd.f32 %v4813_v5, %v1193_v61  ;;  %v1185_v32 = vadd.f32 %v1184_v24, %v5930_v48  ;;  %v2872_v48 = vld [vmem:[#allocation2 + $0x199] sm:$0xff] }
 0x1a4   : > { %v4774_v44 = vpop.f32.mrf.mxu1  ;;  %v4814_v17 = vpop.f32.mrf.mxu0 }
 0x1a5   : > { %v6075_v39 = vadd.f32 %v1474_v28, %v1185_v32  ;;  %v1196_v33 = vadd.f32 %v4774_v44, %v5934_v49  ;;  %v2873_v49 = vld [vmem:[#allocation2 + $0x1a1] sm:$0xff] }
 0x1a6   : > { %v1187_v2 = vpop.f32.mrf.mxu1  ;;  %v1477_v8 = vpop.f32.mrf.mxu0  ;;  %v2889_v5 = vpack.c.bf16 %v2873_v49, %v2872_v48 }
 0x1a7   : > { %v6078_v35 = vadd.f32 %v4814_v17, %v1196_v33  ;;  %v1188_v41 = vadd.f32 %v1187_v2, %v5938_v3  ;;  %v3195_v3 = vld [vmem:[#allocation2 + $0x1a2] sm:$0xff] }
 0x1a8   : > { %v4777_v53 = vpop.f32.mrf.mxu1  ;;  %v4817_v59 = vpop.f32.mrf.mxu0  ;;  %5016 = vmatmul.mubr.msk.bf16.gmra.mxu1 %vm273_vm0, %v2887_v12  ;;  %5056 = vmatmul.mubr.msk.bf16.gmra.mxu0 %vm273_vm0, %v3209_v46  ;;  %v3211_v61 = vpack.c.bf16 %v3195_v3, %v3194_v56 }
 0x1a9   : > { %v6083_v38 = vadd.f32 %v1477_v8, %v1188_v41  ;;  %v1209_v9 = vadd.f32 %v4777_v53, %v5942_v6  ;;  %5019 = vmatprep.mubr.msk.bf16.mxu1 %vm273_vm0, %v5832_v4  ;;  %5059 = vmatprep.mubr.msk.bf16.mxu0 %vm273_vm0, %v5964_v50 }
 0x1aa   : > { %v1200_v54 = vpop.f32.mrf.mxu1  ;;  %v1490_v62 = vpop.f32.mrf.mxu0 }
 0x1ab   : > { %v6090_v10 = vadd.f32 %v4817_v59, %v1209_v9  ;;  %v1201_v16 = vadd.f32 %v1200_v54, %v5954_v26 }
 0x1ac   : > { %v4778_v19 = vpop.f32.mrf.mxu1  ;;  %v4818_v23 = vpop.f32.mrf.mxu0 }
 0x1ad   : > { %v6093_v6 = vadd.f32 %v1490_v62, %v1201_v16  ;;  %v1212_v4 = vadd.f32 %v4778_v19, %v5958_v40 }
 0x1ae   : > { %v1203_v24 = vpop.f32.mrf.mxu1  ;;  %v1493_v28 = vpop.f32.mrf.mxu0 }
 0x1af   : > { %v6096_v50 = vadd.f32 %v4818_v23, %v1212_v4  ;;  %v1204_v29 = vadd.f32 %v1203_v24, %v5962_v47 }
 0x1b0   : > { %v4781_v32 = vpop.f32.mrf.mxu1  ;;  %v4821_v21 = vpop.f32.mrf.mxu0  ;;  %5020 = vmatmul.mubr.msk.bf16.gmra.mxu1 %vm273_vm0, %v2889_v5  ;;  %5060 = vmatmul.mubr.msk.bf16.gmra.mxu0 %vm273_vm0, %v3211_v61 }
 0x1b1   : > { %v6101_v26 = vadd.f32 %v1493_v28, %v1204_v29  ;;  %v1225_v42 = vadd.f32 %v4781_v32, %v5968_v63 }
 0x1b2   : > { %v1216_v43 = vpop.f32.mrf.mxu1  ;;  %v1506_v44 = vpop.f32.mrf.mxu0 }
 0x1b3   : > { %v6104_v17 = vadd.f32 %v4821_v21, %v1225_v42  ;;  %v1217_v40 = vadd.f32 %v1216_v43, %v5977_v1 }
 0x1b4   : > { %v4782_v33 = vpop.f32.mrf.mxu1  ;;  %v4822_v2 = vpop.f32.mrf.mxu0 }
 0x1b5   : > { %v6107_v8 = vadd.f32 %v1506_v44, %v1217_v40  ;;  %v1228_v47 = vadd.f32 %v4782_v33, %v5981_v14 }
 0x1b6   : > { %v1219_v12 = vpop.f32.mrf.mxu1  ;;  %v1509_v46 = vpop.f32.mrf.mxu0 }
 0x1b7   : > { %v6110_v41 = vadd.f32 %v4822_v2, %v1228_v47  ;;  %v1220_v53 = vadd.f32 %v1219_v12, %v5985_v22 }
 0x1b8   : > { %v4833_v59 = vpop.f32.mrf.mxu1  ;;  %v4873_v63 = vpop.f32.mrf.mxu0 }
 0x1b9   : > { %v6113_v48 = vadd.f32 %v1509_v46, %v1220_v53  ;;  %v1845_v9 = vadd.f32 %v4833_v59, %v5992_v7 }
 0x1ba   : > { %v1716_v49 = vpop.f32.mrf.mxu1  ;;  %v2038_v1 = vpop.f32.mrf.mxu0 }
 0x1bb   : > { %v6116_v56 = vadd.f32 %v4873_v63, %v1845_v9  ;;  %v1843_v3 = vadd.f32 %v1716_v49, %v5995_v57 }
 0x1bc   : > { %v4834_v54 = vpop.f32.mrf.mxu1  ;;  %v4874_v14 = vpop.f32.mrf.mxu0 }
 0x1bd   : > { %v6119_v62 = vadd.f32 %v2038_v1, %v1843_v3  ;;  %v1846_v16 = vadd.f32 %v4834_v54, %v5998_v20 }
 0x1be   : > { %v1719_v19 = vpop.f32.mrf.mxu1  ;;  %v2041_v22 = vpop.f32.mrf.mxu0 }
 0x1bf   : > { %v6122_v23 = vadd.f32 %v4874_v14, %v1846_v16  ;;  %v1844_v5 = vadd.f32 %v1719_v19, %v6003_v27 }
 0x1c0   : > { %v4837_v61 = vpop.f32.mrf.mxu1  ;;  %v4877_v7 = vpop.f32.mrf.mxu0 }
 0x1c1   : > { %v6125_v4 = vadd.f32 %v2041_v22, %v1844_v5  ;;  %v1849_v24 = vadd.f32 %v4837_v61, %v6008_v15 }
 0x1c2   : > { %v1732_v28 = vpop.f32.mrf.mxu1  ;;  %v2054_v57 = vpop.f32.mrf.mxu0 }
 0x1c3   : > { %v6128_v29 = vadd.f32 %v4877_v7, %v1849_v24  ;;  %v1847_v32 = vadd.f32 %v1732_v28, %v6011_v30 }
 0x1c4   : > { %v4838_v21 = vpop.f32.mrf.mxu1  ;;  %v4878_v20 = vpop.f32.mrf.mxu0 }
 0x1c5   : > { %v6131_v42 = vadd.f32 %v2054_v57, %v1847_v32  ;;  %v1850_v43 = vadd.f32 %v4838_v21, %v6014_v58 }
 0x1c6   : > { %v1735_v44 = vpop.f32.mrf.mxu1  ;;  %v2057_v27 = vpop.f32.mrf.mxu0 }
 0x1c7   : > { %v6134_v40 = vadd.f32 %v4878_v20, %v1850_v43  ;;  %v1848_v33 = vadd.f32 %v1735_v44, %v6019_v55 }
 0x1c8   : > { %v4841_v2 = vpop.f32.mrf.mxu1  ;;  %v4881_v15 = vpop.f32.mrf.mxu0 }
 0x1c9   : > { %v6137_v47 = vadd.f32 %v2057_v27, %v1848_v33  ;;  %v1853_v12 = vadd.f32 %v4841_v2, %v6024_v18 }
 0x1ca   : > { %v1748_v46 = vpop.f32.mrf.mxu1  ;;  %v2070_v30 = vpop.f32.mrf.mxu0 }
 0x1cb   : > { %v6140_v53 = vadd.f32 %v4881_v15, %v1853_v12  ;;  %v1851_v59 = vadd.f32 %v1748_v46, %v6027_v36 }
 0x1cc   : > { %v4842_v63 = vpop.f32.mrf.mxu1  ;;  %v4882_v58 = vpop.f32.mrf.mxu0 }
 0x1cd   : > { %v6143_v9 = vadd.f32 %v2070_v30, %v1851_v59  ;;  %v1854_v49 = vadd.f32 %v4842_v63, %v6030_v45 }
 0x1ce   : > { %v1751_v1 = vpop.f32.mrf.mxu1  ;;  %v2073_v55 = vpop.f32.mrf.mxu0 }
 0x1cf   : > { %v6146_v3 = vadd.f32 %v4882_v58, %v1854_v49  ;;  %v1852_v54 = vadd.f32 %v1751_v1, %v6035_v34 }
 0x1d0   : > { %v4845_v14 = vpop.f32.mrf.mxu1  ;;  %v4885_v18 = vpop.f32.mrf.mxu0 }
 0x1d1   : > { %v6149_v16 = vadd.f32 %v2073_v55, %v1852_v54  ;;  %v1857_v19 = vadd.f32 %v4845_v14, %v6040_v13 }
 0x1d2   : > { %v1764_v22 = vpop.f32.mrf.mxu1  ;;  %v2086_v36 = vpop.f32.mrf.mxu0 }
 0x1d3   : > { %v6152_v5 = vadd.f32 %v4885_v18, %v1857_v19  ;;  %v1855_v61 = vadd.f32 %v1764_v22, %v6043_v60 }
 0x1d4   : > { %v4846_v7 = vpop.f32.mrf.mxu1  ;;  %v4886_v45 = vpop.f32.mrf.mxu0 }
 0x1d5   : > { %v6155_v24 = vadd.f32 %v2086_v36, %v1855_v61  ;;  %v1858_v28 = vadd.f32 %v4846_v7, %v6046_v37 }
 0x1d6   : > { %v1767_v57 = vpop.f32.mrf.mxu1  ;;  %v2089_v34 = vpop.f32.mrf.mxu0 }
 0x1d7   : > { %v6158_v32 = vadd.f32 %v4886_v45, %v1858_v28  ;;  %v1856_v21 = vadd.f32 %v1767_v57, %v6051_v25 }
 0x1d8   : > { %v4849_v20 = vpop.f32.mrf.mxu1  ;;  %v4889_v13 = vpop.f32.mrf.mxu0 }
 0x1d9   : > { %v6161_v43 = vadd.f32 %v2089_v34, %v1856_v21  ;;  %v1861_v44 = vadd.f32 %v4849_v20, %v6056_v52 }
 0x1da   : > { %v1780_v27 = vpop.f32.mrf.mxu1  ;;  %v2102_v60 = vpop.f32.mrf.mxu0 }
 0x1db   : > { %v6164_v33 = vadd.f32 %v4889_v13, %v1861_v44  ;;  %v1859_v2 = vadd.f32 %v1780_v27, %v6059_v51 }
 0x1dc   : > { %v4850_v15 = vpop.f32.mrf.mxu1  ;;  %v4890_v37 = vpop.f32.mrf.mxu0 }
 0x1dd   : > { %v6167_v12 = vadd.f32 %v2102_v60, %v1859_v2  ;;  %v1862_v46 = vadd.f32 %v4850_v15, %v6062_v11 }
 0x1de   : > { %v1783_v30 = vpop.f32.mrf.mxu1  ;;  %v2105_v25 = vpop.f32.mrf.mxu0 }
 0x1df   : > { %v6170_v59 = vadd.f32 %v4890_v37, %v1862_v46  ;;  %v1860_v63 = vadd.f32 %v1783_v30, %v6067_v0 }
 0x1e0   : > { %v4853_v58 = vpop.f32.mrf.mxu1  ;;  %v4893_v52 = vpop.f32.mrf.mxu0 }
 0x1e1   : > { %v6173_v49 = vadd.f32 %v2105_v25, %v1860_v63  ;;  %v1865_v1 = vadd.f32 %v4853_v58, %v6072_v31 }
 0x1e2   : > { %v1796_v55 = vpop.f32.mrf.mxu1  ;;  %v2118_v51 = vpop.f32.mrf.mxu0 }
 0x1e3   : > { %v6176_v54 = vadd.f32 %v4893_v52, %v1865_v1  ;;  %v1863_v14 = vadd.f32 %v1796_v55, %v6075_v39 }
 0x1e4   : > { %v4854_v18 = vpop.f32.mrf.mxu1  ;;  %v4894_v11 = vpop.f32.mrf.mxu0 }
 0x1e5   : > { %v6179_v19 = vadd.f32 %v2118_v51, %v1863_v14  ;;  %v1866_v22 = vadd.f32 %v4854_v18, %v6078_v35 }
 0x1e6   : > { %v1799_v36 = vpop.f32.mrf.mxu1  ;;  %v2121_v0 = vpop.f32.mrf.mxu0 }
 0x1e7   : > { %v6182_v61 = vadd.f32 %v4894_v11, %v1866_v22  ;;  %v1864_v7 = vadd.f32 %v1799_v36, %v6083_v38 }
 0x1e8   : > { %v4857_v45 = vpop.f32.mrf.mxu1  ;;  %v4897_v31 = vpop.f32.mrf.mxu0 }
 0x1e9   : > { %v6185_v28 = vadd.f32 %v2121_v0, %v1864_v7  ;;  %v1869_v57 = vadd.f32 %v4857_v45, %v6090_v10 }
 0x1ea   : > { %v1812_v34 = vpop.f32.mrf.mxu1  ;;  %v2134_v39 = vpop.f32.mrf.mxu0 }
 0x1eb   : > { %v6188_v21 = vadd.f32 %v4897_v31, %v1869_v57  ;;  %v1867_v20 = vadd.f32 %v1812_v34, %v6093_v6 }
 0x1ec   : > { %v4858_v13 = vpop.f32.mrf.mxu1  ;;  %v4898_v35 = vpop.f32.mrf.mxu0 }
 0x1ed   : > { %v6191_v44 = vadd.f32 %v2134_v39, %v1867_v20  ;;  %v1870_v27 = vadd.f32 %v4858_v13, %v6096_v50 }
 0x1ee   : > { %v1815_v60 = vpop.f32.mrf.mxu1  ;;  %v2137_v38 = vpop.f32.mrf.mxu0 }
 0x1ef   : > { %v6194_v2 = vadd.f32 %v4898_v35, %v1870_v27  ;;  %v1868_v15 = vadd.f32 %v1815_v60, %v6101_v26 }
 0x1f0   : > { %v4861_v37 = vpop.f32.mrf.mxu1  ;;  %v4901_v10 = vpop.f32.mrf.mxu0 }
 0x1f1   : > { %v6197_v46 = vadd.f32 %v2137_v38, %v1868_v15  ;;  %v1873_v30 = vadd.f32 %v4861_v37, %v6104_v17 }
 0x1f2   : > { %v1828_v25 = vpop.f32.mrf.mxu1  ;;  %v2150_v6 = vpop.f32.mrf.mxu0 }
 0x1f3   : > { %v6200_v63 = vadd.f32 %v4901_v10, %v1873_v30  ;;  %v1871_v58 = vadd.f32 %v1828_v25, %v6107_v8 }
 0x1f4   : > { %v4862_v52 = vpop.f32.mrf.mxu1  ;;  %v4902_v50 = vpop.f32.mrf.mxu0 }
 0x1f5   : > { %v6203_v1 = vadd.f32 %v2150_v6, %v1871_v58  ;;  %v1874_v55 = vadd.f32 %v4862_v52, %v6110_v41 }
 0x1f6   : > { %v1831_v51 = vpop.f32.mrf.mxu1  ;;  %v2153_v26 = vpop.f32.mrf.mxu0 }
 0x1f7   : > { %v6206_v14 = vadd.f32 %v4902_v50, %v1874_v55  ;;  %v1872_v18 = vadd.f32 %v1831_v51, %v6113_v48 }
 0x1f8   : > { %v4913_v11 = vpop.f32.mrf.mxu1  ;;  %v4953_v17 = vpop.f32.mrf.mxu0 }
 0x1f9   : > { %v6209_v22 = vadd.f32 %v2153_v26, %v1872_v18  ;;  %v2489_v36 = vadd.f32 %v4913_v11, %v6116_v56 }
 0x1fa   : > { %v2360_v0 = vpop.f32.mrf.mxu1  ;;  %v2683_v8 = vpop.f32.mrf.mxu0 }
 0x1fb   : > { %v6212_v7 = vadd.f32 %v4953_v17, %v2489_v36  ;;  %v2487_v45 = vadd.f32 %v2360_v0, %v6119_v62 }
 0x1fc   : > { %v4914_v31 = vpop.f32.mrf.mxu1  ;;  %v4954_v41 = vpop.f32.mrf.mxu0 }
 0x1fd   : > { %v6215_v57 = vadd.f32 %v2683_v8, %v2487_v45  ;;  %v2490_v34 = vadd.f32 %v4914_v31, %v6122_v23 }
 0x1fe   : > { %v6218_v39 = vpop.f32.mrf.mxu1  ;;  %v6220_v48 = vpop.f32.mrf.mxu0 }
 0x1ff   : > { %v6222_v20 = vadd.f32 %v4954_v41, %v2490_v34 }
 0x200   : > { %v4917_v13 = vpop.f32.mrf.mxu1  ;;  %v4957_v56 = vpop.f32.mrf.mxu0 }
 0x201   : > { %v2493_v35 = vadd.f32 %v4917_v13, %v6128_v29 }
 0x202   : > { %v6225_v27 = vpop.f32.mrf.mxu1  ;;  %v6227_v60 = vpop.f32.mrf.mxu0 }
 0x203   : > { %v6229_v62 = vadd.f32 %v4957_v56, %v2493_v35 }
 0x204   : > { %v4918_v38 = vpop.f32.mrf.mxu1  ;;  %v4958_v15 = vpop.f32.mrf.mxu0 }
 0x205   : > { %v2494_v23 = vadd.f32 %v4918_v38, %v6134_v40 }
 0x206   : > { %v6232_v37 = vpop.f32.mrf.mxu1  ;;  %v6234_v10 = vpop.f32.mrf.mxu0 }
 0x207   : > { %v6236_v30 = vadd.f32 %v4958_v15, %v2494_v23 }
 0x208   : > { %v4921_v25 = vpop.f32.mrf.mxu1  ;;  %v4961_v6 = vpop.f32.mrf.mxu0 }
 0x209   : > { %v2497_v29 = vadd.f32 %v4921_v25, %v6140_v53 }
 0x20a   : > { %v6239_v58 = vpop.f32.mrf.mxu1  ;;  %v6241_v52 = vpop.f32.mrf.mxu0 }
 0x20b   : > { %v6243_v50 = vadd.f32 %v4961_v6, %v2497_v29 }
 0x20c   : > { %v4922_v55 = vpop.f32.mrf.mxu1  ;;  %v4962_v51 = vpop.f32.mrf.mxu0 }
 0x20d   : > { %6868 = vst [vmem:[#allocation3_spill] sm:$0xff] %v6243_v50  ;;  %v2498_v40 = vadd.f32 %v4922_v55, %v6146_v3 }
 0x20e   : > { %v6246_v26 = vpop.f32.mrf.mxu1  ;;  %v6248_v18 = vpop.f32.mrf.mxu0 }
 0x20f   : > { %v6250_v11 = vadd.f32 %v4962_v51, %v2498_v40 }
 0x210   : > { %v4925_v17 = vpop.f32.mrf.mxu1  ;;  %v4965_v36 = vpop.f32.mrf.mxu0 }
 0x211   : > { %6869 = vst [vmem:[#allocation4_spill] sm:$0xff] %v6250_v11  ;;  %v2501_v53 = vadd.f32 %v4925_v17, %v6152_v5 }
 0x212   : > { %v6253_v0 = vpop.f32.mrf.mxu1  ;;  %v6255_v8 = vpop.f32.mrf.mxu0 }
 0x213   : > { %v6257_v45 = vadd.f32 %v4965_v36, %v2501_v53 }
 0x214   : > { %v4926_v31 = vpop.f32.mrf.mxu1  ;;  %v4966_v41 = vpop.f32.mrf.mxu0 }
 0x215   : > { %6870 = vst [vmem:[#allocation5_spill] sm:$0xff] %v6257_v45  ;;  %v2502_v3 = vadd.f32 %v4926_v31, %v6158_v32 }
 0x216   : > { %v6260_v34 = vpop.f32.mrf.mxu1  ;;  %v6262_v13 = vpop.f32.mrf.mxu0 }
 0x217   : > { %v6264_v56 = vadd.f32 %v4966_v41, %v2502_v3 }
 0x218   : > { %v4929_v35 = vpop.f32.mrf.mxu1  ;;  %v4969_v38 = vpop.f32.mrf.mxu0 }
 0x219   : > { %6871 = vst [vmem:[#allocation6_spill] sm:$0xff] %v6264_v56  ;;  %v2505_v5 = vadd.f32 %v4929_v35, %v6164_v33 }
 0x21a   : > { %v2424_v15 = vpop.f32.mrf.mxu1  ;;  %v6267_v23 = vpop.f32.mrf.mxu0 }
 0x21b   : > { %v6269_v25 = vadd.f32 %v4969_v38, %v2505_v5 }
 0x21c   : > { %v4930_v6 = vpop.f32.mrf.mxu1  ;;  %v4970_v29 = vpop.f32.mrf.mxu0 }
 0x21d   : > { %6872 = vst [vmem:[#allocation7_spill] sm:$0xff] %v6269_v25  ;;  %v2506_v55 = vadd.f32 %v4930_v6, %v6170_v59 }
 0x21e   : > { %v2427_v32 = vpop.f32.mrf.mxu1  ;;  %v6272_v51 = vpop.f32.mrf.mxu0 }
 0x21f   : > { %v6274_v40 = vadd.f32 %v4970_v29, %v2506_v55 }
 0x220   : > { %v4933_v17 = vpop.f32.mrf.mxu1  ;;  %v4973_v36 = vpop.f32.mrf.mxu0 }
 0x221   : > { %6873 = vst [vmem:[#allocation8_spill] sm:$0xff] %v6274_v40  ;;  %v2509_v53 = vadd.f32 %v4933_v17, %v6176_v54 }
 0x222   : > { %v2440_v31 = vpop.f32.mrf.mxu1  ;;  %v6277_v33 = vpop.f32.mrf.mxu0 }
 0x223   : > { %v6279_v41 = vadd.f32 %v4973_v36, %v2509_v53 }
 0x224   : > { %v4934_v3 = vpop.f32.mrf.mxu1  ;;  %v4974_v35 = vpop.f32.mrf.mxu0 }
 0x225   : > { %6874 = vst [vmem:[#allocation9_spill] sm:$0xff] %v6279_v41  ;;  %v2510_v38 = vadd.f32 %v4934_v3, %v6182_v61 }
 0x226   : > { %v2443_v5 = vpop.f32.mrf.mxu1  ;;  %v6282_v59 = vpop.f32.mrf.mxu0 }
 0x227   : > { %v6284_v6 = vadd.f32 %v4974_v35, %v2510_v38 }
 0x228   : > { %v4937_v29 = vpop.f32.mrf.mxu1  ;;  %v4977_v55 = vpop.f32.mrf.mxu0 }
 0x229   : > { %6875 = vst [vmem:[#allocation10_spill] sm:$0xff] %v6284_v6  ;;  %v2513_v40 = vadd.f32 %v4937_v29, %v6188_v21 }
 0x22a   : > { %v2456_v25 = vpop.f32.mrf.mxu1  ;;  %v6287_v54 = vpop.f32.mrf.mxu0 }
 0x22b   : > { %v6289_v17 = vadd.f32 %v4977_v55, %v2513_v40 }
 0x22c   : > { %v4938_v36 = vpop.f32.mrf.mxu1  ;;  %v4978_v53 = vpop.f32.mrf.mxu0 }
 0x22d   : > { %6876 = vst [vmem:[#allocation11_spill] sm:$0xff] %v6289_v17  ;;  %v2514_v41 = vadd.f32 %v4938_v36, %v6194_v2  ;;  %v2488_v2 = vadd.f32 %v6218_v39, %v6125_v4  ;;  %v2491_v36 = vadd.f32 %v6225_v27, %v6131_v42  ;;  %v2503_v27 = vadd.f32 %v2424_v15, %v6167_v12  ;;  %v6336_v12 = vld [vmem:[%s6864_s3] ss:$0 sm:$0xff] }
 0x22e   : > { %v2459_v56 = vpop.f32.mrf.mxu1  ;;  %v6292_v61 = vpop.f32.mrf.mxu0 }
 0x22f   : > { %v6294_v3 = vadd.f32 %v4978_v53, %v2514_v41  ;;  %v2811_v39 = vadd.f32 %v6220_v48, %v2488_v2  ;;  %v2814_v42 = vadd.f32 %v6227_v60, %v2491_v36 }
 0x230   : > { %v4941_v35 = vpop.f32.mrf.mxu1  ;;  %v4981_v38 = vpop.f32.mrf.mxu0 }
 0x231   : > { %v2517_v6 = vadd.f32 %v4941_v35, %v6200_v63  ;;  %v2492_v35 = vadd.f32 %v6232_v37, %v6137_v47  ;;  %v2500_v47 = vadd.f32 %v6260_v34, %v6161_v43  ;;  %v2507_v43 = vadd.f32 %v2440_v31, %v6179_v19 }
 0x232   : > { %v2472_v45 = vpop.f32.mrf.mxu1  ;;  %v2795_v21 = vpop.f32.mrf.mxu0  ;;  %v2508_v34 = vadd.f32 %v2443_v5, %v6185_v28  ;;  %v6352_v28 = vadd.f32 %v6267_v23, %v2503_v27 }
 0x233   : > { %v6297_v29 = vadd.f32 %v4981_v38, %v2517_v6  ;;  %v6349_v2 = vadd.f32 %v6262_v13, %v2500_v47 }
 0x234   : > { %v4942_v11 = vpop.f32.mrf.mxu1  ;;  %v4982_v40 = vpop.f32.mrf.mxu0  ;;  %v6368_v23 = vadd.f32 %v6282_v59, %v2508_v34  ;;  %v6877_v34 = vld [vmem:[#allocation3_spill] sm:$0xff] }
 0x235   : > { %v2518_v55 = vadd.f32 %v4942_v11, %v6206_v14  ;;  %v2495_v14 = vadd.f32 %v6239_v58, %v6143_v9  ;;  %v2496_v11 = vadd.f32 %v6246_v26, %v6149_v16  ;;  %v2504_v16 = vadd.f32 %v2427_v32, %v6173_v49 }
 0x236   : > { %v2475_v17 = vpop.f32.mrf.mxu1  ;;  %v6300_v50 = vpop.f32.mrf.mxu0 }
 0x237   : > { %v6304_v41 = vadd.f32 %v4982_v40, %v2518_v55  ;;  %v6327_v60 = vadd.f32 %v6241_v52, %v2495_v14  ;;  %v6384_v59 = vadd.f32 %v2475_v17, %v6209_v22 }
 0x238   : > { %v4993_v63 = vpop.f32.mrf.mxu1  ;;  %v5033_v53 = vpop.f32.mrf.mxu0 }
 0x239   : > { %v3134_v6 = vadd.f32 %v4993_v63, %v6212_v7  ;;  %v2499_v7 = vadd.f32 %v6253_v0, %v6155_v24  ;;  %v6330_v24 = vadd.f32 %v6248_v18, %v2496_v11  ;;  %v2515_v18 = vadd.f32 %v2472_v45, %v6203_v1 }
 0x23a   : > { %v3005_v38 = vpop.f32.mrf.mxu1  ;;  %v3327_v4 = vpop.f32.mrf.mxu0  ;;  %v6361_v1 = vadd.f32 %v6277_v33, %v2507_v43 }
 0x23b   : > { %v3132_v40 = vadd.f32 %v3005_v38, %v6215_v57  ;;  %v3456_v58 = vadd.f32 %v5033_v53, %v3134_v6  ;;  %v2815_v57 = vadd.f32 %v6234_v10, %v2492_v35  ;;  %v2512_v10 = vadd.f32 %v2459_v56, %v6197_v46 }
 0x23c   : > { %v4994_v9 = vpop.f32.mrf.mxu1  ;;  %v5034_v37 = vpop.f32.mrf.mxu0  ;;  %v6342_v15 = vadd.f32 %v6255_v8, %v2499_v7  ;;  %v6376_v33 = vadd.f32 %v2795_v21, %v2515_v18 }
 0x23d   : > { %v3454_v26 = vadd.f32 %v3327_v4, %v3132_v40  ;;  %v3135_v48 = vadd.f32 %v4994_v9, %v6222_v20  ;;  %v2511_v20 = vadd.f32 %v2456_v25, %v6191_v44  ;;  %v6355_v44 = vadd.f32 %v6272_v51, %v2504_v16 }
 0x23e   : > { %v3008_v49 = vpop.f32.mrf.mxu1  ;;  %v3330_v0 = vpop.f32.mrf.mxu0  ;;  %v6358_v46 = vadd.f32 %v6336_v12, %v3456_v58  ;;  %v6374_v5 = vadd.f32 %v6292_v61, %v2512_v10 }
 0x23f   : > { %v3457_v52 = vadd.f32 %v5034_v37, %v3135_v48  ;;  %v6346_v19 = vadd.f32 %v6336_v12, %v3454_v26  ;;  %v3133_v32 = vadd.f32 %v3008_v49, %v2811_v39  ;;  %v6371_v51 = vadd.f32 %v6287_v54, %v2511_v20 }
 0x240   : > { %v4997_v31 = vpop.f32.mrf.mxu1  ;;  %v5037_v55 = vpop.f32.mrf.mxu0  ;;  %v3596_v54 = vmul.f32 %v6358_v46, %v6358_v46  ;;  %v3528_v7 = vsel %vm394_vm2, %v6358_v46, 0.0 }
 0x241   : > { %v6364_v8 = vadd.f32 %v6336_v12, %v3457_v52  ;;  %v3455_v45 = vadd.f32 %v3330_v0, %v3133_v32  ;;  %v3138_v56 = vadd.f32 %v4997_v31, %v6229_v62  ;;  %v3594_v63 = vmul.f32 %v6346_v19, %v6346_v19 }
 0x242   : > { %v3021_v13 = vpop.f32.mrf.mxu1  ;;  %v3343_v25 = vpop.f32.mrf.mxu0  ;;  %v3525_v21 = vsel %vm394_vm2, %v6346_v19, 0.0  ;;  %v3629_v58 = vsel %vm394_vm2, %v3596_v54, 0.0  ;;  %v6878_v54 = vld [vmem:[#allocation4_spill] sm:$0xff] }
 0x243   : > { %v3136_v36 = vadd.f32 %v3021_v13, %v2814_v42  ;;  %v6381_v53 = vadd.f32 %v6336_v12, %v3455_v45  ;;  %v3460_v62 = vadd.f32 %v5037_v55, %v3138_v56  ;;  %v3597_v11 = vmul.f32 %v6364_v8, %v6364_v8 }
 0x244   : > { %v4998_v6 = vpop.f32.mrf.mxu1  ;;  %v5038_v35 = vpop.f32.mrf.mxu0  ;;  %v3626_v47 = vsel %vm394_vm2, %v3594_v63, 0.0  ;;  %v3530_v26 = vsel %vm394_vm2, %v6364_v8, 0.0 }
 0x245   : > { %v3458_v61 = vadd.f32 %v3343_v25, %v3136_v36  ;;  %v3139_v14 = vadd.f32 %v4998_v6, %v6236_v30  ;;  %v3526_v38 = vsel %vm394_vm2, %v6381_v53, 0.0  ;;  %v3595_v4 = vmul.f32 %v6381_v53, %v6381_v53 }
 0x246   : > { %v3024_v22 = vpop.f32.mrf.mxu1  ;;  %v3346_v17 = vpop.f32.mrf.mxu0  ;;  %v3527_v39 = vadd.f32 %v3526_v38, %v3525_v21  ;;  %v6405_v9 = vadd.f32 %v6336_v12, %v3460_v62  ;;  %v3631_v18 = vsel %vm394_vm2, %v3597_v11, 0.0 }
 0x247   : > { %v6398_v40 = vadd.f32 %v6336_v12, %v3458_v61  ;;  %v3461_v42 = vadd.f32 %v5038_v35, %v3139_v14  ;;  %v3137_v30 = vadd.f32 %v3024_v22, %v2815_v57  ;;  %v3627_v27 = vsel %vm394_vm2, %v3595_v4, 0.0 }
 0x248   : > { %v5001_v37 = vpop.f32.mrf.mxu1  ;;  %v5041_v16 = vpop.f32.mrf.mxu0  ;;  %v3529_v48 = vadd.f32 %v3528_v7, %v3527_v39  ;;  %v3628_v43 = vadd.f32 %v3627_v27, %v3626_v47  ;;  %v3600_v45 = vmul.f32 %v6405_v9, %v6405_v9 }
 0x249   : > { %v3598_v57 = vmul.f32 %v6398_v40, %v6398_v40  ;;  %v6413_v49 = vadd.f32 %v6336_v12, %v3461_v42  ;;  %v3459_v0 = vadd.f32 %v3346_v17, %v3137_v30  ;;  %v3142_v20 = vadd.f32 %v5001_v37, %v6877_v34 }
 0x24a   : > { %v3037_v10 = vpop.f32.mrf.mxu1  ;;  %v3359_v52 = vpop.f32.mrf.mxu0  ;;  %v3630_v32 = vadd.f32 %v3629_v58, %v3628_v43  ;;  %v3531_v31 = vadd.f32 %v3530_v26, %v3529_v48  ;;  %v3532_v56 = vsel %vm394_vm2, %v6398_v40, 0.0  ;;  %v3536_v30 = vsel %vm394_vm2, %v6405_v9, 0.0 }
 0x24b   : > { %v3140_v55 = vadd.f32 %v3037_v10, %v6327_v60  ;;  %v6423_v13 = vadd.f32 %v6336_v12, %v3459_v0  ;;  %v3464_v25 = vadd.f32 %v5041_v16, %v3142_v20  ;;  %v3633_v14 = vsel %vm394_vm2, %v3598_v57, 0.0  ;;  %v6879_v20 = vld [vmem:[#allocation5_spill] sm:$0xff] }
 0x24c   : > { %v5002_v36 = vpop.f32.mrf.mxu1  ;;  %v5042_v63 = vpop.f32.mrf.mxu0  ;;  %v3533_v62 = vadd.f32 %v3532_v56, %v3531_v31  ;;  %v3632_v6 = vadd.f32 %v3631_v18, %v3630_v32  ;;  %v3601_v60 = vmul.f32 %v6413_v49, %v6413_v49  ;;  %v3637_v58 = vsel %vm394_vm2, %v3600_v45, 0.0 }
 0x24d   : > { %v3462_v35 = vadd.f32 %v3359_v52, %v3140_v55  ;;  %v3143_v61 = vadd.f32 %v5002_v36, %v6878_v54  ;;  %v3534_v21 = vsel %vm394_vm2, %v6423_v13, 0.0  ;;  %v3599_v11 = vmul.f32 %v6423_v13, %v6423_v13 }
 0x24e   : > { %v3040_v38 = vpop.f32.mrf.mxu1  ;;  %v3362_v4 = vpop.f32.mrf.mxu0  ;;  %v3634_v22 = vadd.f32 %v3633_v14, %v3632_v6  ;;  %v3535_v17 = vadd.f32 %v3534_v21, %v3533_v62  ;;  %v6440_v47 = vadd.f32 %v6336_v12, %v3464_v25  ;;  %v3538_v26 = vsel %vm394_vm2, %v6413_v49, 0.0 }
 0x24f   : > { %v6434_v39 = vadd.f32 %v6336_v12, %v3462_v35  ;;  %v3465_v42 = vadd.f32 %v5042_v63, %v3143_v61  ;;  %v3635_v7 = vsel %vm394_vm2, %v3599_v11, 0.0  ;;  %v3141_v27 = vadd.f32 %v3040_v38, %v6330_v24  ;;  %v6880_v61 = vld [vmem:[#allocation6_spill] sm:$0xff] }
 0x250   : > { %v5005_v37 = vpop.f32.mrf.mxu1  ;;  %v5045_v16 = vpop.f32.mrf.mxu0  ;;  %v3537_v48 = vadd.f32 %v3536_v30, %v3535_v17  ;;  %v3636_v43 = vadd.f32 %v3635_v7, %v3634_v22  ;;  %v3639_v18 = vsel %vm394_vm2, %v3601_v60, 0.0  ;;  %v3604_v45 = vmul.f32 %v6440_v47, %v6440_v47 }
 0x251   : > { %v3602_v57 = vmul.f32 %v6434_v39, %v6434_v39  ;;  %v6449_v0 = vadd.f32 %v6336_v12, %v3465_v42  ;;  %v3463_v34 = vadd.f32 %v3362_v4, %v3141_v27  ;;  %v3146_v10 = vadd.f32 %v5005_v37, %v6879_v20 }
 0x252   : > { %v3053_v52 = vpop.f32.mrf.mxu1  ;;  %v3375_v24 = vpop.f32.mrf.mxu0  ;;  %v3638_v32 = vadd.f32 %v3637_v58, %v3636_v43  ;;  %v3539_v31 = vadd.f32 %v3538_v26, %v3537_v48  ;;  %v3540_v56 = vsel %vm394_vm2, %v6434_v39, 0.0  ;;  %v3544_v7 = vsel %vm394_vm2, %v6440_v47, 0.0 }
 0x253   : > { %v3144_v55 = vadd.f32 %v3053_v52, %v6342_v15  ;;  %v6459_v25 = vadd.f32 %v6336_v12, %v3463_v34  ;;  %v3468_v36 = vadd.f32 %v5045_v16, %v3146_v10  ;;  %v3641_v60 = vsel %vm394_vm2, %v3602_v57, 0.0 }
 0x254   : > { %v5006_v63 = vpop.f32.mrf.mxu1  ;;  %v5046_v62 = vpop.f32.mrf.mxu0  ;;  %v3541_v6 = vadd.f32 %v3540_v56, %v3539_v31  ;;  %v3640_v35 = vadd.f32 %v3639_v18, %v3638_v32  ;;  %v3605_v15 = vmul.f32 %v6449_v0, %v6449_v0  ;;  %v3645_v48 = vsel %vm394_vm2, %v3604_v45, 0.0 }
 0x255   : > { %v3466_v54 = vadd.f32 %v3375_v24, %v3144_v55  ;;  %v3147_v14 = vadd.f32 %v5006_v63, %v6880_v61  ;;  %v3542_v21 = vsel %vm394_vm2, %v6459_v25, 0.0  ;;  %v3603_v11 = vmul.f32 %v6459_v25, %v6459_v25  ;;  %v6881_v24 = vld [vmem:[#allocation7_spill] sm:$0xff] }
 0x256   : > { %v3056_v38 = vpop.f32.mrf.mxu1  ;;  %v3378_v4 = vpop.f32.mrf.mxu0  ;;  %v3642_v22 = vadd.f32 %v3641_v60, %v3640_v35  ;;  %v3543_v17 = vadd.f32 %v3542_v21, %v3541_v6  ;;  %v6476_v37 = vadd.f32 %v6336_v12, %v3468_v36  ;;  %v3546_v43 = vsel %vm394_vm2, %v6449_v0, 0.0 }
 0x257   : > { %v6470_v42 = vadd.f32 %v6336_v12, %v3466_v54  ;;  %v3469_v30 = vadd.f32 %v5046_v62, %v3147_v14  ;;  %v3643_v27 = vsel %vm394_vm2, %v3603_v11, 0.0  ;;  %v3145_v16 = vadd.f32 %v3056_v38, %v6349_v2 }
 0x258   : > { %v5009_v58 = vpop.f32.mrf.mxu1  ;;  %v5049_v26 = vpop.f32.mrf.mxu0  ;;  %v3545_v57 = vadd.f32 %v3544_v7, %v3543_v17  ;;  %v3644_v34 = vadd.f32 %v3643_v27, %v3642_v22  ;;  %v3647_v31 = vsel %vm394_vm2, %v3605_v15, 0.0  ;;  %v3608_v36 = vmul.f32 %v6476_v37, %v6476_v37  ;;  %v6882_v15 = vld [vmem:[#allocation8_spill] sm:$0xff] }
 0x259   : > { %v3606_v20 = vmul.f32 %v6470_v42, %v6470_v42  ;;  %v6485_v10 = vadd.f32 %v6336_v12, %v3469_v30  ;;  %v3467_v52 = vadd.f32 %v3378_v4, %v3145_v16  ;;  %v3150_v18 = vadd.f32 %v5009_v58, %v6881_v24 }
 0x25a   : > { %v3069_v32 = vpop.f32.mrf.mxu1  ;;  %v3391_v2 = vpop.f32.mrf.mxu0  ;;  %v3646_v55 = vadd.f32 %v3645_v48, %v3644_v34  ;;  %v3547_v45 = vadd.f32 %v3546_v43, %v3545_v57  ;;  %v3548_v63 = vsel %vm394_vm2, %v6470_v42, 0.0  ;;  %v3552_v58 = vsel %vm394_vm2, %v6476_v37, 0.0 }
 0x25b   : > { %v3148_v56 = vadd.f32 %v3069_v32, %v6352_v28  ;;  %v6495_v62 = vadd.f32 %v6336_v12, %v3467_v52  ;;  %v3472_v6 = vadd.f32 %v5049_v26, %v3150_v18  ;;  %v3649_v11 = vsel %vm394_vm2, %v3606_v20, 0.0 }
 0x25c   : > { %v5010_v35 = vpop.f32.mrf.mxu1  ;;  %v5050_v54 = vpop.f32.mrf.mxu0  ;;  %v3549_v61 = vadd.f32 %v3548_v63, %v3547_v45  ;;  %v3648_v14 = vadd.f32 %v3647_v31, %v3646_v55  ;;  %v3609_v28 = vmul.f32 %v6485_v10, %v6485_v10  ;;  %v3653_v20 = vsel %vm394_vm2, %v3608_v36, 0.0  ;;  %v6883_v55 = vld [vmem:[#allocation9_spill] sm:$0xff] }
 0x25d   : > { %v3470_v60 = vadd.f32 %v3391_v2, %v3148_v56  ;;  %v3151_v21 = vadd.f32 %v5010_v35, %v6882_v15  ;;  %v3550_v38 = vsel %vm394_vm2, %v6495_v62, 0.0  ;;  %v3607_v4 = vmul.f32 %v6495_v62, %v6495_v62 }
 0x25e   : > { %v3072_v22 = vpop.f32.mrf.mxu1  ;;  %v3394_v17 = vpop.f32.mrf.mxu0  ;;  %v3650_v30 = vadd.f32 %v3649_v11, %v3648_v14  ;;  %v3551_v7 = vadd.f32 %v3550_v38, %v3549_v61  ;;  %v6512_v48 = vadd.f32 %v6336_v12, %v3472_v6  ;;  %v3554_v52 = vsel %vm394_vm2, %v6485_v10, 0.0 }
 0x25f   : > { %v6506_v27 = vadd.f32 %v6336_v12, %v3470_v60  ;;  %v3473_v16 = vadd.f32 %v5050_v54, %v3151_v21  ;;  %v3651_v26 = vsel %vm394_vm2, %v3607_v4, 0.0  ;;  %v3149_v43 = vadd.f32 %v3072_v22, %v6355_v44 }
 0x260   : > { %v5013_v57 = vpop.f32.mrf.mxu1  ;;  %v5053_v34 = vpop.f32.mrf.mxu0  ;;  %v3553_v24 = vadd.f32 %v3552_v58, %v3551_v7  ;;  %v3652_v18 = vadd.f32 %v3651_v26, %v3650_v30  ;;  %v3655_v63 = vsel %vm394_vm2, %v3609_v28, 0.0  ;;  %v3612_v54 = vmul.f32 %v6512_v48, %v6512_v48  ;;  %v6884_v28 = vld [vmem:[#allocation10_spill] sm:$0xff] }
 0x261   : > { %v3610_v32 = vmul.f32 %v6506_v27, %v6506_v27  ;;  %v6521_v2 = vadd.f32 %v6336_v12, %v3473_v16  ;;  %v3471_v31 = vadd.f32 %v3394_v17, %v3149_v43  ;;  %v3154_v45 = vadd.f32 %v5013_v57, %v6883_v55 }
 0x262   : > { %v3085_v56 = vpop.f32.mrf.mxu1  ;;  %v3407_v44 = vpop.f32.mrf.mxu0  ;;  %v3654_v6 = vadd.f32 %v3653_v20, %v3652_v18  ;;  %v3555_v36 = vadd.f32 %v3554_v52, %v3553_v24  ;;  %v3556_v61 = vsel %vm394_vm2, %v6506_v27, 0.0  ;;  %v3560_v20 = vsel %vm394_vm2, %v6512_v48, 0.0 }
 0x263   : > { %v3152_v35 = vadd.f32 %v3085_v56, %v6361_v1  ;;  %v6531_v14 = vadd.f32 %v6336_v12, %v3471_v31  ;;  %v3476_v60 = vadd.f32 %v5053_v34, %v3154_v45  ;;  %v3657_v17 = vsel %vm394_vm2, %v3610_v32, 0.0 }
 0x264   : > { %v5014_v15 = vpop.f32.mrf.mxu1  ;;  %v5054_v21 = vpop.f32.mrf.mxu0  ;;  %v3557_v11 = vadd.f32 %v3556_v61, %v3555_v36  ;;  %v3656_v38 = vadd.f32 %v3655_v63, %v3654_v6  ;;  %v3613_v1 = vmul.f32 %v6521_v2, %v6521_v2  ;;  %v3661_v55 = vsel %vm394_vm2, %v3612_v54, 0.0 }
 0x265   : > { %v3474_v4 = vadd.f32 %v3407_v44, %v3152_v35  ;;  %v3155_v22 = vadd.f32 %v5014_v15, %v6884_v28  ;;  %v3558_v30 = vsel %vm394_vm2, %v6531_v14, 0.0  ;;  %v3611_v7 = vmul.f32 %v6531_v14, %v6531_v14  ;;  %v6885_v35 = vld [vmem:[#allocation11_spill] sm:$0xff] }
 0x266   : > { %v3088_v16 = vpop.f32.mrf.mxu1  ;;  %v3410_v58 = vpop.f32.mrf.mxu0  ;;  %v3658_v26 = vadd.f32 %v3657_v17, %v3656_v38  ;;  %v3559_v43 = vadd.f32 %v3558_v30, %v3557_v11  ;;  %v6548_v24 = vadd.f32 %v6336_v12, %v3476_v60  ;;  %v3562_v45 = vsel %vm394_vm2, %v6521_v2, 0.0 }
 0x267   : > { %v6542_v57 = vadd.f32 %v6336_v12, %v3474_v4  ;;  %v3477_v34 = vadd.f32 %v5054_v21, %v3155_v22  ;;  %v3659_v52 = vsel %vm394_vm2, %v3611_v7, 0.0  ;;  %v3153_v18 = vadd.f32 %v3088_v16, %v6368_v23 }
 0x268   : > { %v5017_v32 = vpop.f32.mrf.mxu1  ;;  %v5057_v31 = vpop.f32.mrf.mxu0  ;;  %v3561_v56 = vadd.f32 %v3560_v20, %v3559_v43  ;;  %v3660_v44 = vadd.f32 %v3659_v52, %v3658_v26  ;;  %v3663_v63 = vsel %vm394_vm2, %v3613_v1, 0.0  ;;  %v3616_v38 = vmul.f32 %v6548_v24, %v6548_v24 }
 0x269   : > { %v3614_v6 = vmul.f32 %v6542_v57, %v6542_v57  ;;  %v3475_v36 = vadd.f32 %v3410_v58, %v3153_v18  ;;  %v3158_v61 = vadd.f32 %v5017_v32, %v6885_v35  ;;  %v6559_v11 = vadd.f32 %v6336_v12, %v3477_v34 }
 0x26a   : > { %v3101_v60 = vpop.f32.mrf.mxu1  ;;  %v3423_v15 = vpop.f32.mrf.mxu0  ;;  %v3662_v23 = vadd.f32 %v3661_v55, %v3660_v44  ;;  %v3563_v21 = vadd.f32 %v3562_v45, %v3561_v56  ;;  %v3564_v4 = vsel %vm394_vm2, %v6542_v57, 0.0  ;;  %v3669_v35 = vsel %vm394_vm2, %v3616_v38, 0.0 }
 0x26b   : > { %v3156_v54 = vadd.f32 %v3101_v60, %v6371_v51  ;;  %v6567_v28 = vadd.f32 %v6336_v12, %v3475_v36  ;;  %v3480_v22 = vadd.f32 %v5057_v31, %v3158_v61  ;;  %v3568_v51 = vsel %vm394_vm2, %v6548_v24, 0.0 }
 0x26c   : > { %v5018_v17 = vpop.f32.mrf.mxu1  ;;  %v5058_v1 = vpop.f32.mrf.mxu0  ;;  %v3565_v30 = vadd.f32 %v3564_v4, %v3563_v21  ;;  %v3664_v7 = vadd.f32 %v3663_v63, %v3662_v23  ;;  %v3665_v26 = vsel %vm394_vm2, %v3614_v6, 0.0  ;;  %v3617_v32 = vmul.f32 %v6559_v11, %v6559_v11 }
 0x26d   : > { %v3478_v16 = vadd.f32 %v3423_v15, %v3156_v54  ;;  %v3159_v58 = vadd.f32 %v5018_v17, %v6294_v3  ;;  %v3566_v43 = vsel %vm394_vm2, %v6567_v28, 0.0  ;;  %v3615_v34 = vmul.f32 %v6567_v28, %v6567_v28 }
 0x26e   : > { %v3104_v20 = vpop.f32.mrf.mxu1  ;;  %v3426_v52 = vpop.f32.mrf.mxu0  ;;  %v3666_v18 = vadd.f32 %v3665_v26, %v3664_v7  ;;  %v3567_v31 = vadd.f32 %v3566_v43, %v3565_v30  ;;  %v6584_v45 = vadd.f32 %v6336_v12, %v3480_v22  ;;  %v2839_v36 = vadd.f32 %v6300_v50, %v6384_v59 }
 0x26f   : > { %v6580_v3 = vadd.f32 %v6336_v12, %v3478_v16  ;;  %v3667_v55 = vsel %vm394_vm2, %v3615_v34, 0.0  ;;  %v3481_v56 = vadd.f32 %v5058_v1, %v3159_v58  ;;  %v3157_v44 = vadd.f32 %v3104_v20, %v6374_v5 }
 0x270   : > { %v5021_v63 = vpop.f32.mrf.mxu1  ;;  %v5061_v6 = vpop.f32.mrf.mxu0  ;;  %v3569_v61 = vadd.f32 %v3568_v51, %v3567_v31  ;;  %v3668_v60 = vadd.f32 %v3667_v55, %v3666_v18  ;;  %v3570_v15 = vsel %vm394_vm2, %v6559_v11, 0.0  ;;  %v3671_v22 = vsel %vm394_vm2, %v3617_v32, 0.0 }
 0x271   : > { %v3618_v23 = vmul.f32 %v6580_v3, %v6580_v3  ;;  %v3479_v21 = vadd.f32 %v3426_v52, %v3157_v44  ;;  %v3162_v54 = vadd.f32 %v5021_v63, %v6297_v29  ;;  %v3620_v59 = vmul.f32 %v6584_v45, %v6584_v45 }
 0x272   : > { %v3117_v4 = vpop.f32.mrf.mxu1  ;;  %v3439_v5 = vpop.f32.mrf.mxu0  ;;  %v3670_v17 = vadd.f32 %v3669_v35, %v3668_v60  ;;  %v3571_v1 = vadd.f32 %v3570_v15, %v3569_v61  ;;  %v3572_v38 = vsel %vm394_vm2, %v6580_v3, 0.0  ;;  %v6602_v30 = vadd.f32 %v6336_v12, %v3481_v56 }
 0x273   : > { %v3160_v50 = vadd.f32 %v3117_v4, %v6376_v33  ;;  %v6605_v7 = vadd.f32 %v6336_v12, %v3479_v21  ;;  %v3673_v33 = vsel %vm394_vm2, %v3618_v23, 0.0  ;;  %v3484_v52 = vadd.f32 %v5061_v6, %v3162_v54 }
 0x274   : > { %v5022_v29 = vpop.f32.mrf.mxu1  ;;  %v3573_v16 = vadd.f32 %v3572_v38, %v3571_v1  ;;  %v3672_v58 = vadd.f32 %v3671_v22, %v3670_v17  ;;  %v5062_v43 = vpop.f32.mrf.mxu0  ;;  %v3576_v32 = vsel %vm394_vm2, %v6584_v45, 0.0  ;;  %v3677_v61 = vsel %vm394_vm2, %v3620_v59, 0.0 }
 0x275   : > { %v3482_v51 = vadd.f32 %v3439_v5, %v3160_v50  ;;  %v3163_v26 = vadd.f32 %v5022_v29, %v6304_v41  ;;  %v3574_v34 = vsel %vm394_vm2, %v6605_v7, 0.0  ;;  %v3619_v20 = vmul.f32 %v6605_v7, %v6605_v7 }
 0x276   : > { %v3120_v18 = vpop.f32.mrf.mxu1  ;;  %v3674_v31 = vadd.f32 %v3673_v33, %v3672_v58  ;;  %v3575_v55 = vadd.f32 %v3574_v34, %v3573_v16  ;;  %v3621_v41 = vmul.f32 %v6602_v30, %v6602_v30  ;;  %v3442_v15 = vpop.f32.mrf.mxu0  ;;  %v3578_v23 = vsel %vm394_vm2, %v6602_v30, 0.0 }
 0x277   : > { %v6616_v56 = vadd.f32 %v6336_v12, %v3482_v51  ;;  %v3675_v44 = vsel %vm394_vm2, %v3619_v20, 0.0  ;;  %v3485_v63 = vadd.f32 %v5062_v43, %v3163_v26  ;;  %v3161_v35 = vadd.f32 %v3120_v18, %v2839_v36 }
 0x278   : > { %v3577_v60 = vadd.f32 %v3576_v32, %v3575_v55  ;;  %v3676_v6 = vadd.f32 %v3675_v44, %v3674_v31  ;;  %v6625_v21 = vadd.f32 %v6336_v12, %v3484_v52  ;;  %v3679_v17 = vsel %vm394_vm2, %v3621_v41, 0.0 }
 0x279   : > { %v3622_v54 = vmul.f32 %v6616_v56, %v6616_v56  ;;  %v3483_v4 = vadd.f32 %v3442_v15, %v3161_v35  ;;  %v3580_v36 = vsel %vm394_vm2, %v6616_v56, 0.0  ;;  %v6633_v1 = vadd.f32 %v6336_v12, %v3485_v63 }
 0x27a   : > { %v3678_v5 = vadd.f32 %v3677_v61, %v3676_v6  ;;  %v3579_v22 = vadd.f32 %v3578_v23, %v3577_v60  ;;  %v3624_v29 = vmul.f32 %v6625_v21, %v6625_v21  ;;  %v3584_v33 = vsel %vm394_vm2, %v6625_v21, 0.0 }
 0x27b   : > { %v6636_v50 = vadd.f32 %v6336_v12, %v3483_v4  ;;  %v3681_v16 = vsel %vm394_vm2, %v3622_v54, 0.0  ;;  %v3625_v12 = vmul.f32 %v6633_v1, %v6633_v1  ;;  %v3586_v32 = vsel %vm394_vm2, %v6633_v1, 0.0 }
 0x27c   : > { %v3581_v59 = vadd.f32 %v3580_v36, %v3579_v22  ;;  %v3680_v38 = vadd.f32 %v3679_v17, %v3678_v5  ;;  %v3685_v18 = vsel %vm394_vm2, %v3624_v29, 0.0 }
 0x27d   : > { %v3582_v58 = vsel %vm394_vm2, %v6636_v50, 0.0  ;;  %v3623_v51 = vmul.f32 %v6636_v50, %v6636_v50  ;;  %v3687_v41 = vsel %vm394_vm2, %v3625_v12, 0.0 }
 0x27e   : > { %v3682_v26 = vadd.f32 %v3681_v16, %v3680_v38  ;;  %v3583_v43 = vadd.f32 %v3582_v58, %v3581_v59  ;;  %v3706_v58 = vlaneseq }
 0x27f   : > { %v3683_v34 = vsel %vm394_vm2, %v3623_v51, 0.0 }
 0x280   : > { %v3585_v20 = vadd.f32 %v3584_v33, %v3583_v43  ;;  %v3684_v52 = vadd.f32 %v3683_v34, %v3682_v26  ;;  %v3707_v51 = vshrl.u32 %v3706_v58, 7  ;;  %v3701_v26 = vld [vmem:[%s6865_s4] sm:$0x1] }
 0x281   : > { %v3703_v34 = vld [vmem:[%s6866_s5] sm:$0x1] }
 0x282   : > { %v3587_v31 = vadd.f32 %v3586_v32, %v3585_v20  ;;  %v3686_v55 = vadd.f32 %v3685_v18, %v3684_v52  ;;  %v3708_v43 = vsub.s32 0, %v3707_v51 }
 0x284   : > { %v3588_v44 = vrot.slane %v3587_v31, 4  ;;  %v3688_v63 = vadd.f32 %v3687_v41, %v3686_v55 }
 0x286   : > { %v3589_v35 = vadd.f32 %v3588_v44, %v3587_v31  ;;  %v3689_v61 = vrot.slane %v3688_v63, 4 }
 0x288   : > { %v3590_v60 = vrot.slane %v3589_v35, 2  ;;  %v3690_v6 = vadd.f32 %v3689_v61, %v3688_v63 }
 0x28a   : > { %v3591_v15 = vadd.f32 %v3590_v60, %v3589_v35  ;;  %v3691_v23 = vrot.slane %v3690_v6, 2 }
 0x28c   : > { %v3592_v54 = vrot.slane %v3591_v15, 1  ;;  %v3692_v4 = vadd.f32 %v3691_v23, %v3690_v6 }
 0x28e   : > { %v3593_v5 = vadd.f32 %v3592_v54, %v3591_v15  ;;  %v3693_v22 = vrot.slane %v3692_v4, 1 }
 0x290   : > { %v3694_v17 = vadd.f32 %v3693_v22, %v3692_v4  ;;  %v3695_v36 = vmul.f32 0.00390625, %v3593_v5 }
 0x292   : > { %v3696_v59 = vmul.f32 0.00390625, %v3694_v17  ;;  %v3697_v38 = vmul.f32 %v3695_v36, %v3695_v36 }
 0x294   : > { %v3698_v29 = vsub.f32 %v3696_v59, %v3697_v38 }
 0x296   : > { %v3699_v16 = vadd.f32 1e-05, %v3698_v29 }
 0x298   : > { %5197 = vrsqrt.f32 %v3699_v16 }
 0x2a5   : > { %v5198_v33 = vpop.eup %5197 }
 0x2a6   : > { %v3702_v12 = vmul.f32 %v5198_v33, %v3701_v26 }
 0x2a8   : > { %v3704_v20 = vmul.f32 %v3702_v12, %v3695_v36  ;;  %v3709_v52 = vrot.slane %v3702_v12, %v3708_v43 }
 0x2aa   : > { %v3705_v18 = vsub.f32 %v3703_v34, %v3704_v20  ;;  %v3710_v32 = vmul.f32 %v3709_v52, %v6346_v19  ;;  %v3711_v31 = vmul.f32 %v3709_v52, %v6381_v53  ;;  %v3712_v55 = vmul.f32 %v3709_v52, %v6358_v46 }
 0x2ab   : > { %v3713_v41 = vmul.f32 %v3709_v52, %v6364_v8  ;;  %v3714_v44 = vmul.f32 %v3709_v52, %v6398_v40  ;;  %v3715_v63 = vmul.f32 %v3709_v52, %v6423_v13  ;;  %v3716_v35 = vmul.f32 %v3709_v52, %v6405_v9 }
 0x2ac   : > { %v3717_v61 = vmul.f32 %v3709_v52, %v6413_v49  ;;  %v3718_v60 = vmul.f32 %v3709_v52, %v6434_v39  ;;  %v3719_v6 = vmul.f32 %v3709_v52, %v6459_v25  ;;  %v3720_v19 = vmul.f32 %v3709_v52, %v6440_v47 }
 0x2ad   : > { %v3721_v53 = vmul.f32 %v3709_v52, %v6449_v0  ;;  %v3722_v46 = vmul.f32 %v3709_v52, %v6470_v42  ;;  %v3723_v8 = vmul.f32 %v3709_v52, %v6495_v62  ;;  %v3724_v40 = vmul.f32 %v3709_v52, %v6476_v37 }
 0x2ae   : > { %v3725_v13 = vmul.f32 %v3709_v52, %v6485_v10  ;;  %v3726_v9 = vmul.f32 %v3709_v52, %v6506_v27  ;;  %v3733_v49 = vmul.f32 %v3709_v52, %v6559_v11  ;;  %v3734_v39 = vmul.f32 %v3709_v52, %v6580_v3 }
 0x2af   : > { %v3735_v25 = vmul.f32 %v3709_v52, %v6605_v7  ;;  %v3736_v47 = vmul.f32 %v3709_v52, %v6584_v45  ;;  %v3737_v0 = vmul.f32 %v3709_v52, %v6602_v30  ;;  %v3738_v42 = vmul.f32 %v3709_v52, %v6616_v56 }
 0x2b0   : > { %v3739_v62 = vmul.f32 %v3709_v52, %v6636_v50  ;;  %v3740_v37 = vmul.f32 %v3709_v52, %v6625_v21  ;;  %v3727_v10 = vmul.f32 %v3709_v52, %v6531_v14  ;;  %v3728_v27 = vmul.f32 %v3709_v52, %v6512_v48 }
 0x2b1   : > { %v3741_v11 = vmul.f32 %v3709_v52, %v6633_v1  ;;  %v3746_v15 = vrot.slane %v3705_v18, %v3708_v43  ;;  %v3729_v3 = vmul.f32 %v3709_v52, %v6521_v2  ;;  %v3730_v7 = vmul.f32 %v3709_v52, %v6542_v57 }
 0x2b2   : > { %v3731_v45 = vmul.f32 %v3709_v52, %v6567_v28  ;;  %v3732_v30 = vmul.f32 %v3709_v52, %v6548_v24 }
 0x2b3   : > { %v6692_v56 = vadd.f32 %v3746_v15, %v3710_v32  ;;  %v6694_v50 = vadd.f32 %v3746_v15, %v3711_v31  ;;  %v6696_v21 = vadd.f32 %v3746_v15, %v3712_v55  ;;  %v6698_v14 = vadd.f32 %v3746_v15, %v3713_v41 }
 0x2b4   : > { %v6700_v48 = vadd.f32 %v3746_v15, %v3714_v44  ;;  %v6702_v1 = vadd.f32 %v3746_v15, %v3715_v63  ;;  %v6704_v23 = vadd.f32 %v3746_v15, %v3716_v35  ;;  %v6706_v2 = vadd.f32 %v3746_v15, %v3717_v61 }
 0x2b5   : > { %v6708_v57 = vadd.f32 %v3746_v15, %v3718_v60  ;;  %v6710_v28 = vadd.f32 %v3746_v15, %v3719_v6  ;;  %v6712_v24 = vadd.f32 %v3746_v15, %v3720_v19  ;;  %v6714_v54 = vadd.f32 %v3746_v15, %v3721_v53 }
 0x2b6   : > { %v6716_v4 = vadd.f32 %v3746_v15, %v3722_v46  ;;  %v6718_v5 = vadd.f32 %v3746_v15, %v3723_v8  ;;  %v6720_v22 = vadd.f32 %v3746_v15, %v3724_v40  ;;  %v6722_v17 = vadd.f32 %v3746_v15, %v3725_v13 }
 0x2b7   : > { %v6724_v36 = vadd.f32 %v3746_v15, %v3726_v9  ;;  %v6726_v59 = vadd.f32 %v3746_v15, %v3727_v10  ;;  %v6728_v38 = vadd.f32 %v3746_v15, %v3728_v27  ;;  %v6730_v29 = vadd.f32 %v3746_v15, %v3729_v3 }
 0x2b8   : > { %v6732_v16 = vadd.f32 %v3746_v15, %v3730_v7  ;;  %v6734_v58 = vadd.f32 %v3746_v15, %v3731_v45  ;;  %v6736_v51 = vadd.f32 %v3746_v15, %v3732_v30  ;;  %v6738_v26 = vadd.f32 %v3746_v15, %v3733_v49 }
 0x2b9   : > { %v6740_v43 = vadd.f32 %v3746_v15, %v3734_v39  ;;  %v6742_v33 = vadd.f32 %v3746_v15, %v3735_v25  ;;  %v6744_v12 = vadd.f32 %v3746_v15, %v3736_v47  ;;  %v6746_v34 = vadd.f32 %v3746_v15, %v3737_v0 }
 0x2ba   : > { %v6748_v20 = vadd.f32 %v3746_v15, %v3738_v42  ;;  %v6750_v52 = vadd.f32 %v3746_v15, %v3739_v62  ;;  %v6752_v18 = vadd.f32 %v3746_v15, %v3740_v37  ;;  %v6754_v32 = vadd.f32 %v3746_v15, %v3741_v11 }
 0x2bb   : > { %v3780_v31 = vmax.f32 %v6692_v56, 0.0  ;;  %v3781_v55 = vmax.f32 %v6694_v50, 0.0  ;;  %v3782_v41 = vmax.f32 %v6696_v21, 0.0  ;;  %v3783_v44 = vmax.f32 %v6698_v14, 0.0 }
 0x2bc   : > { %v3784_v63 = vmax.f32 %v6700_v48, 0.0  ;;  %v3785_v35 = vmax.f32 %v6702_v1, 0.0  ;;  %v3786_v61 = vmax.f32 %v6704_v23, 0.0  ;;  %v3787_v60 = vmax.f32 %v6706_v2, 0.0 }
 0x2bd   : > { %v3788_v6 = vmax.f32 %v6708_v57, 0.0  ;;  %v3789_v19 = vmax.f32 %v6710_v28, 0.0  ;;  %v3790_v53 = vmax.f32 %v6712_v24, 0.0  ;;  %v3791_v46 = vmax.f32 %v6714_v54, 0.0 }
 0x2be   : > { %v3792_v8 = vmax.f32 %v6716_v4, 0.0  ;;  %v3793_v40 = vmax.f32 %v6718_v5, 0.0  ;;  %v3794_v13 = vmax.f32 %v6720_v22, 0.0  ;;  %v3795_v9 = vmax.f32 %v6722_v17, 0.0 }
 0x2bf   : > { %v3796_v49 = vmax.f32 %v6724_v36, 0.0  ;;  %v3797_v39 = vmax.f32 %v6726_v59, 0.0  ;;  %v3798_v25 = vmax.f32 %v6728_v38, 0.0  ;;  %v3799_v47 = vmax.f32 %v6730_v29, 0.0 }
 0x2c0   : > { %v3800_v0 = vmax.f32 %v6732_v16, 0.0  ;;  %v3801_v42 = vmax.f32 %v6734_v58, 0.0  ;;  %v3802_v62 = vmax.f32 %v6736_v51, 0.0  ;;  %v3803_v37 = vmax.f32 %v6738_v26, 0.0 }
 0x2c1   : > { %v3804_v10 = vmax.f32 %v6740_v43, 0.0  ;;  %v3805_v27 = vmax.f32 %v6742_v33, 0.0  ;;  %v3806_v11 = vmax.f32 %v6744_v12, 0.0  ;;  %v3807_v15 = vmax.f32 %v6746_v34, 0.0 }
 0x2c2   : > { %v3808_v3 = vmax.f32 %v6748_v20, 0.0  ;;  %v3809_v7 = vmax.f32 %v6750_v52, 0.0  ;;  %v3810_v45 = vmax.f32 %v6752_v18, 0.0  ;;  %v3811_v30 = vmax.f32 %v6754_v32, 0.0 }
 0x2c3   : > { %v4333_v56 = vpack.c.bf16 %v3780_v31, %v3780_v31  ;;  %v4334_v50 = vpack.c.bf16 %v3781_v55, %v3781_v55  ;;  %v4335_v21 = vpack.c.bf16 %v3782_v41, %v3782_v41  ;;  %v4336_v14 = vpack.c.bf16 %v3783_v44, %v3783_v44 }
 0x2c4   : > { %v4337_v48 = vpack.c.bf16 %v3784_v63, %v3784_v63  ;;  %v4338_v1 = vpack.c.bf16 %v3785_v35, %v3785_v35  ;;  %v4339_v23 = vpack.c.bf16 %v3786_v61, %v3786_v61  ;;  %v4340_v2 = vpack.c.bf16 %v3787_v60, %v3787_v60 }
 0x2c5   : > { %v4341_v57 = vpack.c.bf16 %v3788_v6, %v3788_v6  ;;  %v4342_v28 = vpack.c.bf16 %v3789_v19, %v3789_v19  ;;  %v4343_v24 = vpack.c.bf16 %v3790_v53, %v3790_v53  ;;  %v4344_v54 = vpack.c.bf16 %v3791_v46, %v3791_v46  ;;  %3941 = vst.msk [vmem:[%s6788_s22] sm:$0xf] %vm3940_vm4, %v4333_v56 }
 0x2c6   : > { %3942 = vst.msk [vmem:[%s6788_s22 + $0x4] sm:$0xf] %vm3940_vm4, %v4334_v50  ;;  %3943 = vst.msk [vmem:[%s6788_s22 + $0x8] sm:$0xf] %vm3940_vm4, %v4335_v21  ;;  %v4345_v4 = vpack.c.bf16 %v3792_v8, %v3792_v8  ;;  %v4346_v5 = vpack.c.bf16 %v3793_v40, %v3793_v40  ;;  %v4347_v22 = vpack.c.bf16 %v3794_v13, %v3794_v13 }
 0x2c7   : > { %3944 = vst.msk [vmem:[%s6788_s22 + $0xc] sm:$0xf] %vm3940_vm4, %v4336_v14  ;;  %v4348_v17 = vpack.c.bf16 %v3795_v9, %v3795_v9  ;;  %3945 = vst.msk [vmem:[%s6788_s22 + $0x10] sm:$0xf] %vm3940_vm4, %v4337_v48  ;;  %v4349_v36 = vpack.c.bf16 %v3796_v49, %v3796_v49  ;;  %v4350_v59 = vpack.c.bf16 %v3797_v39, %v3797_v39 }
 0x2c8   : > { %3946 = vst.msk [vmem:[%s6788_s22 + $0x14] sm:$0xf] %vm3940_vm4, %v4338_v1  ;;  %3947 = vst.msk [vmem:[%s6788_s22 + $0x18] sm:$0xf] %vm3940_vm4, %v4339_v23  ;;  %v4351_v38 = vpack.c.bf16 %v3798_v25, %v3798_v25  ;;  %v4352_v29 = vpack.c.bf16 %v3799_v47, %v3799_v47  ;;  %v4353_v16 = vpack.c.bf16 %v3800_v0, %v3800_v0 }
 0x2c9   : > { %3948 = vst.msk [vmem:[%s6788_s22 + $0x1c] sm:$0xf] %vm3940_vm4, %v4340_v2  ;;  %3949 = vst.msk [vmem:[%s6788_s22 + $0x20] sm:$0xf] %vm3940_vm4, %v4341_v57  ;;  %v4354_v58 = vpack.c.bf16 %v3801_v42, %v3801_v42  ;;  %v4355_v51 = vpack.c.bf16 %v3802_v62, %v3802_v62  ;;  %v4356_v26 = vpack.c.bf16 %v3803_v37, %v3803_v37 }
 0x2ca   : > { %3950 = vst.msk [vmem:[%s6788_s22 + $0x24] sm:$0xf] %vm3940_vm4, %v4342_v28  ;;  %3951 = vst.msk [vmem:[%s6788_s22 + $0x28] sm:$0xf] %vm3940_vm4, %v4343_v24  ;;  %v4357_v43 = vpack.c.bf16 %v3804_v10, %v3804_v10  ;;  %v4358_v33 = vpack.c.bf16 %v3805_v27, %v3805_v27  ;;  %v4359_v12 = vpack.c.bf16 %v3806_v11, %v3806_v11 }
 0x2cb   : > { %3952 = vst.msk [vmem:[%s6788_s22 + $0x2c] sm:$0xf] %vm3940_vm4, %v4344_v54  ;;  %3953 = vst.msk [vmem:[%s6788_s22 + $0x30] sm:$0xf] %vm3940_vm4, %v4345_v4  ;;  %v4360_v34 = vpack.c.bf16 %v3807_v15, %v3807_v15  ;;  %v4361_v20 = vpack.c.bf16 %v3808_v3, %v3808_v3  ;;  %v4362_v52 = vpack.c.bf16 %v3809_v7, %v3809_v7 }
 0x2cc   : > { %3954 = vst.msk [vmem:[%s6788_s22 + $0x34] sm:$0xf] %vm3940_vm4, %v4346_v5  ;;  %3955 = vst.msk [vmem:[%s6788_s22 + $0x38] sm:$0xf] %vm3940_vm4, %v4347_v22  ;;  %v4363_v18 = vpack.c.bf16 %v3810_v45, %v3810_v45  ;;  %v4364_v32 = vpack.c.bf16 %v3811_v30, %v3811_v30 }
 0x2cd   : > { %3956 = vst.msk [vmem:[%s6788_s22 + $0x3c] sm:$0xf] %vm3940_vm4, %v4348_v17  ;;  %3957 = vst.msk [vmem:[%s6788_s22 + $0x40] sm:$0xf] %vm3940_vm4, %v4349_v36 }
 0x2ce   : > { %3958 = vst.msk [vmem:[%s6788_s22 + $0x44] sm:$0xf] %vm3940_vm4, %v4350_v59  ;;  %3959 = vst.msk [vmem:[%s6788_s22 + $0x48] sm:$0xf] %vm3940_vm4, %v4351_v38 }
 0x2cf   : > { %3960 = vst.msk [vmem:[%s6788_s22 + $0x4c] sm:$0xf] %vm3940_vm4, %v4352_v29  ;;  %3961 = vst.msk [vmem:[%s6788_s22 + $0x50] sm:$0xf] %vm3940_vm4, %v4353_v16 }
 0x2d0   : > { %3962 = vst.msk [vmem:[%s6788_s22 + $0x54] sm:$0xf] %vm3940_vm4, %v4354_v58  ;;  %3963 = vst.msk [vmem:[%s6788_s22 + $0x58] sm:$0xf] %vm3940_vm4, %v4355_v51 }
 0x2d1   : > { %3964 = vst.msk [vmem:[%s6788_s22 + $0x5c] sm:$0xf] %vm3940_vm4, %v4356_v26  ;;  %3965 = vst.msk [vmem:[%s6788_s22 + $0x60] sm:$0xf] %vm3940_vm4, %v4357_v43 }
 0x2d2   : > { %3966 = vst.msk [vmem:[%s6788_s22 + $0x64] sm:$0xf] %vm3940_vm4, %v4358_v33  ;;  %3967 = vst.msk [vmem:[%s6788_s22 + $0x68] sm:$0xf] %vm3940_vm4, %v4359_v12 }
 0x2d3   : > { %3968 = vst.msk [vmem:[%s6788_s22 + $0x6c] sm:$0xf] %vm3940_vm4, %v4360_v34  ;;  %3969 = vst.msk [vmem:[%s6788_s22 + $0x70] sm:$0xf] %vm3940_vm4, %v4361_v20 }
 0x2d4   : > { %3970 = vst.msk [vmem:[%s6788_s22 + $0x74] sm:$0xf] %vm3940_vm4, %v4362_v52  ;;  %3971 = vst.msk [vmem:[%s6788_s22 + $0x78] sm:$0xf] %vm3940_vm4, %v4363_v18 }
 0x2d5   : > { %3972 = vst.msk [vmem:[%s6788_s22 + $0x7c] sm:$0xf] %vm3940_vm4, %v4364_v32 }
 0x2d6 PF: > { %s16_s21 = sadd.s32 1, %s5205_s21  }
 0x2d7   : > { %p13_p4 = scmp.ge.s32.totalorder %s16_s21, 4  }
 0x2d9   :  { %15 = sbr.rel (!%p13_p4) target bundleno = 1 (0x1), region = 87 }

// kernel: up_forward.5
= control target key start
LH: loop header
LB: loop body
LE: loop exit
PB: predicated region body
PF: predicated region fallthrough
CT: control target
= control target key end

     0   :  { %10 = vsyncpa [#allocation4], 0  ;;  %s5934_s0 = inlined_call_operand.vmem [shape: bf16[2,16,16,32], index: 0, kind: input, shape index: {}]   ;;  %s5935_s1 = inlined_call_operand.vmem [shape: bf16[9,32,32], index: 1, kind: input, shape index: {}]   ;;  %s5936_s2 = inlined_call_operand.vmem [shape: f32[1,32], index: 2, kind: input, shape index: {}]   ;;  %s5937_s3 = inlined_call_operand.vmem [shape: f32[1,32], index: 3, kind: input, shape index: {}]   ;;  %s5938_s4 = inlined_call_operand.vmem [shape: f32[1,32], index: 4, kind: input, shape index: {}]   ;;  %s5939_s5 = inlined_call_operand.hbm [shape: f32[2,256,32], index: 5, kind: output, shape index: {}]  }
   0x1   :  { %12 = vsyncpa [#allocation4 + $0x1], 0  ;;  %s4437_s18 = smov 0   ;;  %s4439_s19 = smov 0  }
   0x2   :  { %s4441_s20 = smov 0   ;;  %s4443_s21 = smov 0  }
   0x3 LB: > { %s4458_s22 = sadd.s32 4294967295, %s4401_s21   ;;  %s3501_s23 = sadd.s32 4294967294, %s4401_s21   ;;  %s4401_s21 = sphi %s4443_s21, %s5965_s21   ;;  %s4397_s20 = sphi %s4441_s20, %s5964_s20   ;;  %s4393_s19 = sphi %s4439_s19, %s5963_s19   ;;  %s4389_s18 = sphi %s4437_s18, %s5962_s18  }
   0x4   : > { %s4462_s24 = sadd.s32 1, %s4401_s21   ;;  %s135_s25 = sadd.s32 1, %s4397_s20 }
   0x5   : > { %s132_s26 = ssub.s32 %s4401_s21, %s4462_s24  ;;  %p145_p0 = scmp.ne.s32.totalorder %s4397_s20, %s4393_s19 }
   0x6   : > { %p133_p1 = scmp.eq.s32.totalorder %s132_s26, 0  ;;  %p146_p2 = scmp.eq.s32.totalorder %s4458_s22, 1 }
   0x7   : > { %p151_p3 = scmp.ne.s32.totalorder %s4393_s19, %s4389_s18  ;;  %p152_p4 = scmp.eq.s32.totalorder %s3501_s23, 1 }
   0x8   : > { %s4473_s27 = scalar_select %p133_p1, %s4397_s20, %s135_s25  }
   0x9   : > { %p4475_p5 = por %p146_p2, %p145_p0  ;;  %p4479_p6 = por %p152_p4, %p151_p3 }
   0xa   : > { %p3504_p7 = scmp.ge.s32.totalorder %s4401_s21, 1  ;;  %p190_p8 = scmp.lt.s32.totalorder %s4401_s21, 3 }
   0xc   : > { %p191_p9 = pnand %p3504_p7, %p190_p8 }
   0xe   : > { %194 = sbr.rel (%p191_p9) target bundleno = 636 (0x27c), region = 40 }
  0x13   : > { %v4321_v0 = vld [vmem:[%s5935_s1 + $0x18] sm:$0xff]   ;;  %vm224_vm0 = vcmask 261120   ;;  %v4491_v1 = vld [vmem:[%s5935_s1 + $0x10] sm:$0xff]   ;;  %v4403_v2 = vmov 0.0   ;;  %vm227_vm1 = vcmask 254976   ;;  %p218_p10 = scmp.lt.s32.totalorder %s4458_s22, 1 }
  0x14   : > { %3951 = vmatprep.subr.bf16.mxu0 %v4321_v0  ;;  %4275 = vmatprep.subr.bf16.mxu1 %v4321_v0  ;;  %225 = vst.msk [vmem:[#allocation2] sm:$0xff] %vm224_vm0, %v4403_v2  ;;  %226 = vst.msk [vmem:[#allocation2 + $0x8] sm:$0xff] %vm224_vm0, %v4403_v2  ;;  %v4551_v3 = vld [vmem:[%s5935_s1 + $0x8] sm:$0xff]   ;;  %s215_s26 = sand.u32 1, %s4393_s19   ;;  %s3709_s7 = sshll.u32 %s4458_s22, 12 }
  0x15   : > { %229 = vst.msk [vmem:[#allocation2 + $0x18] sm:$0xff] %vm224_vm0, %v4403_v2  ;;  %230 = vst.msk [vmem:[#allocation2 + $0x20] sm:$0xff] %vm224_vm0, %v4403_v2  ;;  %3952 = vmatpush3.bf16.msra.mxu0 %v4321_v0  ;;  %4277 = vmatpush3.bf16.msra.mxu1 %v4321_v0  ;;  %s219_s11 = scalar_select %p218_p10, %s4458_s22, 1  ;;  %v4561_v4 = vld [vmem:[%s5935_s1 + $0x28] sm:$0xff]   ;;  %v4325_v0 = vld [vmem:[%s5935_s1] sm:$0xff]  }
  0x16   : > { %232 = vst.msk [vmem:[#allocation2 + $0x30] sm:$0xff] %vm224_vm0, %v4403_v2  ;;  %233 = vst.msk [vmem:[#allocation2 + $0x38] sm:$0xff] %vm224_vm0, %v4403_v2  ;;  %3953 = vmatprep.subr.bf16.mxu0 %v4491_v1  ;;  %4276 = vmatprep.subr.bf16.mxu1 %v4491_v1  ;;  %s3505_s30 = sshll.u32 %s215_s26, 8  ;;  %s5866_s10 = scalar_lea.hbm %s5939_s5, %s3709_s7 }
  0x17   : > { %235 = vst.msk [vmem:[#allocation2 + $0x48] sm:$0xff] %vm224_vm0, %v4403_v2  ;;  %236 = vst.msk [vmem:[#allocation2 + $0x50] sm:$0xff] %vm224_vm0, %v4403_v2  ;;  %s3708_s14 = sshll.u32 %s219_s11, 7  ;;  %s5771_s6 = scalar_lea.vmem [#allocation3], %s3505_s30 }
  0x18   : > { %238 = vst.msk [vmem:[#allocation2 + $0x60] sm:$0xff] %vm224_vm0, %v4403_v2  ;;  %239 = vst.msk [vmem:[#allocation2 + $0x68] sm:$0xff] %vm224_vm0, %v4403_v2  ;;  %s4568_s17 = scalar_lea.vmem %s5934_s0, %s3708_s14  ;;  %s3439_s8 = sshll.u32 %s5771_s6, 4  ;;  %s5868_s8 = int_to_ptr.vmem [resolvable:$true] %s3439_s8 }
  0x19   : > { %241 = vst.msk [vmem:[#allocation2 + $0x78] sm:$0xff] %vm224_vm0, %v4403_v2  ;;  %242 = vst.msk [vmem:[#allocation2 + $0x80] sm:$0xff] %vm224_vm0, %v4403_v2  ;;  %3954 = vmatpush3.bf16.msra.mxu0 %v4491_v1  ;;  %4278 = vmatpush3.bf16.msra.mxu1 %v4491_v1  ;;  %v3711_v5 = vld [vmem:[%s4568_s17] sm:$0xff]   ;;  %v3780_v6 = vld [vmem:[%s4568_s17 + $0x38] sm:$0xff]   ;;  %s5894_s11 = scalar_lea.sflag [#allocation4], %s215_s26  ;;  %s4341_s12 = scalar_lea.vmem %s5868_s8, 4096 }
  0x1a   : > { %244 = vst.msk [vmem:[#allocation2 + $0x90] sm:$0xff] %vm224_vm0, %v4403_v2  ;;  %245 = vst.msk [vmem:[#allocation2 + $0x98] sm:$0xff] %vm224_vm0, %v4403_v2  ;;  %3987 = vmatprep.subr.bf16.mxu1 %v4551_v3  ;;  %v3781_v7 = vld [vmem:[%s4568_s17 + $0x40] sm:$0xff]   ;;  %4023 = vmatprep.subr.bf16.mxu0 %v4561_v4  ;;  %v3712_v9 = vunpack.c.l.bf16 %v3711_v5  ;;  %v3713_v10 = vunpack.c.h.bf16 %v3711_v5  ;;  %v3740_v11 = vunpack.c.l.bf16 %v3780_v6  ;;  %v3741_v12 = vunpack.c.h.bf16 %v3780_v6  ;;  %v3774_v13 = vld [vmem:[%s4568_s17 + $0x8] sm:$0xff]   ;;  %p4342_p11 = scmp.ne.s32.totalorder %s5868_s8, %s4341_s12  ;;  %s4404_s13 = smov [#allocation3]  }
  0x1b   : > { %247 = vst.msk [vmem:[#allocation2 + $0xa8] sm:$0xff] %vm224_vm0, %v4403_v2  ;;  %248 = vst.msk [vmem:[#allocation2 + $0xb0] sm:$0xff] %vm224_vm0, %v4403_v2  ;;  %v429_v8 = vld [vmem:[#allocation2 + $0x1] sm:$0xff]  ;;  %v3775_v14 = vld [vmem:[%s4568_s17 + $0x10] sm:$0xff]   ;;  %v3744_v16 = vunpack.c.l.bf16 %v3781_v7  ;;  %v3745_v17 = vunpack.c.h.bf16 %v3781_v7  ;;  %v3716_v18 = vunpack.c.l.bf16 %v3774_v13  ;;  %v3717_v19 = vunpack.c.h.bf16 %v3774_v13  ;;  %s4345_s14 = sshll.u32 %s4404_s13, 4  ;;  %s4346_s14 = int_to_ptr.vmem [resolvable:$false] %s4345_s14 }
  0x1c   : > { %250 = vst.msk [vmem:[#allocation2 + $0xc0] sm:$0xff] %vm224_vm0, %v4403_v2  ;;  %251 = vst.msk [vmem:[#allocation2 + $0xc8] sm:$0xff] %vm224_vm0, %v4403_v2  ;;  %v3782_v20 = vld [vmem:[%s4568_s17 + $0x48] sm:$0xff]   ;;  %v3783_v21 = vld [vmem:[%s4568_s17 + $0x50] sm:$0xff]   ;;  %v3720_v23 = vunpack.c.l.bf16 %v3775_v14  ;;  %v3721_v24 = vunpack.c.h.bf16 %v3775_v14  ;;  %p4343_p12 = pnand %p4342_p11, %p4475_p5  ;;  %s4347_s15 = scalar_lea.vmem %s4346_s14, 8192 }
  0x1d   : > { %253 = vst.msk [vmem:[#allocation2 + $0xd8] sm:$0xff] %vm224_vm0, %v4403_v2  ;;  %254 = vst.msk [vmem:[#allocation2 + $0xe0] sm:$0xff] %vm224_vm0, %v4403_v2  ;;  %v3748_v25 = vunpack.c.l.bf16 %v3782_v20  ;;  %v3776_v26 = vld [vmem:[%s4568_s17 + $0x18] sm:$0xff]   ;;  %v3777_v27 = vld [vmem:[%s4568_s17 + $0x20] sm:$0xff]   ;;  %v3749_v29 = vunpack.c.h.bf16 %v3782_v20  ;;  %v3752_v30 = vunpack.c.l.bf16 %v3783_v21  ;;  %v3753_v31 = vunpack.c.h.bf16 %v3783_v21  ;;  %p4348_p0 = scmp.lt.s32.totalorder %s5868_s8, %s4346_s14  ;;  %p4349_p1 = scmp.lt.s32.totalorder %s4347_s15, %s4341_s12 }
  0x1e   : > { %256 = vst.msk [vmem:[#allocation2 + $0xf0] sm:$0xff] %vm224_vm0, %v4403_v2  ;;  %257 = vst.msk [vmem:[#allocation2 + $0xf8] sm:$0xff] %vm224_vm0, %v4403_v2  ;;  %v3784_v28 = vld [vmem:[%s4568_s17 + $0x58] sm:$0xff]   ;;  %v3724_v32 = vunpack.c.l.bf16 %v3776_v26  ;;  %v3785_v33 = vld [vmem:[%s4568_s17 + $0x60] sm:$0xff]   ;;  %v3725_v36 = vunpack.c.h.bf16 %v3776_v26  ;;  %v3728_v37 = vunpack.c.l.bf16 %v3777_v27  ;;  %v3729_v38 = vunpack.c.h.bf16 %v3777_v27  ;;  %p4344_p13 = pneg %p4343_p12 }
  0x1f   : > { %259 = vst.msk [vmem:[#allocation2 + $0x108] sm:$0xff] %vm224_vm0, %v4403_v2  ;;  %260 = vst.msk [vmem:[#allocation2 + $0x110] sm:$0xff] %vm224_vm0, %v4403_v2  ;;  %v3778_v34 = vld [vmem:[%s4568_s17 + $0x28] sm:$0xff]   ;;  %v3779_v35 = vld [vmem:[%s4568_s17 + $0x30] sm:$0xff]   ;;  %v3756_v39 = vunpack.c.l.bf16 %v3784_v28  ;;  %v3757_v42 = vunpack.c.h.bf16 %v3784_v28  ;;  %v3760_v43 = vunpack.c.l.bf16 %v3785_v33  ;;  %v3761_v44 = vunpack.c.h.bf16 %v3785_v33  ;;  %p4350_p2 = por %p4349_p1, %p4348_p0 }
  0x20   : > { %262 = vst.msk [vmem:[#allocation2 + $0x120] sm:$0xff] %vm224_vm0, %v4403_v2  ;;  %263 = vst.msk [vmem:[#allocation2 + $0x128] sm:$0xff] %vm224_vm0, %v4403_v2  ;;  %v3786_v40 = vld [vmem:[%s4568_s17 + $0x68] sm:$0xff]   ;;  %v3787_v41 = vld [vmem:[%s4568_s17 + $0x70] sm:$0xff]   ;;  %v3732_v45 = vunpack.c.l.bf16 %v3778_v34  ;;  %v3733_v46 = vunpack.c.h.bf16 %v3778_v34  ;;  %v3736_v47 = vunpack.c.l.bf16 %v3779_v35  ;;  %v3737_v48 = vunpack.c.h.bf16 %v3779_v35 }
  0x21   : > { %265 = vst.msk [vmem:[#allocation2 + $0x138] sm:$0xff] %vm224_vm0, %v4403_v2  ;;  %266 = vst.msk [vmem:[#allocation2 + $0x140] sm:$0xff] %vm224_vm0, %v4403_v2  ;;  %v3764_v49 = vunpack.c.l.bf16 %v3786_v40  ;;  %v3765_v50 = vunpack.c.h.bf16 %v3786_v40  ;;  %v3768_v51 = vunpack.c.l.bf16 %v3787_v41  ;;  %v3769_v52 = vunpack.c.h.bf16 %v3787_v41  ;;  %v4326_v6 = vld [vmem:[%s5935_s1 + $0x20] sm:$0xff]   ;;  %v378_v40 = vld [vmem:[#allocation2 + $0x8] sm:$0xff]  ;;  %p4351_p3 = pnand %p4350_p2, %p4344_p13 }
  0x22   : > { %268 = vst.msk [vmem:[#allocation2 + $0x150] sm:$0xff] %vm224_vm0, %v4403_v2  ;;  %269 = vst.msk [vmem:[#allocation2 + $0x158] sm:$0xff] %vm224_vm0, %v4403_v2  ;;  %v924_v34 = vld [vmem:[#allocation2 + $0x2] sm:$0xff] }
  0x23   : > { %271 = vst.msk [vmem:[#allocation2 + $0x168] sm:$0xff] %vm224_vm0, %v4403_v2  ;;  %272 = vst.msk [vmem:[#allocation2 + $0x170] sm:$0xff] %vm224_vm0, %v4403_v2 }
  0x24   : > { %274 = vst.msk [vmem:[#allocation2 + $0x180] sm:$0xff] %vm224_vm0, %v4403_v2  ;;  %275 = vst.msk [vmem:[#allocation2 + $0x188] sm:$0xff] %vm224_vm0, %v4403_v2 }
  0x25   : > { %277 = vst.msk [vmem:[#allocation2 + $0x198] sm:$0xff] %vm224_vm0, %v4403_v2  ;;  %278 = vst.msk [vmem:[#allocation2 + $0x1a0] sm:$0xff] %vm224_vm0, %v4403_v2 }
  0x26   : > { %228 = vst.msk [vmem:[#allocation2 + $0x10] sm:$0x3] %vm227_vm1, %v4403_v2  ;;  %231 = vst.msk [vmem:[#allocation2 + $0x28] sm:$0x3] %vm227_vm1, %v4403_v2 }
  0x27   : > { %234 = vst.msk [vmem:[#allocation2 + $0x40] sm:$0x3] %vm227_vm1, %v4403_v2  ;;  %237 = vst.msk [vmem:[#allocation2 + $0x58] sm:$0x3] %vm227_vm1, %v4403_v2 }
  0x28   : > { %240 = vst.msk [vmem:[#allocation2 + $0x70] sm:$0x3] %vm227_vm1, %v4403_v2  ;;  %243 = vst.msk [vmem:[#allocation2 + $0x88] sm:$0x3] %vm227_vm1, %v4403_v2 }
  0x29   : > { %246 = vst.msk [vmem:[#allocation2 + $0xa0] sm:$0x3] %vm227_vm1, %v4403_v2  ;;  %249 = vst.msk [vmem:[#allocation2 + $0xb8] sm:$0x3] %vm227_vm1, %v4403_v2 }
  0x2a   : > { %252 = vst.msk [vmem:[#allocation2 + $0xd0] sm:$0x3] %vm227_vm1, %v4403_v2  ;;  %255 = vst.msk [vmem:[#allocation2 + $0xe8] sm:$0x3] %vm227_vm1, %v4403_v2 }
  0x2b   : > { %258 = vst.msk [vmem:[#allocation2 + $0x100] sm:$0x3] %vm227_vm1, %v4403_v2  ;;  %261 = vst.msk [vmem:[#allocation2 + $0x118] sm:$0x3] %vm227_vm1, %v4403_v2 }
  0x2c   : > { %264 = vst.msk [vmem:[#allocation2 + $0x130] sm:$0x3] %vm227_vm1, %v4403_v2  ;;  %267 = vst.msk [vmem:[#allocation2 + $0x148] sm:$0x3] %vm227_vm1, %v4403_v2 }
  0x2d   : > { %270 = vst.msk [vmem:[#allocation2 + $0x160] sm:$0x3] %vm227_vm1, %v4403_v2  ;;  %273 = vst.msk [vmem:[#allocation2 + $0x178] sm:$0x3] %vm227_vm1, %v4403_v2  ;;  %v430_v15 = vld [vmem:[#allocation2 + $0x9] sm:$0xff] }
  0x2e   : > { %276 = vst.msk [vmem:[#allocation2 + $0x190] sm:$0x3] %vm227_vm1, %v4403_v2  ;;  %279 = vst.msk [vmem:[#allocation2 + $0x1a8] sm:$0x3] %vm227_vm1, %v4403_v2  ;;  %v461_v22 = vpack.c.bf16 %v430_v15, %v429_v8  ;;  %v925_v35 = vld [vmem:[#allocation2 + $0xa] sm:$0xff] }
  0x2f   : > { %345 = vst.msk [vmem:[#allocation2 + $0x19] sm:$0xff] %vm224_vm0, %v3712_v9  ;;  %346 = vst.msk [vmem:[#allocation2 + $0x21] sm:$0xff] %vm224_vm0, %v3713_v10  ;;  %v956_v41 = vpack.c.bf16 %v925_v35, %v924_v34 }
  0x30   : > { %359 = vst.msk [vmem:[#allocation2 + $0xc1] sm:$0xff] %vm224_vm0, %v3740_v11  ;;  %360 = vst.msk [vmem:[#allocation2 + $0xc9] sm:$0xff] %vm224_vm0, %v3741_v12  ;;  %3955 = vmatprep.mubr.msk.bf16.mxu0 %vm224_vm0, %v461_v22  ;;  %v4646_v12 = vld [vmem:[%s5935_s1 + $0x48] sm:$0xff]  }
  0x31   : > { %361 = vst.msk [vmem:[#allocation2 + $0xd9] sm:$0xff] %vm224_vm0, %v3744_v16  ;;  %362 = vst.msk [vmem:[#allocation2 + $0xe1] sm:$0xff] %vm224_vm0, %v3745_v17  ;;  %v4656_v17 = vld [vmem:[%s5935_s1 + $0x38] sm:$0xff]  }
  0x32   : > { %347 = vst.msk [vmem:[#allocation2 + $0x31] sm:$0xff] %vm224_vm0, %v3716_v18  ;;  %348 = vst.msk [vmem:[#allocation2 + $0x39] sm:$0xff] %vm224_vm0, %v3717_v19 }
  0x33   : > { %349 = vst.msk [vmem:[#allocation2 + $0x49] sm:$0xff] %vm224_vm0, %v3720_v23  ;;  %350 = vst.msk [vmem:[#allocation2 + $0x51] sm:$0xff] %vm224_vm0, %v3721_v24 }
  0x34   : > { %363 = vst.msk [vmem:[#allocation2 + $0xf1] sm:$0xff] %vm224_vm0, %v3748_v25  ;;  %364 = vst.msk [vmem:[#allocation2 + $0xf9] sm:$0xff] %vm224_vm0, %v3749_v29 }
  0x35   : > { %365 = vst.msk [vmem:[#allocation2 + $0x109] sm:$0xff] %vm224_vm0, %v3752_v30  ;;  %366 = vst.msk [vmem:[#allocation2 + $0x111] sm:$0xff] %vm224_vm0, %v3753_v31 }
  0x36   : > { %351 = vst.msk [vmem:[#allocation2 + $0x61] sm:$0xff] %vm224_vm0, %v3724_v32  ;;  %352 = vst.msk [vmem:[#allocation2 + $0x69] sm:$0xff] %vm224_vm0, %v3725_v36  ;;  %v431_v53 = vld [vmem:[#allocation2 + $0x19] sm:$0xff]  ;;  %v432_v54 = vld [vmem:[#allocation2 + $0x21] sm:$0xff] }
  0x37   : > { %353 = vst.msk [vmem:[#allocation2 + $0x79] sm:$0xff] %vm224_vm0, %v3728_v37  ;;  %354 = vst.msk [vmem:[#allocation2 + $0x81] sm:$0xff] %vm224_vm0, %v3729_v38  ;;  %v445_v55 = vld [vmem:[#allocation2 + $0xc1] sm:$0xff]  ;;  %v4618_v56 = vpack.c.bf16 %v432_v54, %v431_v53  ;;  %v446_v57 = vld [vmem:[#allocation2 + $0xc9] sm:$0xff] }
  0x38   : > { %367 = vst.msk [vmem:[#allocation2 + $0x121] sm:$0xff] %vm224_vm0, %v3756_v39  ;;  %368 = vst.msk [vmem:[#allocation2 + $0x129] sm:$0xff] %vm224_vm0, %v3757_v42  ;;  %v447_v58 = vld [vmem:[#allocation2 + $0xd9] sm:$0xff]  ;;  %v448_v59 = vld [vmem:[#allocation2 + $0xe1] sm:$0xff]  ;;  %v4620_v60 = vpack.c.bf16 %v446_v57, %v445_v55 }
  0x39   : > { %369 = vst.msk [vmem:[#allocation2 + $0x139] sm:$0xff] %vm224_vm0, %v3760_v43  ;;  %370 = vst.msk [vmem:[#allocation2 + $0x141] sm:$0xff] %vm224_vm0, %v3761_v44  ;;  %v4622_v61 = vpack.c.bf16 %v448_v59, %v447_v58  ;;  %v433_v62 = vld [vmem:[#allocation2 + $0x31] sm:$0xff]  ;;  %v434_v63 = vld [vmem:[#allocation2 + $0x39] sm:$0xff]  ;;  %3956 = vmatmul.mubr.msk.bf16.vlgmr.msra.gmra.mxu0 %vm224_vm0, %v4618_v56 }
  0x3a   : > { %355 = vst.msk [vmem:[#allocation2 + $0x91] sm:$0xff] %vm224_vm0, %v3732_v45  ;;  %356 = vst.msk [vmem:[#allocation2 + $0x99] sm:$0xff] %vm224_vm0, %v3733_v46  ;;  %v4629_v1 = vpack.c.bf16 %v434_v63, %v433_v62  ;;  %3971 = vmatprep.mubr.msk.bf16.mxu1 %vm224_vm0, %v4620_v60  ;;  %4024 = vmatpush3.bf16.msra.mxu0 %v4561_v4  ;;  %v435_v7 = vld [vmem:[#allocation2 + $0x49] sm:$0xff]  ;;  %v436_v8 = vld [vmem:[#allocation2 + $0x51] sm:$0xff] }
  0x3b   : > { %357 = vst.msk [vmem:[#allocation2 + $0xa9] sm:$0xff] %vm224_vm0, %v3736_v47  ;;  %358 = vst.msk [vmem:[#allocation2 + $0xb1] sm:$0xff] %vm224_vm0, %v3737_v48  ;;  %v449_v2 = vld [vmem:[#allocation2 + $0xf1] sm:$0xff]  ;;  %v450_v5 = vld [vmem:[#allocation2 + $0xf9] sm:$0xff]  ;;  %3972 = vmatmul.mubr.msk.bf16.vlgmr.msra.gmra.mxu1 %vm224_vm0, %v4622_v61  ;;  %v4651_v14 = vpack.c.bf16 %v436_v8, %v435_v7  ;;  %4025 = vmatprep.subr.bf16.mxu0 %v4326_v6 }
  0x3c   : > { %371 = vst.msk [vmem:[#allocation2 + $0x151] sm:$0xff] %vm224_vm0, %v3764_v49  ;;  %372 = vst.msk [vmem:[#allocation2 + $0x159] sm:$0xff] %vm224_vm0, %v3765_v50  ;;  %v4637_v9 = vpack.c.bf16 %v450_v5, %v449_v2  ;;  %3959 = vmatprep.mubr.msk.bf16.mxu0 %vm224_vm0, %v4629_v1  ;;  %3988 = vmatpush3.bf16.msra.mxu1 %v4551_v3  ;;  %v451_v4 = vld [vmem:[#allocation2 + $0x109] sm:$0xff]  ;;  %v452_v13 = vld [vmem:[#allocation2 + $0x111] sm:$0xff] }
  0x3d   : > { %373 = vst.msk [vmem:[#allocation2 + $0x169] sm:$0xff] %vm224_vm0, %v3768_v51  ;;  %374 = vst.msk [vmem:[#allocation2 + $0x171] sm:$0xff] %vm224_vm0, %v3769_v52  ;;  %v437_v10 = vld [vmem:[#allocation2 + $0x61] sm:$0xff]  ;;  %v438_v11 = vld [vmem:[#allocation2 + $0x69] sm:$0xff]  ;;  %3989 = vmatprep.subr.bf16.mxu1 %v4325_v0  ;;  %v4660_v3 = vpack.c.bf16 %v452_v13, %v451_v4 }
  0x3e   : > { %3975 = vmatprep.mubr.msk.bf16.mxu1 %vm224_vm0, %v4637_v9  ;;  %v4658_v18 = vpack.c.bf16 %v438_v11, %v437_v10  ;;  %4026 = vmatpush3.bf16.msra.mxu0 %v4326_v6  ;;  %v439_v20 = vld [vmem:[#allocation2 + $0x79] sm:$0xff]  ;;  %v440_v21 = vld [vmem:[#allocation2 + $0x81] sm:$0xff]  ;;  %v381_v50 = vld [vmem:[#allocation2 + $0x30] sm:$0xff] }
  0x3f   : > { %v453_v15 = vld [vmem:[#allocation2 + $0x121] sm:$0xff]  ;;  %v454_v16 = vld [vmem:[#allocation2 + $0x129] sm:$0xff]  ;;  %4095 = vmatprep.subr.bf16.mxu0 %v4646_v12  ;;  %v4674_v26 = vpack.c.bf16 %v440_v21, %v439_v20  ;;  %v379_v46 = vld [vmem:[#allocation2 + $0x18] sm:$0xff] }
  0x40   : > { %v4663_v19 = vpack.c.bf16 %v454_v16, %v453_v15  ;;  %3990 = vmatpush3.bf16.msra.mxu1 %v4325_v0  ;;  %v455_v24 = vld [vmem:[#allocation2 + $0x139] sm:$0xff]  ;;  %v456_v25 = vld [vmem:[#allocation2 + $0x141] sm:$0xff]  ;;  %v4329_v55 = vld [vmem:[%s5935_s1 + $0x30] sm:$0xff]  }
  0x41   : > { %3960 = vmatmul.mubr.msk.bf16.gmra.mxu0 %vm224_vm0, %v4651_v14  ;;  %4059 = vmatprep.subr.bf16.mxu1 %v4656_v17  ;;  %v441_v22 = vld [vmem:[#allocation2 + $0x91] sm:$0xff]  ;;  %v442_v23 = vld [vmem:[#allocation2 + $0x99] sm:$0xff]  ;;  %v4678_v30 = vpack.c.bf16 %v456_v25, %v455_v24  ;;  %v927_v45 = vld [vmem:[#allocation2 + $0x22] sm:$0xff] }
  0x42   : > { %3963 = vmatprep.mubr.msk.bf16.mxu0 %vm224_vm0, %v4658_v18  ;;  %v4676_v29 = vpack.c.bf16 %v442_v23, %v441_v22  ;;  %v443_v32 = vld [vmem:[#allocation2 + $0xa9] sm:$0xff]  ;;  %v444_v33 = vld [vmem:[#allocation2 + $0xb1] sm:$0xff]  ;;  %v377_v39 = vld [vmem:[#allocation2] sm:$0xff] }
  0x43   : > { %3976 = vmatmul.mubr.msk.bf16.gmra.mxu1 %vm224_vm0, %v4660_v3  ;;  %v457_v27 = vld [vmem:[#allocation2 + $0x151] sm:$0xff]  ;;  %v458_v28 = vld [vmem:[#allocation2 + $0x159] sm:$0xff]  ;;  %v4690_v38 = vpack.c.bf16 %v444_v33, %v443_v32  ;;  %v409_v43 = vpack.c.bf16 %v378_v40, %v377_v39  ;;  %v932_v5 = vld [vmem:[#allocation2 + $0x62] sm:$0xff] }
  0x44   : > { %3979 = vmatprep.mubr.msk.bf16.mxu1 %vm224_vm0, %v4663_v19  ;;  %v4680_v31 = vpack.c.bf16 %v458_v28, %v457_v27  ;;  %v459_v36 = vld [vmem:[#allocation2 + $0x169] sm:$0xff]  ;;  %v460_v37 = vld [vmem:[#allocation2 + $0x171] sm:$0xff]  ;;  %v926_v44 = vld [vmem:[#allocation2 + $0x1a] sm:$0xff] }
  0x45   : > { %v4692_v42 = vpack.c.bf16 %v460_v37, %v459_v36  ;;  %v380_v47 = vld [vmem:[#allocation2 + $0x20] sm:$0xff]  ;;  %v928_v48 = vld [vmem:[#allocation2 + $0x32] sm:$0xff]  ;;  %v4700_v51 = vpack.c.bf16 %v927_v45, %v926_v44  ;;  %v930_v0 = vld [vmem:[#allocation2 + $0x4a] sm:$0xff] }
  0x46   : > { %v929_v49 = vld [vmem:[#allocation2 + $0x3a] sm:$0xff]  ;;  %v4704_v54 = vpack.c.bf16 %v380_v47, %v379_v46  ;;  %v931_v2 = vld [vmem:[#allocation2 + $0x52] sm:$0xff]  ;;  %v933_v6 = vld [vmem:[#allocation2 + $0x6a] sm:$0xff] }
  0x47   : > { %v382_v52 = vld [vmem:[#allocation2 + $0x38] sm:$0xff]  ;;  %v4702_v53 = vpack.c.bf16 %v929_v49, %v928_v48  ;;  %v4330_v57 = vld [vmem:[%s5935_s1 + $0x40] sm:$0xff]   ;;  %v4727_v7 = vld [vmem:[%s5935_s1 + $0x68] sm:$0xff]   ;;  %v4732_v11 = vpack.c.bf16 %v931_v2, %v930_v0  ;;  %v4739_v15 = vpack.c.bf16 %v933_v6, %v932_v5 }
  0x48   : > { %v3788_v58 = vld [vmem:[%s4568_s17 + $0x78] sm:$0xff]   ;;  %v4713_v59 = vpack.c.bf16 %v382_v52, %v381_v50  ;;  %v383_v8 = vld [vmem:[#allocation2 + $0x48] sm:$0xff]  ;;  %v384_v10 = vld [vmem:[#allocation2 + $0x50] sm:$0xff] }
  0x49   : > { %3964 = vmatmul.mubr.msk.bf16.gmra.mxu0 %vm224_vm0, %v4674_v26  ;;  %v3772_v62 = vunpack.c.l.bf16 %v3788_v58  ;;  %v3773_v63 = vunpack.c.h.bf16 %v3788_v58  ;;  %v386_v4 = vld [vmem:[#allocation2 + $0x68] sm:$0xff]  ;;  %v4737_v13 = vld [vmem:[%s5935_s1 + $0x58] sm:$0xff]   ;;  %v4741_v16 = vpack.c.bf16 %v384_v10, %v383_v8  ;;  %v388_v25 = vld [vmem:[#allocation2 + $0x80] sm:$0xff] }
  0x4a   : > { %3967 = vmatprep.mubr.msk.bf16.mxu0 %vm224_vm0, %v4676_v29  ;;  %v934_v20 = vld [vmem:[#allocation2 + $0x7a] sm:$0xff]  ;;  %v935_v21 = vld [vmem:[#allocation2 + $0x82] sm:$0xff]  ;;  %v936_v22 = vld [vmem:[#allocation2 + $0x92] sm:$0xff] }
  0x4b   : > { %3980 = vmatmul.mubr.msk.bf16.gmra.mxu1 %vm224_vm0, %v4678_v30  ;;  %375 = vst.msk [vmem:[#allocation2 + $0x181] sm:$0xff] %vm224_vm0, %v3772_v62  ;;  %376 = vst.msk [vmem:[#allocation2 + $0x189] sm:$0xff] %vm224_vm0, %v3773_v63  ;;  %v937_v23 = vld [vmem:[#allocation2 + $0x9a] sm:$0xff]  ;;  %v4755_v27 = vpack.c.bf16 %v935_v21, %v934_v20  ;;  %v389_v28 = vld [vmem:[#allocation2 + $0x90] sm:$0xff] }
  0x4c   : > { %3983 = vmatprep.mubr.msk.bf16.mxu1 %vm224_vm0, %v4680_v31  ;;  %v387_v24 = vld [vmem:[#allocation2 + $0x78] sm:$0xff]  ;;  %v4757_v33 = vpack.c.bf16 %v937_v23, %v936_v22  ;;  %v938_v36 = vld [vmem:[#allocation2 + $0xaa] sm:$0xff]  ;;  %v940_v39 = vld [vmem:[#allocation2 + $0xc2] sm:$0xff] }
  0x4d   : > { %v390_v32 = vld [vmem:[#allocation2 + $0x98] sm:$0xff]  ;;  %v4759_v34 = vpack.c.bf16 %v388_v25, %v387_v24  ;;  %v941_v40 = vld [vmem:[#allocation2 + $0xca] sm:$0xff]  ;;  %v393_v45 = vld [vmem:[#allocation2 + $0xc0] sm:$0xff] }
  0x4e   : > { %v4761_v35 = vpack.c.bf16 %v390_v32, %v389_v28  ;;  %v939_v37 = vld [vmem:[#allocation2 + $0xb2] sm:$0xff]  ;;  %v394_v46 = vld [vmem:[#allocation2 + $0xc8] sm:$0xff]  ;;  %v4773_v47 = vpack.c.bf16 %v941_v40, %v940_v39  ;;  %v942_v50 = vld [vmem:[#allocation2 + $0xda] sm:$0xff] }
  0x4f   : > { %v4771_v44 = vpack.c.bf16 %v939_v37, %v938_v36  ;;  %v4777_v49 = vpack.c.bf16 %v394_v46, %v393_v45  ;;  %v943_v52 = vld [vmem:[#allocation2 + $0xe2] sm:$0xff]  ;;  %v395_v58 = vld [vmem:[#allocation2 + $0xd8] sm:$0xff]  ;;  %v397_v0 = vld [vmem:[#allocation2 + $0xf0] sm:$0xff] }
  0x50   : > { %v396_v62 = vld [vmem:[#allocation2 + $0xe0] sm:$0xff]  ;;  %v4787_v63 = vpack.c.bf16 %v943_v52, %v942_v50  ;;  %v398_v2 = vld [vmem:[#allocation2 + $0xf8] sm:$0xff]  ;;  %v946_v10 = vld [vmem:[#allocation2 + $0x10a] sm:$0xff] }
  0x51   : > { %3968 = vmatmul.mubr.msk.bf16.gmra.mxu0 %vm224_vm0, %v4690_v38  ;;  %v4791_v6 = vpack.c.bf16 %v396_v62, %v395_v58  ;;  %v4793_v8 = vpack.c.bf16 %v398_v2, %v397_v0  ;;  %v949_v20 = vld [vmem:[#allocation2 + $0x12a] sm:$0xff]  ;;  %v401_v24 = vld [vmem:[#allocation2 + $0x120] sm:$0xff]  ;;  %v952_v40 = vld [vmem:[#allocation2 + $0x152] sm:$0xff] }
  0x52   : > { %4027 = vmatprep.mubr.msk.bf16.mxu0 %vm224_vm0, %v956_v41  ;;  %v391_v41 = vld [vmem:[#allocation2 + $0xa8] sm:$0xff]  ;;  %v400_v22 = vld [vmem:[#allocation2 + $0x110] sm:$0xff]  ;;  %v950_v37 = vld [vmem:[#allocation2 + $0x13a] sm:$0xff] }
  0x53   : > { %3984 = vmatmul.mubr.msk.bf16.gmra.mxu1 %vm224_vm0, %v4692_v42  ;;  %v399_v21 = vld [vmem:[#allocation2 + $0x108] sm:$0xff]  ;;  %v404_v45 = vld [vmem:[#allocation2 + $0x140] sm:$0xff]  ;;  %v405_v50 = vld [vmem:[#allocation2 + $0x150] sm:$0xff] }
  0x54   : > { %3991 = vmatprep.mubr.msk.bf16.mxu1 %vm224_vm0, %v409_v43  ;;  %v392_v43 = vld [vmem:[#allocation2 + $0xb0] sm:$0xff]  ;;  %v402_v25 = vld [vmem:[#allocation2 + $0x128] sm:$0xff]  ;;  %v4807_v32 = vpack.c.bf16 %v400_v22, %v399_v21  ;;  %v406_v52 = vld [vmem:[#allocation2 + $0x158] sm:$0xff] }
  0x55   : > { %v4775_v48 = vpack.c.bf16 %v392_v43, %v391_v41  ;;  %v4809_v36 = vpack.c.bf16 %v402_v25, %v401_v24  ;;  %v951_v39 = vld [vmem:[#allocation2 + $0x142] sm:$0xff]  ;;  %v953_v41 = vld [vmem:[#allocation2 + $0x15a] sm:$0xff]  ;;  %v4825_v58 = vpack.c.bf16 %v406_v52, %v405_v50  ;;  %v954_v62 = vld [vmem:[#allocation2 + $0x16a] sm:$0xff] }
  0x56   : > { %v403_v43 = vld [vmem:[#allocation2 + $0x138] sm:$0xff]  ;;  %v4819_v46 = vpack.c.bf16 %v951_v39, %v950_v37  ;;  %v407_v2 = vld [vmem:[#allocation2 + $0x168] sm:$0xff]  ;;  %v4333_v21 = vld [vmem:[%s5935_s1 + $0x50] sm:$0xff]  }
  0x57   : > { %v955_v0 = vld [vmem:[#allocation2 + $0x172] sm:$0xff]  ;;  %v2180_v22 = vld [vmem:[#allocation2 + $0x1a0] sm:$0xff] }
  0x59   : > { %4028 = vmatmul.mubr.msk.bf16.vlgmr.msra.gmra.mxu0 %vm224_vm0, %v4700_v51 }
  0x5a   : > { %4096 = vmatpush3.bf16.msra.mxu0 %v4646_v12  ;;  %4031 = vmatprep.mubr.msk.bf16.mxu0 %vm224_vm0, %v4702_v53  ;;  %v385_v12 = vld [vmem:[#allocation2 + $0x60] sm:$0xff] }
  0x5b   : > { %3992 = vmatmul.mubr.msk.bf16.vlgmr.msra.gmra.mxu1 %vm224_vm0, %v4704_v54  ;;  %4097 = vmatprep.subr.bf16.mxu0 %v4330_v57 }
  0x5c   : > { %4060 = vmatpush3.bf16.msra.mxu1 %v4656_v17  ;;  %3995 = vmatprep.mubr.msk.bf16.mxu1 %vm224_vm0, %v4713_v59  ;;  %v4744_v17 = vpack.c.bf16 %v386_v4, %v385_v12  ;;  %v947_v12 = vld [vmem:[#allocation2 + $0x112] sm:$0xff]  ;;  %v948_v4 = vld [vmem:[#allocation2 + $0x122] sm:$0xff] }
  0x5d   : > { %4061 = vmatprep.subr.bf16.mxu1 %v4329_v55  ;;  %v4803_v23 = vpack.c.bf16 %v947_v12, %v946_v10  ;;  %v4805_v28 = vpack.c.bf16 %v949_v20, %v948_v4  ;;  %v408_v10 = vld [vmem:[#allocation2 + $0x170] sm:$0xff]  ;;  %v4835_v12 = vpack.c.bf16 %v955_v0, %v954_v62  ;;  %v4334_v20 = vld [vmem:[%s5935_s1 + $0x60] sm:$0xff]  }
  0x5e   : > { %4098 = vmatpush3.bf16.msra.mxu0 %v4330_v57  ;;  %v945_v57 = vld [vmem:[#allocation2 + $0xfa] sm:$0xff]  ;;  %v4837_v4 = vpack.c.bf16 %v408_v10, %v407_v2  ;;  %v2457_v2 = vld [vmem:[#allocation2 + $0x49] sm:$0xff]  ;;  %v2458_v10 = vld [vmem:[#allocation2 + $0x51] sm:$0xff] }
  0x5f   : > { %4167 = vmatprep.subr.bf16.mxu0 %v4727_v7 }
  0x60   : > { %4062 = vmatpush3.bf16.msra.mxu1 %v4329_v55  ;;  %v944_v55 = vld [vmem:[#allocation2 + $0xf2] sm:$0xff] }
  0x61   : > { %4032 = vmatmul.mubr.msk.bf16.gmra.mxu0 %vm224_vm0, %v4732_v11  ;;  %4131 = vmatprep.subr.bf16.mxu1 %v4737_v13  ;;  %v4789_v5 = vpack.c.bf16 %v945_v57, %v944_v55  ;;  %v4821_v55 = vpack.c.bf16 %v953_v41, %v952_v40  ;;  %v4823_v57 = vpack.c.bf16 %v404_v45, %v403_v43  ;;  %v2455_v41 = vld [vmem:[#allocation2 + $0x31] sm:$0xff]  ;;  %v2456_v43 = vld [vmem:[#allocation2 + $0x39] sm:$0xff] }
  0x62   : > { %4035 = vmatprep.mubr.msk.bf16.mxu0 %vm224_vm0, %v4739_v15 }
  0x63   : > { %3996 = vmatmul.mubr.msk.bf16.gmra.mxu1 %vm224_vm0, %v4741_v16 }
  0x64   : > { %3999 = vmatprep.mubr.msk.bf16.mxu1 %vm224_vm0, %v4744_v17 }
  0x69   : > { %4036 = vmatmul.mubr.msk.bf16.gmra.mxu0 %vm224_vm0, %v4755_v27 }
  0x6a   : > { %4039 = vmatprep.mubr.msk.bf16.mxu0 %vm224_vm0, %v4757_v33 }
  0x6b   : > { %4000 = vmatmul.mubr.msk.bf16.gmra.mxu1 %vm224_vm0, %v4759_v34 }
  0x6c   : > { %4003 = vmatprep.mubr.msk.bf16.mxu1 %vm224_vm0, %v4761_v35 }
  0x71   : > { %4040 = vmatmul.mubr.msk.bf16.gmra.mxu0 %vm224_vm0, %v4771_v44 }
  0x72   : > { %4043 = vmatprep.mubr.msk.bf16.mxu0 %vm224_vm0, %v4773_v47 }
  0x73   : > { %4004 = vmatmul.mubr.msk.bf16.gmra.mxu1 %vm224_vm0, %v4775_v48 }
  0x74   : > { %4007 = vmatprep.mubr.msk.bf16.mxu1 %vm224_vm0, %v4777_v49 }
  0x79   : > { %4044 = vmatmul.mubr.msk.bf16.gmra.mxu0 %vm224_vm0, %v4787_v63 }
  0x7a   : > { %4047 = vmatprep.mubr.msk.bf16.mxu0 %vm224_vm0, %v4789_v5 }
  0x7b   : > { %4008 = vmatmul.mubr.msk.bf16.gmra.mxu1 %vm224_vm0, %v4791_v6 }
  0x7c   : > { %4011 = vmatprep.mubr.msk.bf16.mxu1 %vm224_vm0, %v4793_v8 }
  0x81   : > { %4048 = vmatmul.mubr.msk.bf16.gmra.mxu0 %vm224_vm0, %v4803_v23 }
  0x82   : > { %4051 = vmatprep.mubr.msk.bf16.mxu0 %vm224_vm0, %v4805_v28 }
  0x83   : > { %4012 = vmatmul.mubr.msk.bf16.gmra.mxu1 %vm224_vm0, %v4807_v32 }
  0x84   : > { %4015 = vmatprep.mubr.msk.bf16.mxu1 %vm224_vm0, %v4809_v36 }
  0x89   : > { %4052 = vmatmul.mubr.msk.bf16.gmra.mxu0 %vm224_vm0, %v4819_v46 }
  0x8a   : > { %4055 = vmatprep.mubr.msk.bf16.mxu0 %vm224_vm0, %v4821_v55 }
  0x8b   : > { %4016 = vmatmul.mubr.msk.bf16.gmra.mxu1 %vm224_vm0, %v4823_v57 }
  0x8c   : > { %4019 = vmatprep.mubr.msk.bf16.mxu1 %vm224_vm0, %v4825_v58 }
  0x91   : > { %4056 = vmatmul.mubr.msk.bf16.gmra.mxu0 %vm224_vm0, %v4835_v12 }
  0x92   : > { %4099 = vmatprep.mubr.msk.bf16.mxu0 %vm224_vm0, %v4618_v56  ;;  %v4336_v56 = vld [vmem:[%s5935_s1 + $0x88] sm:$0xff]  }
  0x93   : > { %4020 = vmatmul.mubr.msk.bf16.gmra.mxu1 %vm224_vm0, %v4837_v4 }
  0x94   : > { %4063 = vmatprep.mubr.msk.bf16.mxu1 %vm224_vm0, %v4704_v54 }
  0x99   : > { %4100 = vmatmul.mubr.msk.bf16.vlgmr.msra.gmra.mxu0 %vm224_vm0, %v4629_v1  ;;  %v4335_v1 = vld [vmem:[%s5935_s1 + $0x78] sm:$0xff]  }
  0x9a   : > { %4168 = vmatpush3.bf16.msra.mxu0 %v4727_v7  ;;  %4103 = vmatprep.mubr.msk.bf16.mxu0 %vm224_vm0, %v4651_v14  ;;  %v1261_v14 = vld [vmem:[#allocation2 + $0x188] sm:$0xff] }
  0x9b   : > { %4064 = vmatmul.mubr.msk.bf16.vlgmr.msra.gmra.mxu1 %vm224_vm0, %v4713_v59  ;;  %4169 = vmatprep.subr.bf16.mxu0 %v4334_v20 }
  0x9c   : > { %4132 = vmatpush3.bf16.msra.mxu1 %v4737_v13  ;;  %4067 = vmatprep.mubr.msk.bf16.mxu1 %vm224_vm0, %v4741_v16 }
  0x9d   : > { %4133 = vmatprep.subr.bf16.mxu1 %v4333_v21 }
  0x9e   : > { %4170 = vmatpush3.bf16.msra.mxu0 %v4334_v20  ;;  %v2459_v20 = vld [vmem:[#allocation2 + $0x61] sm:$0xff] }
  0x9f   : > { %4239 = vmatprep.subr.bf16.mxu0 %v4336_v56 }
  0xa0   : > { %4134 = vmatpush3.bf16.msra.mxu1 %v4333_v21  ;;  %v2460_v21 = vld [vmem:[#allocation2 + $0x69] sm:$0xff] }
  0xa1   : > { %4104 = vmatmul.mubr.msk.bf16.gmra.mxu0 %vm224_vm0, %v4658_v18  ;;  %4203 = vmatprep.subr.bf16.mxu1 %v4335_v1 }
  0xa2   : > { %4107 = vmatprep.mubr.msk.bf16.mxu0 %vm224_vm0, %v4674_v26  ;;  %v4337_v26 = vld [vmem:[%s5935_s1 + $0x70] sm:$0xff]  }
  0xa3   : > { %4068 = vmatmul.mubr.msk.bf16.gmra.mxu1 %vm224_vm0, %v4744_v17 }
  0xa4   : > { %4071 = vmatprep.mubr.msk.bf16.mxu1 %vm224_vm0, %v4759_v34 }
  0xa9   : > { %4108 = vmatmul.mubr.msk.bf16.gmra.mxu0 %vm224_vm0, %v4676_v29 }
  0xaa   : > { %4111 = vmatprep.mubr.msk.bf16.mxu0 %vm224_vm0, %v4690_v38 }
  0xab   : > { %4072 = vmatmul.mubr.msk.bf16.gmra.mxu1 %vm224_vm0, %v4761_v35 }
  0xac   : > { %4075 = vmatprep.mubr.msk.bf16.mxu1 %vm224_vm0, %v4775_v48 }
  0xb1   : > { %4112 = vmatmul.mubr.msk.bf16.gmra.mxu0 %vm224_vm0, %v4620_v60  ;;  %v1566_v60 = vld [vmem:[#allocation2 + $0x181] sm:$0xff] }
  0xb2   : > { %4115 = vmatprep.mubr.msk.bf16.mxu0 %vm224_vm0, %v4622_v61  ;;  %v1567_v61 = vld [vmem:[#allocation2 + $0x189] sm:$0xff] }
  0xb3   : > { %4076 = vmatmul.mubr.msk.bf16.gmra.mxu1 %vm224_vm0, %v4777_v49  ;;  %v4917_v18 = vpack.c.bf16 %v1567_v61, %v1566_v60  ;;  %v2489_v60 = vpack.c.bf16 %v2460_v21, %v2459_v20 }
  0xb4   : > { %4079 = vmatprep.mubr.msk.bf16.mxu1 %vm224_vm0, %v4791_v6 }
  0xb9   : > { %4116 = vmatmul.mubr.msk.bf16.gmra.mxu0 %vm224_vm0, %v4637_v9  ;;  %v1260_v9 = vld [vmem:[#allocation2 + $0x180] sm:$0xff] }
  0xba   : > { %4119 = vmatprep.mubr.msk.bf16.mxu0 %vm224_vm0, %v4660_v3  ;;  %v1277_v3 = vpack.c.bf16 %v1261_v14, %v1260_v9 }
  0xbb   : > { %4080 = vmatmul.mubr.msk.bf16.gmra.mxu1 %vm224_vm0, %v4793_v8 }
  0xbc   : > { %4083 = vmatprep.mubr.msk.bf16.mxu1 %vm224_vm0, %v4807_v32 }
  0xc1   : > { %4120 = vmatmul.mubr.msk.bf16.gmra.mxu0 %vm224_vm0, %v4663_v19  ;;  %v4338_v19 = vld [vmem:[%s5935_s1 + $0x80] sm:$0xff]  }
  0xc2   : > { %4123 = vmatprep.mubr.msk.bf16.mxu0 %vm224_vm0, %v4678_v30 }
  0xc3   : > { %4084 = vmatmul.mubr.msk.bf16.gmra.mxu1 %vm224_vm0, %v4809_v36 }
  0xc4   : > { %4087 = vmatprep.mubr.msk.bf16.mxu1 %vm224_vm0, %v4823_v57 }
  0xc9   : > { %4124 = vmatmul.mubr.msk.bf16.gmra.mxu0 %vm224_vm0, %v4680_v31 }
  0xca   : > { %4127 = vmatprep.mubr.msk.bf16.mxu0 %vm224_vm0, %v4692_v42 }
  0xcb   : > { %4088 = vmatmul.mubr.msk.bf16.gmra.mxu1 %vm224_vm0, %v4825_v58 }
  0xcc   : > { %4091 = vmatprep.mubr.msk.bf16.mxu1 %vm224_vm0, %v4837_v4 }
  0xd1   : > { %4128 = vmatmul.mubr.msk.bf16.gmra.mxu0 %vm224_vm0, %v4917_v18 }
  0xd2   : > { %4171 = vmatprep.mubr.msk.bf16.mxu0 %vm224_vm0, %v4713_v59 }
  0xd3   : > { %4092 = vmatmul.mubr.msk.bf16.gmra.mxu1 %vm224_vm0, %v1277_v3 }
  0xd4   : > { %4135 = vmatprep.mubr.msk.bf16.mxu1 %vm224_vm0, %v4700_v51 }
  0xd9   : > { %4172 = vmatmul.mubr.msk.bf16.vlgmr.msra.gmra.mxu0 %vm224_vm0, %v4741_v16 }
  0xda   : > { %4240 = vmatpush3.bf16.msra.mxu0 %v4336_v56  ;;  %4175 = vmatprep.mubr.msk.bf16.mxu0 %vm224_vm0, %v4744_v17 }
  0xdb   : > { %4136 = vmatmul.mubr.msk.bf16.vlgmr.msra.gmra.mxu1 %vm224_vm0, %v4702_v53  ;;  %4241 = vmatprep.subr.bf16.mxu0 %v4338_v19 }
  0xdc   : > { %4204 = vmatpush3.bf16.msra.mxu1 %v4335_v1  ;;  %4139 = vmatprep.mubr.msk.bf16.mxu1 %vm224_vm0, %v4732_v11  ;;  %v2488_v1 = vpack.c.bf16 %v2458_v10, %v2457_v2 }
  0xdd   : > { %4205 = vmatprep.subr.bf16.mxu1 %v4337_v26 }
  0xde   : > { %4242 = vmatpush3.bf16.msra.mxu0 %v4338_v19 }
  0xe0   : > { %4206 = vmatpush3.bf16.msra.mxu1 %v4337_v26  ;;  %v2461_v26 = vld [vmem:[#allocation2 + $0x79] sm:$0xff] }
  0xe1   : > { %4176 = vmatmul.mubr.msk.bf16.gmra.mxu0 %vm224_vm0, %v4759_v34 }
  0xe2   : > { %4179 = vmatprep.mubr.msk.bf16.mxu0 %vm224_vm0, %v4761_v35 }
  0xe3   : > { %4140 = vmatmul.mubr.msk.bf16.gmra.mxu1 %vm224_vm0, %v4739_v15 }
  0xe4   : > { %4143 = vmatprep.mubr.msk.bf16.mxu1 %vm224_vm0, %v4755_v27 }
  0xe9   : > { %4180 = vmatmul.mubr.msk.bf16.gmra.mxu0 %vm224_vm0, %v4775_v48 }
  0xea   : > { %4183 = vmatprep.mubr.msk.bf16.mxu0 %vm224_vm0, %v4777_v49 }
  0xeb   : > { %4144 = vmatmul.mubr.msk.bf16.gmra.mxu1 %vm224_vm0, %v4757_v33 }
  0xec   : > { %4147 = vmatprep.mubr.msk.bf16.mxu1 %vm224_vm0, %v4771_v44 }
  0xf1   : > { %4184 = vmatmul.mubr.msk.bf16.gmra.mxu0 %vm224_vm0, %v4791_v6 }
  0xf2   : > { %4187 = vmatprep.mubr.msk.bf16.mxu0 %vm224_vm0, %v4793_v8  ;;  %v2179_v8 = vld [vmem:[#allocation2 + $0x198] sm:$0xff] }
  0xf3   : > { %4148 = vmatmul.mubr.msk.bf16.gmra.mxu1 %vm224_vm0, %v4773_v47  ;;  %v2196_v40 = vpack.c.bf16 %v2180_v22, %v2179_v8  ;;  %v2462_v8 = vld [vmem:[#allocation2 + $0x81] sm:$0xff] }
  0xf4   : > { %4151 = vmatprep.mubr.msk.bf16.mxu1 %vm224_vm0, %v4787_v63 }
  0xf9   : > { %v4964_v29 = vpop.f32.mrf.mxu0  ;;  %4188 = vmatmul.mubr.msk.bf16.gmra.mxu0 %vm224_vm0, %v4807_v32  ;;  %v1872_v32 = vld [vmem:[#allocation2 + $0x182] sm:$0xff] }
  0xfa   : > { %4191 = vmatprep.mubr.msk.bf16.mxu0 %vm224_vm0, %v4809_v36  ;;  %v1873_v36 = vld [vmem:[#allocation2 + $0x18a] sm:$0xff] }
  0xfb   : > { %v4970_v30 = vpop.f32.mrf.mxu1  ;;  %4152 = vmatmul.mubr.msk.bf16.gmra.mxu1 %vm224_vm0, %v4789_v5  ;;  %v4974_v31 = vpop.f32.mrf.mxu0  ;;  %v5033_v52 = vpack.c.bf16 %v1873_v36, %v1872_v32  ;;  %v2463_v36 = vld [vmem:[#allocation2 + $0x91] sm:$0xff] }
  0xfc   : > { %4155 = vmatprep.mubr.msk.bf16.mxu1 %vm224_vm0, %v4803_v23 }
  0xfd   : > { %v4978_v38 = vpop.f32.mrf.mxu1  ;;  %v4980_v42 = vpop.f32.mrf.mxu0 }
  0xff   : > { %v4982_v51 = vpop.f32.mrf.mxu1  ;;  %v4984_v54 = vpop.f32.mrf.mxu0 }
 0x101   : > { %v4986_v59 = vpop.f32.mrf.mxu1  ;;  %v4988_v7 = vpop.f32.mrf.mxu0  ;;  %4192 = vmatmul.mubr.msk.bf16.gmra.mxu0 %vm224_vm0, %v4823_v57 }
 0x102   : > { %4195 = vmatprep.mubr.msk.bf16.mxu0 %vm224_vm0, %v4825_v58 }
 0x103   : > { %v4994_v13 = vpop.f32.mrf.mxu1  ;;  %4156 = vmatmul.mubr.msk.bf16.gmra.mxu1 %vm224_vm0, %v4805_v28  ;;  %v4998_v16 = vpop.f32.mrf.mxu0 }
 0x104   : > { %4159 = vmatprep.mubr.msk.bf16.mxu1 %vm224_vm0, %v4819_v46 }
 0x105   : > { %v5002_v17 = vpop.f32.mrf.mxu1  ;;  %v5004_v34 = vpop.f32.mrf.mxu0 }
 0x107   : > { %v5006_v35 = vpop.f32.mrf.mxu1  ;;  %v5008_v48 = vpop.f32.mrf.mxu0 }
 0x109   : > { %v5010_v49 = vpop.f32.mrf.mxu1  ;;  %v5012_v6 = vpop.f32.mrf.mxu0  ;;  %4196 = vmatmul.mubr.msk.bf16.gmra.mxu0 %vm224_vm0, %v4837_v4 }
 0x10a   : > { %4199 = vmatprep.mubr.msk.bf16.mxu0 %vm224_vm0, %v1277_v3 }
 0x10b   : > { %v5017_v24 = vpop.f32.mrf.mxu1  ;;  %4160 = vmatmul.mubr.msk.bf16.gmra.mxu1 %vm224_vm0, %v4821_v55  ;;  %v5021_v25 = vpop.f32.mrf.mxu0  ;;  %v2487_v55 = vpack.c.bf16 %v2456_v43, %v2455_v41 }
 0x10c   : > { %4163 = vmatprep.mubr.msk.bf16.mxu1 %vm224_vm0, %v4835_v12 }
 0x10d   : > { %v5025_v37 = vpop.f32.mrf.mxu1  ;;  %v5027_v39 = vpop.f32.mrf.mxu0 }
 0x10f   : > { %v5029_v45 = vpop.f32.mrf.mxu1  ;;  %v5031_v50 = vpop.f32.mrf.mxu0 }
 0x111   : > { %v5035_v57 = vpop.f32.mrf.mxu1  ;;  %v5037_v58 = vpop.f32.mrf.mxu0  ;;  %4200 = vmatmul.mubr.msk.bf16.gmra.mxu0 %vm224_vm0, %v2196_v40  ;;  %v2464_v40 = vld [vmem:[#allocation2 + $0x99] sm:$0xff] }
 0x112   : > { %4243 = vmatprep.mubr.msk.bf16.mxu0 %vm224_vm0, %v4702_v53  ;;  %v2491_v10 = vpack.c.bf16 %v2464_v40, %v2463_v36 }
 0x113   : > { %v5042_v62 = vpop.f32.mrf.mxu1  ;;  %4164 = vmatmul.mubr.msk.bf16.gmra.mxu1 %vm224_vm0, %v5033_v52  ;;  %v5046_v0 = vpop.f32.mrf.mxu0 }
 0x114   : > { %4207 = vmatprep.mubr.msk.bf16.mxu1 %vm224_vm0, %v2487_v55  ;;  %v2490_v55 = vpack.c.bf16 %v2462_v8, %v2461_v26  ;;  %v2468_v8 = vld [vmem:[#allocation2 + $0xc9] sm:$0xff] }
 0x115   : > { %v5049_v12 = vpop.f32.mrf.mxu1  ;;  %v5051_v4 = vpop.f32.mrf.mxu0 }
 0x117   : > { %v5053_v56 = vpop.f32.mrf.mxu1  ;;  %v5055_v53 = vpop.f32.mrf.mxu0 }
 0x119   : > { %v5057_v61 = vpop.f32.mrf.mxu1  ;;  %v4029_v9 = vpop.f32.mrf.mxu0  ;;  %4244 = vmatmul.mubr.msk.bf16.vlgmr.msra.gmra.mxu0 %vm224_vm0, %v4732_v11 }
 0x11a   : > { %4247 = vmatprep.mubr.msk.bf16.mxu0 %vm224_vm0, %v4739_v15 }
 0x11b   : > { %v3993_v14 = vpop.f32.mrf.mxu1  ;;  %4208 = vmatmul.mubr.msk.bf16.vlgmr.msra.gmra.mxu1 %vm224_vm0, %v2488_v1  ;;  %v1071_v3 = vpop.f32.mrf.mxu0 }
 0x11c   : > { %v806_v19 = vadd.f32 %v3993_v14, %v4964_v29  ;;  %4211 = vmatprep.mubr.msk.bf16.mxu1 %vm224_vm0, %v2489_v60  ;;  %v2465_v14 = vld [vmem:[#allocation2 + $0xa9] sm:$0xff] }
 0x11d   : > { %v797_v22 = vpop.f32.mrf.mxu1  ;;  %v4030_v32 = vpop.f32.mrf.mxu0 }
 0x11e   : > { %v798_v41 = vadd.f32 %v797_v22, %v4974_v31  ;;  %v5067_v11 = vadd.f32 %v4029_v9, %v806_v19 }
 0x11f   : > { %v3994_v43 = vpop.f32.mrf.mxu1  ;;  %v1074_v15 = vpop.f32.mrf.mxu0 }
 0x120   : > { %v809_v2 = vadd.f32 %v3994_v43, %v4980_v42  ;;  %v5070_v20 = vadd.f32 %v1071_v3, %v798_v41  ;;  %v2466_v3 = vld [vmem:[#allocation2 + $0xb1] sm:$0xff] }
 0x121   : > { %v800_v29 = vpop.f32.mrf.mxu1  ;;  %v4033_v21 = vpop.f32.mrf.mxu0  ;;  %4248 = vmatmul.mubr.msk.bf16.gmra.mxu0 %vm224_vm0, %v4755_v27  ;;  %v2492_v40 = vpack.c.bf16 %v2466_v3, %v2465_v14 }
 0x122   : > { %v801_v1 = vadd.f32 %v800_v29, %v4984_v54  ;;  %4251 = vmatprep.mubr.msk.bf16.mxu0 %vm224_vm0, %v4757_v33  ;;  %v5077_v31 = vadd.f32 %v4030_v32, %v809_v2  ;;  %v2467_v54 = vld [vmem:[#allocation2 + $0xc1] sm:$0xff] }
 0x123   : > { %v3997_v60 = vpop.f32.mrf.mxu1  ;;  %4212 = vmatmul.mubr.msk.bf16.gmra.mxu1 %vm224_vm0, %v2490_v55  ;;  %v1087_v9 = vpop.f32.mrf.mxu0 }
 0x124   : > { %v822_v42 = vadd.f32 %v3997_v60, %v4988_v7  ;;  %4215 = vmatprep.mubr.msk.bf16.mxu1 %vm224_vm0, %v2491_v10  ;;  %v5082_v19 = vadd.f32 %v1074_v15, %v801_v1  ;;  %v2493_v7 = vpack.c.bf16 %v2468_v8, %v2467_v54  ;;  %v2470_v1 = vld [vmem:[#allocation2 + $0xe1] sm:$0xff] }
 0x125   : > { %v813_v27 = vpop.f32.mrf.mxu1  ;;  %v4034_v26 = vpop.f32.mrf.mxu0 }
 0x126   : > { %v814_v33 = vadd.f32 %v813_v27, %v4998_v16  ;;  %v5085_v22 = vadd.f32 %v4033_v21, %v822_v42  ;;  %v2469_v21 = vld [vmem:[#allocation2 + $0xd9] sm:$0xff] }
 0x127   : > { %v3998_v32 = vpop.f32.mrf.mxu1  ;;  %v1090_v36 = vpop.f32.mrf.mxu0  ;;  %v2472_v42 = vld [vmem:[#allocation2 + $0xf9] sm:$0xff] }
 0x128   : > { %v825_v41 = vadd.f32 %v3998_v32, %v5004_v34  ;;  %v5088_v43 = vadd.f32 %v1087_v9, %v814_v33 }
 0x129   : > { %v816_v55 = vpop.f32.mrf.mxu1  ;;  %v4037_v2 = vpop.f32.mrf.mxu0  ;;  %4252 = vmatmul.mubr.msk.bf16.gmra.mxu0 %vm224_vm0, %v4771_v44 }
 0x12a   : > { %v817_v15 = vadd.f32 %v816_v55, %v5008_v48  ;;  %4255 = vmatprep.mubr.msk.bf16.mxu0 %vm224_vm0, %v4773_v47  ;;  %v5095_v16 = vadd.f32 %v4034_v26, %v825_v41  ;;  %v2471_v48 = vld [vmem:[#allocation2 + $0xf1] sm:$0xff]  ;;  %v2494_v26 = vpack.c.bf16 %v2470_v1, %v2469_v21 }
 0x12b   : > { %v4001_v10 = vpop.f32.mrf.mxu1  ;;  %4216 = vmatmul.mubr.msk.bf16.gmra.mxu1 %vm224_vm0, %v2492_v40  ;;  %v1103_v29 = vpop.f32.mrf.mxu0  ;;  %v2474_v55 = vld [vmem:[#allocation2 + $0x111] sm:$0xff] }
 0x12c   : > { %v838_v34 = vadd.f32 %v4001_v10, %v5012_v6  ;;  %4219 = vmatprep.mubr.msk.bf16.mxu1 %vm224_vm0, %v2493_v7  ;;  %v5100_v60 = vadd.f32 %v1090_v36, %v817_v15  ;;  %v2495_v6 = vpack.c.bf16 %v2472_v42, %v2471_v48  ;;  %v2473_v7 = vld [vmem:[#allocation2 + $0x109] sm:$0xff] }
 0x12d   : > { %v829_v44 = vpop.f32.mrf.mxu1  ;;  %v4038_v9 = vpop.f32.mrf.mxu0  ;;  %v2476_v10 = vld [vmem:[#allocation2 + $0x129] sm:$0xff]  ;;  %v2496_v1 = vpack.c.bf16 %v2474_v55, %v2473_v7 }
 0x12e   : > { %v830_v47 = vadd.f32 %v829_v44, %v5021_v25  ;;  %v5103_v14 = vadd.f32 %v4037_v2, %v838_v34 }
 0x12f   : > { %v4002_v3 = vpop.f32.mrf.mxu1  ;;  %v1106_v27 = vpop.f32.mrf.mxu0 }
 0x130   : > { %v841_v54 = vadd.f32 %v4002_v3, %v5027_v39  ;;  %v5106_v8 = vadd.f32 %v1103_v29, %v830_v47 }
 0x131   : > { %v832_v33 = vpop.f32.mrf.mxu1  ;;  %v4041_v32 = vpop.f32.mrf.mxu0  ;;  %4256 = vmatmul.mubr.msk.bf16.gmra.mxu0 %vm224_vm0, %v4787_v63 }
 0x132   : > { %v833_v36 = vadd.f32 %v832_v33, %v5031_v50  ;;  %4259 = vmatprep.mubr.msk.bf16.mxu0 %vm224_vm0, %v4789_v5  ;;  %v5113_v25 = vadd.f32 %v4038_v9, %v841_v54  ;;  %v2475_v50 = vld [vmem:[#allocation2 + $0x121] sm:$0xff] }
 0x133   : > { %v4005_v40 = vpop.f32.mrf.mxu1  ;;  %4220 = vmatmul.mubr.msk.bf16.gmra.mxu1 %vm224_vm0, %v2494_v26  ;;  %v1119_v41 = vpop.f32.mrf.mxu0  ;;  %v2786_v26 = vld [vmem:[#allocation2 + $0x15a] sm:$0xff] }
 0x134   : > { %v854_v39 = vadd.f32 %v4005_v40, %v5037_v58  ;;  %4223 = vmatprep.mubr.msk.bf16.mxu1 %vm224_vm0, %v2495_v6  ;;  %v5118_v2 = vadd.f32 %v1106_v27, %v833_v36  ;;  %v2497_v58 = vpack.c.bf16 %v2476_v10, %v2475_v50  ;;  %v2477_v6 = vld [vmem:[#allocation2 + $0x139] sm:$0xff]  ;;  %v2478_v33 = vld [vmem:[#allocation2 + $0x141] sm:$0xff]  ;;  %v2479_v36 = vld [vmem:[#allocation2 + $0x151] sm:$0xff] }
 0x135   : > { %v845_v63 = vpop.f32.mrf.mxu1  ;;  %v4042_v15 = vpop.f32.mrf.mxu0 }
 0x136   : > { %v846_v5 = vadd.f32 %v845_v63, %v5046_v0  ;;  %v5121_v29 = vadd.f32 %v4041_v32, %v854_v39  ;;  %v2498_v63 = vpack.c.bf16 %v2478_v33, %v2477_v6 }
 0x137   : > { %v4006_v34 = vpop.f32.mrf.mxu1  ;;  %v1122_v21 = vpop.f32.mrf.mxu0 }
 0x138   : > { %v857_v44 = vadd.f32 %v4006_v34, %v5051_v4  ;;  %v5124_v9 = vadd.f32 %v1119_v41, %v846_v5  ;;  %v2785_v4 = vld [vmem:[#allocation2 + $0x152] sm:$0xff] }
 0x139   : > { %v848_v48 = vpop.f32.mrf.mxu1  ;;  %v4045_v42 = vpop.f32.mrf.mxu0  ;;  %4260 = vmatmul.mubr.msk.bf16.gmra.mxu0 %vm224_vm0, %v4803_v23  ;;  %v2805_v41 = vpack.c.bf16 %v2786_v26, %v2785_v4 }
 0x13a   : > { %v849_v47 = vadd.f32 %v848_v48, %v5055_v53  ;;  %4263 = vmatprep.mubr.msk.bf16.mxu0 %vm224_vm0, %v4805_v28  ;;  %v5131_v0 = vadd.f32 %v4042_v15, %v857_v44  ;;  %v2480_v28 = vld [vmem:[#allocation2 + $0x159] sm:$0xff]  ;;  %v2481_v48 = vld [vmem:[#allocation2 + $0x169] sm:$0xff] }
 0x13b   : > { %v4009_v3 = vpop.f32.mrf.mxu1  ;;  %4224 = vmatmul.mubr.msk.bf16.gmra.mxu1 %vm224_vm0, %v2496_v1  ;;  %v1135_v27 = vpop.f32.mrf.mxu0  ;;  %v2499_v15 = vpack.c.bf16 %v2480_v28, %v2479_v36  ;;  %v2791_v28 = vld [vmem:[#allocation2 + $0x19a] sm:$0xff] }
 0x13c   : > { %v870_v54 = vadd.f32 %v4009_v3, %v4970_v30  ;;  %4227 = vmatprep.mubr.msk.bf16.mxu1 %vm224_vm0, %v2497_v58  ;;  %v5136_v23 = vadd.f32 %v1122_v21, %v849_v47  ;;  %v2788_v21 = vld [vmem:[#allocation2 + $0x172] sm:$0xff] }
 0x13d   : > { %v861_v53 = vpop.f32.mrf.mxu1  ;;  %v4046_v32 = vpop.f32.mrf.mxu0 }
 0x13e   : > { %v862_v40 = vadd.f32 %v861_v53, %v4978_v38  ;;  %v5139_v39 = vadd.f32 %v4045_v42, %v870_v54  ;;  %v2787_v38 = vld [vmem:[#allocation2 + $0x16a] sm:$0xff] }
 0x13f   : > { %v4010_v7 = vpop.f32.mrf.mxu1  ;;  %v1138_v55 = vpop.f32.mrf.mxu0  ;;  %v2482_v42 = vld [vmem:[#allocation2 + $0x171] sm:$0xff]  ;;  %v2806_v3 = vpack.c.bf16 %v2788_v21, %v2787_v38 }
 0x140   : > { %v873_v30 = vadd.f32 %v4010_v7, %v4982_v51  ;;  %v5142_v50 = vadd.f32 %v1135_v27, %v862_v40  ;;  %v2500_v6 = vpack.c.bf16 %v2482_v42, %v2481_v48 }
 0x141   : > { %v864_v10 = vpop.f32.mrf.mxu1  ;;  %v4049_v5 = vpop.f32.mrf.mxu0  ;;  %4264 = vmatmul.mubr.msk.bf16.gmra.mxu0 %vm224_vm0, %v4819_v46 }
 0x142   : > { %v865_v34 = vadd.f32 %v864_v10, %v4986_v59  ;;  %4267 = vmatprep.mubr.msk.bf16.mxu0 %vm224_vm0, %v2805_v41  ;;  %v5148_v1 = vadd.f32 %v4046_v32, %v873_v30 }
 0x143   : > { %v4013_v44 = vpop.f32.mrf.mxu1  ;;  %4228 = vmatmul.mubr.msk.bf16.gmra.mxu1 %vm224_vm0, %v2498_v63  ;;  %v1151_v51 = vpop.f32.mrf.mxu0  ;;  %v2486_v63 = vld [vmem:[#allocation2 + $0x1a1] sm:$0xff] }
 0x144   : > { %v886_v58 = vadd.f32 %v4013_v44, %v4994_v13  ;;  %4231 = vmatprep.mubr.msk.bf16.mxu1 %vm224_vm0, %v2499_v15  ;;  %v5153_v47 = vadd.f32 %v1138_v55, %v865_v34  ;;  %v2485_v55 = vld [vmem:[#allocation2 + $0x199] sm:$0xff] }
 0x145   : > { %v877_v46 = vpop.f32.mrf.mxu1  ;;  %v4050_v59 = vpop.f32.mrf.mxu0  ;;  %v2502_v21 = vpack.c.bf16 %v2486_v63, %v2485_v55 }
 0x146   : > { %v878_v27 = vadd.f32 %v877_v46, %v5002_v17  ;;  %v5156_v4 = vadd.f32 %v4049_v5, %v886_v58  ;;  %v2792_v17 = vld [vmem:[#allocation2 + $0x1a2] sm:$0xff] }
 0x147   : > { %v4014_v26 = vpop.f32.mrf.mxu1  ;;  %v1154_v54 = vpop.f32.mrf.mxu0 }
 0x148   : > { %v889_v33 = vadd.f32 %v4014_v26, %v5006_v35  ;;  %v5159_v53 = vadd.f32 %v1151_v51, %v878_v27 }
 0x149   : > { %v880_v13 = vpop.f32.mrf.mxu1  ;;  %v4053_v32 = vpop.f32.mrf.mxu0  ;;  %4268 = vmatmul.mubr.msk.bf16.gmra.mxu0 %vm224_vm0, %v2806_v3 }
 0x14a   : > { %v881_v36 = vadd.f32 %v880_v13, %v5010_v49  ;;  %4271 = vmatprep.mubr.msk.bf16.mxu0 %vm224_vm0, %v5033_v52  ;;  %v5165_v40 = vadd.f32 %v4050_v59, %v889_v33  ;;  %v2808_v52 = vpack.c.bf16 %v2792_v17, %v2791_v28 }
 0x14b   : > { %v4017_v41 = vpop.f32.mrf.mxu1  ;;  %4232 = vmatmul.mubr.msk.bf16.gmra.mxu1 %vm224_vm0, %v2500_v6  ;;  %v1167_v7 = vpop.f32.mrf.mxu0 }
 0x14c   : > { %v902_v35 = vadd.f32 %v4017_v41, %v5017_v24  ;;  %4235 = vmatprep.mubr.msk.bf16.mxu1 %vm224_vm0, %v4917_v18  ;;  %v5171_v30 = vadd.f32 %v1154_v54, %v881_v36 }
 0x14d   : > { %v893_v49 = vpop.f32.mrf.mxu1  ;;  %v4054_v15 = vpop.f32.mrf.mxu0 }
 0x14e   : > { %v894_v10 = vadd.f32 %v893_v49, %v5025_v37  ;;  %v5174_v5 = vadd.f32 %v4053_v32, %v902_v35 }
 0x14f   : > { %v4018_v34 = vpop.f32.mrf.mxu1  ;;  %v1170_v38 = vpop.f32.mrf.mxu0 }
 0x150   : > { %v905_v44 = vadd.f32 %v4018_v34, %v5029_v45  ;;  %v5177_v24 = vadd.f32 %v1167_v7, %v894_v10 }
 0x151   : > { %v896_v51 = vpop.f32.mrf.mxu1  ;;  %v4057_v18 = vpop.f32.mrf.mxu0  ;;  %4272 = vmatmul.mubr.msk.bf16.gmra.mxu0 %vm224_vm0, %v2808_v52 }
 0x152   : > { %v897_v58 = vadd.f32 %v896_v51, %v5035_v57  ;;  %v5181_v48 = vadd.f32 %v4054_v15, %v905_v44 }
 0x153   : > { %v4021_v42 = vpop.f32.mrf.mxu1  ;;  %4236 = vmatmul.mubr.msk.bf16.gmra.mxu1 %vm224_vm0, %v2502_v21  ;;  %v1183_v37 = vpop.f32.mrf.mxu0 }
 0x154   : > { %v918_v46 = vadd.f32 %v4021_v42, %v5042_v62  ;;  %v5185_v59 = vadd.f32 %v1170_v38, %v897_v58 }
 0x155   : > { %v909_v3 = vpop.f32.mrf.mxu1  ;;  %v4058_v45 = vpop.f32.mrf.mxu0 }
 0x156   : > { %v910_v27 = vadd.f32 %v909_v3, %v5049_v12  ;;  %v5188_v26 = vadd.f32 %v4057_v18, %v918_v46 }
 0x157   : > { %v4022_v54 = vpop.f32.mrf.mxu1  ;;  %v1186_v6 = vpop.f32.mrf.mxu0 }
 0x158   : > { %v921_v57 = vadd.f32 %v4022_v54, %v5053_v56  ;;  %v5191_v33 = vadd.f32 %v1183_v37, %v910_v27 }
 0x159   : > { %v912_v13 = vpop.f32.mrf.mxu1  ;;  %v4101_v32 = vpop.f32.mrf.mxu0 }
 0x15a   : > { %v913_v36 = vadd.f32 %v912_v13, %v5057_v61  ;;  %v5194_v28 = vadd.f32 %v4058_v45, %v921_v57 }
 0x15b   : > { %v4065_v62 = vpop.f32.mrf.mxu1  ;;  %v1683_v17 = vpop.f32.mrf.mxu0 }
 0x15c   : > { %v1506_v41 = vadd.f32 %v4065_v62, %v5067_v11  ;;  %v5197_v7 = vadd.f32 %v1186_v6, %v913_v36 }
 0x15d   : > { %v1377_v12 = vpop.f32.mrf.mxu1  ;;  %v4102_v35 = vpop.f32.mrf.mxu0 }
 0x15e   : > { %v1504_v55 = vadd.f32 %v1377_v12, %v5070_v20  ;;  %v5200_v63 = vadd.f32 %v4101_v32, %v1506_v41 }
 0x15f   : > { %v4066_v56 = vpop.f32.mrf.mxu1  ;;  %v1686_v49 = vpop.f32.mrf.mxu0 }
 0x160   : > { %v1507_v15 = vadd.f32 %v4066_v56, %v5077_v31  ;;  %v5203_v52 = vadd.f32 %v1683_v17, %v1504_v55 }
 0x161   : > { %v1380_v61 = vpop.f32.mrf.mxu1  ;;  %v4105_v10 = vpop.f32.mrf.mxu0 }
 0x162   : > { %v1505_v34 = vadd.f32 %v1380_v61, %v5082_v19  ;;  %v5206_v38 = vadd.f32 %v4102_v35, %v1507_v15 }
 0x163   : > { %v4069_v11 = vpop.f32.mrf.mxu1  ;;  %v1699_v21 = vpop.f32.mrf.mxu0 }
 0x164   : > { %v1510_v44 = vadd.f32 %v4069_v11, %v5085_v22  ;;  %v5209_v51 = vadd.f32 %v1686_v49, %v1505_v34 }
 0x165   : > { %v1393_v20 = vpop.f32.mrf.mxu1  ;;  %v4106_v18 = vpop.f32.mrf.mxu0 }
 0x166   : > { %v1508_v58 = vadd.f32 %v1393_v20, %v5088_v43  ;;  %v5212_v42 = vadd.f32 %v4105_v10, %v1510_v44 }
 0x167   : > { %v4070_v31 = vpop.f32.mrf.mxu1  ;;  %v1702_v37 = vpop.f32.mrf.mxu0 }
 0x168   : > { %v1511_v46 = vadd.f32 %v4070_v31, %v5095_v16  ;;  %v5215_v3 = vadd.f32 %v1699_v21, %v1508_v58 }
 0x169   : > { %v1396_v19 = vpop.f32.mrf.mxu1  ;;  %v4109_v45 = vpop.f32.mrf.mxu0 }
 0x16a   : > { %v1509_v27 = vadd.f32 %v1396_v19, %v5100_v60  ;;  %v5218_v54 = vadd.f32 %v4106_v18, %v1511_v46 }
 0x16b   : > { %v4073_v22 = vpop.f32.mrf.mxu1  ;;  %v1715_v6 = vpop.f32.mrf.mxu0 }
 0x16c   : > { %v1514_v57 = vadd.f32 %v4073_v22, %v5103_v14  ;;  %v5221_v13 = vadd.f32 %v1702_v37, %v1509_v27 }
 0x16d   : > { %v1409_v43 = vpop.f32.mrf.mxu1  ;;  %v4110_v32 = vpop.f32.mrf.mxu0 }
 0x16e   : > { %v1512_v36 = vadd.f32 %v1409_v43, %v5106_v8  ;;  %v5224_v62 = vadd.f32 %v4109_v45, %v1514_v57 }
 0x16f   : > { %v4074_v16 = vpop.f32.mrf.mxu1  ;;  %v1718_v17 = vpop.f32.mrf.mxu0 }
 0x170   : > { %v1515_v41 = vadd.f32 %v4074_v16, %v5113_v25  ;;  %v5227_v12 = vadd.f32 %v1715_v6, %v1512_v36 }
 0x171   : > { %v1412_v60 = vpop.f32.mrf.mxu1  ;;  %v4113_v35 = vpop.f32.mrf.mxu0 }
 0x172   : > { %v1513_v55 = vadd.f32 %v1412_v60, %v5118_v2  ;;  %v5230_v56 = vadd.f32 %v4110_v32, %v1515_v41 }
 0x173   : > { %v4077_v14 = vpop.f32.mrf.mxu1  ;;  %v1731_v49 = vpop.f32.mrf.mxu0 }
 0x174   : > { %v1518_v15 = vadd.f32 %v4077_v14, %v5121_v29  ;;  %v5233_v61 = vadd.f32 %v1718_v17, %v1513_v55 }
 0x175   : > { %v1425_v8 = vpop.f32.mrf.mxu1  ;;  %v4114_v10 = vpop.f32.mrf.mxu0 }
 0x176   : > { %v1516_v34 = vadd.f32 %v1425_v8, %v5124_v9  ;;  %v5236_v11 = vadd.f32 %v4113_v35, %v1518_v15 }
 0x177   : > { %v4078_v25 = vpop.f32.mrf.mxu1  ;;  %v1734_v21 = vpop.f32.mrf.mxu0 }
 0x178   : > { %v1519_v44 = vadd.f32 %v4078_v25, %v5131_v0  ;;  %v5239_v20 = vadd.f32 %v1731_v49, %v1516_v34 }
 0x179   : > { %v1428_v2 = vpop.f32.mrf.mxu1  ;;  %v4117_v18 = vpop.f32.mrf.mxu0 }
 0x17a   : > { %v1517_v58 = vadd.f32 %v1428_v2, %v5136_v23  ;;  %v5242_v31 = vadd.f32 %v4114_v10, %v1519_v44 }
 0x17b   : > { %v4081_v29 = vpop.f32.mrf.mxu1  ;;  %v1747_v37 = vpop.f32.mrf.mxu0 }
 0x17c   : > { %v1522_v46 = vadd.f32 %v4081_v29, %v5139_v39  ;;  %v5245_v19 = vadd.f32 %v1734_v21, %v1517_v58 }
 0x17d   : > { %v1441_v9 = vpop.f32.mrf.mxu1  ;;  %v4118_v45 = vpop.f32.mrf.mxu0 }
 0x17e   : > { %v1520_v27 = vadd.f32 %v1441_v9, %v5142_v50  ;;  %v5248_v22 = vadd.f32 %v4117_v18, %v1522_v46 }
 0x17f   : > { %v4082_v0 = vpop.f32.mrf.mxu1  ;;  %v1750_v6 = vpop.f32.mrf.mxu0 }
 0x180   : > { %v1523_v57 = vadd.f32 %v4082_v0, %v5148_v1  ;;  %v5251_v43 = vadd.f32 %v1747_v37, %v1520_v27 }
 0x181   : > { %v1444_v23 = vpop.f32.mrf.mxu1  ;;  %v4121_v32 = vpop.f32.mrf.mxu0 }
 0x182   : > { %v1521_v36 = vadd.f32 %v1444_v23, %v5153_v47  ;;  %v5254_v16 = vadd.f32 %v4118_v45, %v1523_v57 }
 0x183   : > { %v4085_v39 = vpop.f32.mrf.mxu1  ;;  %v1763_v17 = vpop.f32.mrf.mxu0 }
 0x184   : > { %v1526_v41 = vadd.f32 %v4085_v39, %v5156_v4  ;;  %v5257_v60 = vadd.f32 %v1750_v6, %v1521_v36 }
 0x185   : > { %v1457_v50 = vpop.f32.mrf.mxu1  ;;  %v4122_v35 = vpop.f32.mrf.mxu0 }
 0x186   : > { %v1524_v55 = vadd.f32 %v1457_v50, %v5159_v53  ;;  %v5260_v14 = vadd.f32 %v4121_v32, %v1526_v41 }
 0x187   : > { %v4086_v1 = vpop.f32.mrf.mxu1  ;;  %v1766_v49 = vpop.f32.mrf.mxu0 }
 0x188   : > { %v1527_v15 = vadd.f32 %v4086_v1, %v5165_v40  ;;  %v5263_v8 = vadd.f32 %v1763_v17, %v1524_v55 }
 0x189   : > { %v1460_v47 = vpop.f32.mrf.mxu1  ;;  %v4125_v10 = vpop.f32.mrf.mxu0 }
 0x18a   : > { %v1525_v34 = vadd.f32 %v1460_v47, %v5171_v30  ;;  %v5266_v25 = vadd.f32 %v4122_v35, %v1527_v15 }
 0x18b   : > { %v4089_v4 = vpop.f32.mrf.mxu1  ;;  %v1779_v21 = vpop.f32.mrf.mxu0 }
 0x18c   : > { %v1530_v44 = vadd.f32 %v4089_v4, %v5174_v5  ;;  %v5269_v2 = vadd.f32 %v1766_v49, %v1525_v34 }
 0x18d   : > { %v1473_v53 = vpop.f32.mrf.mxu1  ;;  %v4126_v18 = vpop.f32.mrf.mxu0 }
 0x18e   : > { %v1528_v58 = vadd.f32 %v1473_v53, %v5177_v24  ;;  %v5272_v29 = vadd.f32 %v4125_v10, %v1530_v44 }
 0x18f   : > { %v4090_v40 = vpop.f32.mrf.mxu1  ;;  %v1782_v37 = vpop.f32.mrf.mxu0 }
 0x190   : > { %v1531_v46 = vadd.f32 %v4090_v40, %v5181_v48  ;;  %v5275_v9 = vadd.f32 %v1779_v21, %v1528_v58 }
 0x191   : > { %v1476_v30 = vpop.f32.mrf.mxu1  ;;  %v4129_v45 = vpop.f32.mrf.mxu0 }
 0x192   : > { %v1529_v27 = vadd.f32 %v1476_v30, %v5185_v59  ;;  %v5278_v0 = vadd.f32 %v4126_v18, %v1531_v46 }
 0x193   : > { %v4093_v5 = vpop.f32.mrf.mxu1  ;;  %v1795_v6 = vpop.f32.mrf.mxu0 }
 0x194   : > { %v1534_v57 = vadd.f32 %v4093_v5, %v5188_v26  ;;  %v5281_v23 = vadd.f32 %v1782_v37, %v1529_v27 }
 0x195   : > { %v1489_v24 = vpop.f32.mrf.mxu1  ;;  %v4130_v32 = vpop.f32.mrf.mxu0 }
 0x196   : > { %v1532_v36 = vadd.f32 %v1489_v24, %v5191_v33  ;;  %v5284_v39 = vadd.f32 %v4129_v45, %v1534_v57 }
 0x197   : > { %v4094_v48 = vpop.f32.mrf.mxu1  ;;  %v1798_v17 = vpop.f32.mrf.mxu0 }
 0x198   : > { %v1535_v41 = vadd.f32 %v4094_v48, %v5194_v28  ;;  %v5287_v50 = vadd.f32 %v1795_v6, %v1532_v36 }
 0x199   : > { %v1492_v59 = vpop.f32.mrf.mxu1  ;;  %v4173_v35 = vpop.f32.mrf.mxu0 }
 0x19a   : > { %v1533_v55 = vadd.f32 %v1492_v59, %v5197_v7  ;;  %v5290_v1 = vadd.f32 %v4130_v32, %v1535_v41 }
 0x19b   : > { %v4137_v26 = vpop.f32.mrf.mxu1  ;;  %v2296_v49 = vpop.f32.mrf.mxu0 }
 0x19c   : > { %v2118_v15 = vadd.f32 %v4137_v26, %v5200_v63  ;;  %v5293_v47 = vadd.f32 %v1798_v17, %v1533_v55 }
 0x19d   : > { %v1989_v33 = vpop.f32.mrf.mxu1  ;;  %v4174_v10 = vpop.f32.mrf.mxu0 }
 0x19e   : > { %v2116_v34 = vadd.f32 %v1989_v33, %v5203_v52  ;;  %v5296_v4 = vadd.f32 %v4173_v35, %v2118_v15 }
 0x19f   : > { %v4138_v28 = vpop.f32.mrf.mxu1  ;;  %v5298_v21 = vpop.f32.mrf.mxu0 }
 0x1a0   : > { %v2119_v44 = vadd.f32 %v4138_v28, %v5206_v38  ;;  %v5301_v7 = vadd.f32 %v2296_v49, %v2116_v34 }
 0x1a1   : > { %v5303_v53 = vpop.f32.mrf.mxu1  ;;  %v4177_v18 = vpop.f32.mrf.mxu0 }
 0x1a2   : > { %v5305_v58 = vadd.f32 %v4174_v10, %v2119_v44 }
 0x1a3   : > { %v4141_v63 = vpop.f32.mrf.mxu1  ;;  %v5307_v40 = vpop.f32.mrf.mxu0 }
 0x1a4   : > { %v2122_v37 = vadd.f32 %v4141_v63, %v5212_v42 }
 0x1a5   : > { %v5310_v52 = vpop.f32.mrf.mxu1  ;;  %v4178_v46 = vpop.f32.mrf.mxu0 }
 0x1a6   : > { %v5312_v30 = vadd.f32 %v4177_v18, %v2122_v37 }
 0x1a7   : > { %v4142_v45 = vpop.f32.mrf.mxu1  ;;  %v5314_v27 = vpop.f32.mrf.mxu0 }
 0x1a8   : > { %v2123_v38 = vadd.f32 %v4142_v45, %v5218_v54 }
 0x1a9   : > { %v5317_v5 = vpop.f32.mrf.mxu1  ;;  %v4181_v6 = vpop.f32.mrf.mxu0 }
 0x1aa   : > { %v5319_v57 = vadd.f32 %v4178_v46, %v2123_v38 }
 0x1ab   : > { %v4145_v24 = vpop.f32.mrf.mxu1  ;;  %v5321_v32 = vpop.f32.mrf.mxu0 }
 0x1ac   : > { %v2126_v42 = vadd.f32 %v4145_v24, %v5224_v62 }
 0x1ad   : > { %v5324_v36 = vpop.f32.mrf.mxu1  ;;  %v4182_v48 = vpop.f32.mrf.mxu0 }
 0x1ae   : > { %v5326_v17 = vadd.f32 %v4181_v6, %v2126_v42 }
 0x1af   : > { %v4146_v41 = vpop.f32.mrf.mxu1  ;;  %v5328_v59 = vpop.f32.mrf.mxu0 }
 0x1b0   : > { %5942 = vst [vmem:[#allocation6_spill] sm:$0xff] %v5326_v17  ;;  %v2127_v54 = vadd.f32 %v4146_v41, %v5230_v56 }
 0x1b1   : > { %v5331_v35 = vpop.f32.mrf.mxu1  ;;  %v4185_v55 = vpop.f32.mrf.mxu0 }
 0x1b2   : > { %v5333_v26 = vadd.f32 %v4182_v48, %v2127_v54 }
 0x1b3   : > { %v4149_v49 = vpop.f32.mrf.mxu1  ;;  %v5335_v15 = vpop.f32.mrf.mxu0 }
 0x1b4   : > { %5943 = vst [vmem:[#allocation7_spill] sm:$0xff] %v5333_v26  ;;  %v2130_v62 = vadd.f32 %v4149_v49, %v5236_v11 }
 0x1b5   : > { %v5338_v33 = vpop.f32.mrf.mxu1  ;;  %v4186_v10 = vpop.f32.mrf.mxu0 }
 0x1b6   : > { %v5340_v34 = vadd.f32 %v4185_v55, %v2130_v62 }
 0x1b7   : > { %v4150_v28 = vpop.f32.mrf.mxu1  ;;  %v5342_v44 = vpop.f32.mrf.mxu0 }
 0x1b8   : > { %5944 = vst [vmem:[#allocation8_spill] sm:$0xff] %v5340_v34  ;;  %v2131_v56 = vadd.f32 %v4150_v28, %v5242_v31 }
 0x1b9   : > { %v5345_v18 = vpop.f32.mrf.mxu1  ;;  %v4189_v63 = vpop.f32.mrf.mxu0 }
 0x1ba   : > { %v5347_v37 = vadd.f32 %v4186_v10, %v2131_v56 }
 0x1bb   : > { %v4153_v46 = vpop.f32.mrf.mxu1  ;;  %v5349_v45 = vpop.f32.mrf.mxu0 }
 0x1bc   : > { %5945 = vst [vmem:[#allocation9_spill] sm:$0xff] %v5347_v37  ;;  %v2134_v11 = vadd.f32 %v4153_v46, %v5248_v22 }
 0x1bd   : > { %v2053_v38 = vpop.f32.mrf.mxu1  ;;  %v4190_v6 = vpop.f32.mrf.mxu0 }
 0x1be   : > { %v5352_v24 = vadd.f32 %v4189_v63, %v2134_v11 }
 0x1bf   : > { %v4154_v42 = vpop.f32.mrf.mxu1  ;;  %v5354_v48 = vpop.f32.mrf.mxu0 }
 0x1c0   : > { %5946 = vst [vmem:[#allocation10_spill] sm:$0xff] %v5352_v24  ;;  %v2135_v41 = vadd.f32 %v4154_v42, %v5254_v16 }
 0x1c1   : > { %v2056_v31 = vpop.f32.mrf.mxu1  ;;  %v4193_v54 = vpop.f32.mrf.mxu0 }
 0x1c2   : > { %v5357_v55 = vadd.f32 %v4190_v6, %v2135_v41 }
 0x1c3   : > { %v4157_v49 = vpop.f32.mrf.mxu1  ;;  %v5359_v62 = vpop.f32.mrf.mxu0 }
 0x1c4   : > { %5947 = vst [vmem:[#allocation11_spill] sm:$0xff] %v5357_v55  ;;  %v2138_v10 = vadd.f32 %v4157_v49, %v5260_v14 }
 0x1c5   : > { %v2069_v28 = vpop.f32.mrf.mxu1  ;;  %v4194_v22 = vpop.f32.mrf.mxu0 }
 0x1c6   : > { %v5362_v56 = vadd.f32 %v4193_v54, %v2138_v10 }
 0x1c7   : > { %v4158_v63 = vpop.f32.mrf.mxu1  ;;  %v5364_v46 = vpop.f32.mrf.mxu0 }
 0x1c8   : > { %5948 = vst [vmem:[#allocation12_spill] sm:$0xff] %v5362_v56  ;;  %v2139_v11 = vadd.f32 %v4158_v63, %v5266_v25 }
 0x1c9   : > { %v2072_v24 = vpop.f32.mrf.mxu1  ;;  %v4197_v16 = vpop.f32.mrf.mxu0 }
 0x1ca   : > { %v5367_v42 = vadd.f32 %v4194_v22, %v2139_v11 }
 0x1cb   : > { %v4161_v6 = vpop.f32.mrf.mxu1  ;;  %v5369_v41 = vpop.f32.mrf.mxu0 }
 0x1cc   : > { %5949 = vst [vmem:[#allocation13_spill] sm:$0xff] %v5367_v42  ;;  %v2142_v55 = vadd.f32 %v4161_v6, %v5272_v29 }
 0x1cd   : > { %v2085_v37 = vpop.f32.mrf.mxu1  ;;  %v4198_v14 = vpop.f32.mrf.mxu0 }
 0x1ce   : > { %v5372_v49 = vadd.f32 %v4197_v16, %v2142_v55 }
 0x1cf   : > { %v4162_v54 = vpop.f32.mrf.mxu1  ;;  %v5374_v10 = vpop.f32.mrf.mxu0 }
 0x1d0   : > { %5950 = vst [vmem:[#allocation14_spill] sm:$0xff] %v5372_v49  ;;  %v2143_v56 = vadd.f32 %v4162_v54, %v5278_v0  ;;  %v2120_v54 = vadd.f32 %v5310_v52, %v5215_v3  ;;  %v2128_v3 = vadd.f32 %v5338_v33, %v5239_v20  ;;  %v5414_v20 = vld [vmem:[%s5936_s2] ss:$0 sm:$0xff] }
 0x1d1   : > { %v2088_v34 = vpop.f32.mrf.mxu1  ;;  %v4201_v25 = vpop.f32.mrf.mxu0 }
 0x1d2   : > { %v5377_v63 = vadd.f32 %v4198_v14, %v2143_v56  ;;  %v2117_v56 = vadd.f32 %v5303_v53, %v5209_v51 }
 0x1d3   : > { %v4165_v22 = vpop.f32.mrf.mxu1  ;;  %v5379_v11 = vpop.f32.mrf.mxu0 }
 0x1d4   : > { %v2146_v42 = vadd.f32 %v4165_v22, %v5284_v39 }
 0x1d5   : > { %v2101_v26 = vpop.f32.mrf.mxu1  ;;  %v4202_v29 = vpop.f32.mrf.mxu0 }
 0x1d6   : > { %v5382_v6 = vadd.f32 %v4201_v25, %v2146_v42  ;;  %v2121_v25 = vadd.f32 %v5317_v5, %v5221_v13  ;;  %v2132_v13 = vadd.f32 %v2053_v38, %v5251_v43 }
 0x1d7   : > { %v4166_v55 = vpop.f32.mrf.mxu1  ;;  %v5384_v16 = vpop.f32.mrf.mxu0 }
 0x1d8   : > { %5951 = vst [vmem:[#allocation15_spill] sm:$0xff] %v5382_v6  ;;  %v2147_v49 = vadd.f32 %v4166_v55, %v5290_v1  ;;  %v2124_v1 = vadd.f32 %v5324_v36, %v5227_v12  ;;  %v2125_v55 = vadd.f32 %v5331_v35, %v5233_v61  ;;  %v2427_v12 = vadd.f32 %v5307_v40, %v2120_v54 }
 0x1d9   : > { %v2104_v17 = vpop.f32.mrf.mxu1  ;;  %v4245_v0 = vpop.f32.mrf.mxu0  ;;  %v2133_v61 = vadd.f32 %v2056_v31, %v5257_v60  ;;  %v2428_v43 = vadd.f32 %v5314_v27, %v2121_v25  ;;  %v2137_v40 = vadd.f32 %v2072_v24, %v5269_v2  ;;  %v2144_v31 = vadd.f32 %v2101_v26, %v5287_v50 }
 0x1da   : > { %v5389_v14 = vadd.f32 %v4202_v29, %v2147_v49  ;;  %v2424_v49 = vadd.f32 %v5298_v21, %v2117_v56  ;;  %v2136_v21 = vadd.f32 %v2069_v28, %v5263_v8  ;;  %v5421_v60 = vadd.f32 %v5328_v59, %v2125_v55 }
 0x1db   : > { %v4209_v39 = vpop.f32.mrf.mxu1  ;;  %v2908_v22 = vpop.f32.mrf.mxu0  ;;  %v2141_v8 = vadd.f32 %v2088_v34, %v5281_v23  ;;  %v5443_v23 = vadd.f32 %v5354_v48, %v2133_v61 }
 0x1dc   : > { %v2731_v42 = vadd.f32 %v4209_v39, %v5296_v4  ;;  %v2129_v4 = vadd.f32 %v5345_v18, %v5245_v19  ;;  %v5418_v18 = vadd.f32 %v5321_v32, %v2124_v1  ;;  %v5431_v32 = vadd.f32 %v5335_v15, %v2128_v3 }
 0x1dd   : > { %v2602_v6 = vpop.f32.mrf.mxu1  ;;  %v4246_v51 = vpop.f32.mrf.mxu0  ;;  %v5450_v24 = vadd.f32 %v5359_v62, %v2136_v21  ;;  %v5459_v48 = vadd.f32 %v5374_v10, %v2141_v8 }
 0x1de   : > { %v2729_v53 = vadd.f32 %v2602_v6, %v5301_v7  ;;  %v3037_v36 = vadd.f32 %v4245_v0, %v2731_v42  ;;  %v5437_v2 = vadd.f32 %v5342_v44, %v2129_v4  ;;  %v5453_v44 = vadd.f32 %v5364_v46, %v2137_v40 }
 0x1df   : > { %v4210_v52 = vpop.f32.mrf.mxu1  ;;  %v2911_v5 = vpop.f32.mrf.mxu0  ;;  %v5470_v46 = vadd.f32 %v2104_v17, %v5293_v47 }
 0x1e0   : > { %v3035_v35 = vadd.f32 %v2908_v22, %v2729_v53  ;;  %v2732_v7 = vadd.f32 %v4210_v52, %v5305_v58  ;;  %v2140_v58 = vadd.f32 %v2085_v37, %v5275_v9  ;;  %v5434_v59 = vadd.f32 %v5414_v20, %v3037_v36 }
 0x1e1   : > { %v2605_v19 = vpop.f32.mrf.mxu1  ;;  %v4249_v33 = vpop.f32.mrf.mxu0  ;;  %v5440_v9 = vadd.f32 %v5349_v45, %v2132_v13  ;;  %v5467_v22 = vadd.f32 %v5379_v11, %v2144_v31 }
 0x1e2   : > { %v3038_v38 = vadd.f32 %v4246_v51, %v2732_v7  ;;  %v5428_v28 = vadd.f32 %v5414_v20, %v3035_v35  ;;  %v2730_v29 = vadd.f32 %v2605_v19, %v2424_v49  ;;  %v5456_v45 = vadd.f32 %v5369_v41, %v2140_v58 }
 0x1e3   : > { %v4213_v27 = vpop.f32.mrf.mxu1  ;;  %v2924_v6 = vpop.f32.mrf.mxu0  ;;  %v3177_v41 = vmul.f32 %v5434_v59, %v5434_v59  ;;  %v3109_v3 = vsel %vm224_vm0, %v5434_v59, 0.0 }
 0x1e4   : > { %v5446_v50 = vadd.f32 %v5414_v20, %v3038_v38  ;;  %v3036_v26 = vadd.f32 %v2911_v5, %v2730_v29  ;;  %v2735_v34 = vadd.f32 %v4213_v27, %v5312_v30  ;;  %v3175_v56 = vmul.f32 %v5428_v28, %v5428_v28 }
 0x1e5   : > { %v2618_v15 = vpop.f32.mrf.mxu1  ;;  %v4250_v37 = vpop.f32.mrf.mxu0  ;;  %v3106_v25 = vsel %vm224_vm0, %v5428_v28, 0.0  ;;  %v3210_v61 = vsel %vm224_vm0, %v3177_v41, 0.0 }
 0x1e6   : > { %v2733_v0 = vadd.f32 %v2618_v15, %v2427_v12  ;;  %v5464_v30 = vadd.f32 %v5414_v20, %v3036_v26  ;;  %v3041_v54 = vadd.f32 %v4249_v33, %v2735_v34  ;;  %v3178_v1 = vmul.f32 %v5446_v50, %v5446_v50 }
 0x1e7   : > { %v4214_v39 = vpop.f32.mrf.mxu1  ;;  %v2927_v62 = vpop.f32.mrf.mxu0  ;;  %v3207_v4 = vsel %vm224_vm0, %v3175_v56, 0.0  ;;  %v3111_v36 = vsel %vm224_vm0, %v5446_v50, 0.0 }
 0x1e8   : > { %v3039_v10 = vadd.f32 %v2924_v6, %v2733_v0  ;;  %v2736_v42 = vadd.f32 %v4214_v39, %v5319_v57  ;;  %v3107_v55 = vsel %vm224_vm0, %v5464_v30, 0.0  ;;  %v3176_v11 = vmul.f32 %v5464_v30, %v5464_v30 }
 0x1e9   : > { %v2621_v47 = vpop.f32.mrf.mxu1  ;;  %v4253_v17 = vpop.f32.mrf.mxu0  ;;  %v3108_v51 = vadd.f32 %v3107_v55, %v3106_v25  ;;  %v5491_v52 = vadd.f32 %v5414_v20, %v3041_v54  ;;  %v3212_v38 = vsel %vm224_vm0, %v3178_v1, 0.0 }
 0x1ea   : > { %v5484_v53 = vadd.f32 %v5414_v20, %v3039_v10  ;;  %v3042_v49 = vadd.f32 %v4250_v37, %v2736_v42  ;;  %v2734_v57 = vadd.f32 %v2621_v47, %v2428_v43  ;;  %v3208_v13 = vsel %vm224_vm0, %v3176_v11, 0.0  ;;  %v5952_v43 = vld [vmem:[#allocation6_spill] sm:$0xff] }
 0x1eb   : > { %v4217_v5 = vpop.f32.mrf.mxu1  ;;  %v2940_v12 = vpop.f32.mrf.mxu0  ;;  %v3110_v35 = vadd.f32 %v3109_v3, %v3108_v51  ;;  %v3209_v7 = vadd.f32 %v3208_v13, %v3207_v4  ;;  %v3181_v6 = vmul.f32 %v5491_v52, %v5491_v52 }
 0x1ec   : > { %v3179_v21 = vmul.f32 %v5484_v53, %v5484_v53  ;;  %v5499_v19 = vadd.f32 %v5414_v20, %v3042_v49  ;;  %v3040_v33 = vadd.f32 %v2927_v62, %v2734_v57  ;;  %v2739_v40 = vadd.f32 %v4217_v5, %v5952_v43  ;;  %v5953_v62 = vld [vmem:[#allocation7_spill] sm:$0xff]  ;;  %v5954_v43 = vld [vmem:[#allocation8_spill] sm:$0xff] }
 0x1ed   : > { %v2634_v58 = vpop.f32.mrf.mxu1  ;;  %v4254_v8 = vpop.f32.mrf.mxu0  ;;  %v3211_v31 = vadd.f32 %v3210_v61, %v3209_v7  ;;  %v3112_v29 = vadd.f32 %v3111_v36, %v3110_v35  ;;  %v3113_v26 = vsel %vm224_vm0, %v5484_v53, 0.0  ;;  %v3117_v49 = vsel %vm224_vm0, %v5491_v52, 0.0 }
 0x1ee   : > { %v2737_v27 = vadd.f32 %v2634_v58, %v5418_v18  ;;  %v5509_v34 = vadd.f32 %v5414_v20, %v3040_v33  ;;  %v3045_v15 = vadd.f32 %v4253_v17, %v2739_v40  ;;  %v3214_v10 = vsel %vm224_vm0, %v3179_v21, 0.0 }
 0x1ef   : > { %v4218_v37 = vpop.f32.mrf.mxu1  ;;  %v2943_v0 = vpop.f32.mrf.mxu0  ;;  %v3114_v56 = vadd.f32 %v3113_v26, %v3112_v29  ;;  %v3213_v54 = vadd.f32 %v3212_v38, %v3211_v31  ;;  %v3182_v18 = vmul.f32 %v5499_v19, %v5499_v19  ;;  %v3119_v61 = vsel %vm224_vm0, %v5499_v19, 0.0 }
 0x1f0   : > { %v3043_v39 = vadd.f32 %v2940_v12, %v2737_v27  ;;  %v2740_v41 = vadd.f32 %v4218_v37, %v5953_v62  ;;  %v3115_v42 = vsel %vm224_vm0, %v5509_v34, 0.0  ;;  %v3180_v25 = vmul.f32 %v5509_v34, %v5509_v34  ;;  %v5955_v62 = vld [vmem:[#allocation9_spill] sm:$0xff] }
 0x1f1   : > { %v2637_v1 = vpop.f32.mrf.mxu1  ;;  %v4257_v55 = vpop.f32.mrf.mxu0  ;;  %v3215_v11 = vadd.f32 %v3214_v10, %v3213_v54  ;;  %v3116_v47 = vadd.f32 %v3115_v42, %v3114_v56  ;;  %v5526_v3 = vadd.f32 %v5414_v20, %v3045_v15  ;;  %v3218_v12 = vsel %vm224_vm0, %v3181_v6, 0.0 }
 0x1f2   : > { %v5520_v17 = vadd.f32 %v5414_v20, %v3043_v39  ;;  %v3046_v51 = vadd.f32 %v4254_v8, %v2740_v41  ;;  %v3216_v57 = vsel %vm224_vm0, %v3180_v25, 0.0  ;;  %v2738_v4 = vadd.f32 %v2637_v1, %v5421_v60 }
 0x1f3   : > { %v4221_v13 = vpop.f32.mrf.mxu1  ;;  %v2956_v5 = vpop.f32.mrf.mxu0  ;;  %v3118_v36 = vadd.f32 %v3117_v49, %v3116_v47  ;;  %v3217_v35 = vadd.f32 %v3216_v57, %v3215_v11  ;;  %v3220_v8 = vsel %vm224_vm0, %v3182_v18, 0.0  ;;  %v3185_v27 = vmul.f32 %v5526_v3, %v5526_v3 }
 0x1f4   : > { %v3183_v7 = vmul.f32 %v5520_v17, %v5520_v17  ;;  %v5535_v21 = vadd.f32 %v5414_v20, %v3046_v51  ;;  %v3044_v33 = vadd.f32 %v2943_v0, %v2738_v4  ;;  %v2743_v40 = vadd.f32 %v4221_v13, %v5954_v43 }
 0x1f5   : > { %v2650_v58 = vpop.f32.mrf.mxu1  ;;  %v4258_v60 = vpop.f32.mrf.mxu0  ;;  %v3219_v38 = vadd.f32 %v3218_v12, %v3217_v35  ;;  %v3120_v31 = vadd.f32 %v3119_v61, %v3118_v36  ;;  %v3121_v6 = vsel %vm224_vm0, %v5520_v17, 0.0  ;;  %v3125_v49 = vsel %vm224_vm0, %v5526_v3, 0.0 }
 0x1f6   : > { %v2741_v29 = vadd.f32 %v2650_v58, %v5431_v32  ;;  %v5545_v26 = vadd.f32 %v5414_v20, %v3044_v33  ;;  %v3049_v15 = vadd.f32 %v4257_v55, %v2743_v40  ;;  %v3222_v10 = vsel %vm224_vm0, %v3183_v7, 0.0  ;;  %v5956_v58 = vld [vmem:[#allocation10_spill] sm:$0xff] }
 0x1f7   : > { %v4222_v37 = vpop.f32.mrf.mxu1  ;;  %v2959_v0 = vpop.f32.mrf.mxu0  ;;  %v3122_v56 = vadd.f32 %v3121_v6, %v3120_v31  ;;  %v3221_v54 = vadd.f32 %v3220_v8, %v3219_v38  ;;  %v3186_v32 = vmul.f32 %v5535_v21, %v5535_v21  ;;  %v3226_v61 = vsel %vm224_vm0, %v3185_v27, 0.0 }
 0x1f8   : > { %v3047_v39 = vadd.f32 %v2956_v5, %v2741_v29  ;;  %v2744_v41 = vadd.f32 %v4222_v37, %v5955_v62  ;;  %v3123_v18 = vsel %vm224_vm0, %v5545_v26, 0.0  ;;  %v3184_v42 = vmul.f32 %v5545_v26, %v5545_v26 }
 0x1f9   : > { %v2653_v25 = vpop.f32.mrf.mxu1  ;;  %v4261_v1 = vpop.f32.mrf.mxu0  ;;  %v3223_v55 = vadd.f32 %v3222_v10, %v3221_v54  ;;  %v3124_v11 = vadd.f32 %v3123_v18, %v3122_v56  ;;  %v5562_v4 = vadd.f32 %v5414_v20, %v3049_v15  ;;  %v3127_v36 = vsel %vm224_vm0, %v5535_v21, 0.0  ;;  %v5957_v10 = vld [vmem:[#allocation11_spill] sm:$0xff] }
 0x1fa   : > { %v5556_v47 = vadd.f32 %v5414_v20, %v3047_v39  ;;  %v3050_v51 = vadd.f32 %v4258_v60, %v2744_v41  ;;  %v3224_v57 = vsel %vm224_vm0, %v3184_v42, 0.0  ;;  %v2742_v13 = vadd.f32 %v2653_v25, %v5437_v2 }
 0x1fb   : > { %v4225_v5 = vpop.f32.mrf.mxu1  ;;  %v2972_v12 = vpop.f32.mrf.mxu0  ;;  %v3126_v35 = vadd.f32 %v3125_v49, %v3124_v11  ;;  %v3225_v7 = vadd.f32 %v3224_v57, %v3223_v55  ;;  %v3228_v38 = vsel %vm224_vm0, %v3186_v32, 0.0  ;;  %v3189_v6 = vmul.f32 %v5562_v4, %v5562_v4 }
 0x1fc   : > { %v3187_v33 = vmul.f32 %v5556_v47, %v5556_v47  ;;  %v5571_v43 = vadd.f32 %v5414_v20, %v3050_v51  ;;  %v3048_v40 = vadd.f32 %v2959_v0, %v2742_v13  ;;  %v2747_v60 = vadd.f32 %v4225_v5, %v5956_v58 }
 0x1fd   : > { %v2666_v8 = vpop.f32.mrf.mxu1  ;;  %v4262_v2 = vpop.f32.mrf.mxu0  ;;  %v3227_v31 = vadd.f32 %v3226_v61, %v3225_v7  ;;  %v3128_v29 = vadd.f32 %v3127_v36, %v3126_v35  ;;  %v3129_v15 = vsel %vm224_vm0, %v5556_v47, 0.0  ;;  %v3133_v13 = vsel %vm224_vm0, %v5562_v4, 0.0 }
 0x1fe   : > { %v2745_v27 = vadd.f32 %v2666_v8, %v5440_v9  ;;  %v5581_v37 = vadd.f32 %v5414_v20, %v3048_v40  ;;  %v3053_v0 = vadd.f32 %v4261_v1, %v2747_v60  ;;  %v3230_v18 = vsel %vm224_vm0, %v3187_v33, 0.0 }
 0x1ff   : > { %v4226_v56 = vpop.f32.mrf.mxu1  ;;  %v2975_v54 = vpop.f32.mrf.mxu0  ;;  %v3130_v39 = vadd.f32 %v3129_v15, %v3128_v29  ;;  %v3229_v62 = vadd.f32 %v3228_v38, %v3227_v31  ;;  %v3190_v9 = vmul.f32 %v5571_v43, %v5571_v43  ;;  %v3234_v7 = vsel %vm224_vm0, %v3189_v6, 0.0  ;;  %v5958_v38 = vld [vmem:[#allocation12_spill] sm:$0xff] }
 0x200   : > { %v3051_v41 = vadd.f32 %v2972_v12, %v2745_v27  ;;  %v2748_v32 = vadd.f32 %v4226_v56, %v5957_v10  ;;  %v3131_v42 = vsel %vm224_vm0, %v5581_v37, 0.0  ;;  %v3188_v25 = vmul.f32 %v5581_v37, %v5581_v37 }
 0x201   : > { %v2669_v55 = vpop.f32.mrf.mxu1  ;;  %v4265_v1 = vpop.f32.mrf.mxu0  ;;  %v3231_v11 = vadd.f32 %v3230_v18, %v3229_v62  ;;  %v3132_v51 = vadd.f32 %v3131_v42, %v3130_v39  ;;  %v5598_v12 = vadd.f32 %v5414_v20, %v3053_v0  ;;  %v3135_v33 = vsel %vm224_vm0, %v5571_v43, 0.0 }
 0x202   : > { %v5592_v49 = vadd.f32 %v5414_v20, %v3051_v41  ;;  %v3054_v57 = vadd.f32 %v4262_v2, %v2748_v32  ;;  %v3232_v5 = vsel %vm224_vm0, %v3188_v25, 0.0  ;;  %v2746_v61 = vadd.f32 %v2669_v55, %v5443_v23 }
 0x203   : > { %v4229_v36 = vpop.f32.mrf.mxu1  ;;  %v2988_v35 = vpop.f32.mrf.mxu0  ;;  %v3134_v40 = vadd.f32 %v3133_v13, %v3132_v51  ;;  %v3233_v58 = vadd.f32 %v3232_v5, %v3231_v11  ;;  %v3236_v27 = vsel %vm224_vm0, %v3190_v9, 0.0  ;;  %v3193_v56 = vmul.f32 %v5598_v12, %v5598_v12  ;;  %v5959_v9 = vld [vmem:[#allocation13_spill] sm:$0xff] }
 0x204   : > { %v3191_v60 = vmul.f32 %v5592_v49, %v5592_v49  ;;  %v5607_v8 = vadd.f32 %v5414_v20, %v3054_v57  ;;  %v3052_v2 = vadd.f32 %v2975_v54, %v2746_v61  ;;  %v2751_v31 = vadd.f32 %v4229_v36, %v5958_v38 }
 0x205   : > { %v2682_v29 = vpop.f32.mrf.mxu1  ;;  %v4266_v23 = vpop.f32.mrf.mxu0  ;;  %v3235_v15 = vadd.f32 %v3234_v7, %v3233_v58  ;;  %v3136_v6 = vadd.f32 %v3135_v33, %v3134_v40  ;;  %v3137_v39 = vsel %vm224_vm0, %v5592_v49, 0.0 }
 0x206   : > { %v2749_v0 = vadd.f32 %v2682_v29, %v5450_v24  ;;  %v5617_v62 = vadd.f32 %v5414_v20, %v3052_v2  ;;  %v3057_v54 = vadd.f32 %v4265_v1, %v2751_v31  ;;  %v3238_v55 = vsel %vm224_vm0, %v3191_v60, 0.0 }
 0x207   : > { %v4230_v41 = vpop.f32.mrf.mxu1  ;;  %v2991_v10 = vpop.f32.mrf.mxu0  ;;  %v3138_v32 = vadd.f32 %v3137_v39, %v3136_v6  ;;  %v3237_v18 = vadd.f32 %v3236_v27, %v3235_v15  ;;  %v3194_v24 = vmul.f32 %v5607_v8, %v5607_v8  ;;  %v3242_v2 = vsel %vm224_vm0, %v3193_v56, 0.0  ;;  %v5960_v6 = vld [vmem:[#allocation14_spill] sm:$0xff] }
 0x208   : > { %v3055_v42 = vadd.f32 %v2988_v35, %v2749_v0  ;;  %v2752_v25 = vadd.f32 %v4230_v41, %v5959_v9  ;;  %v3139_v11 = vsel %vm224_vm0, %v5617_v62, 0.0  ;;  %v3192_v51 = vmul.f32 %v5617_v62, %v5617_v62 }
 0x209   : > { %v2685_v57 = vpop.f32.mrf.mxu1  ;;  %v4269_v1 = vpop.f32.mrf.mxu0  ;;  %v3239_v13 = vadd.f32 %v3238_v55, %v3237_v18  ;;  %v3140_v5 = vadd.f32 %v3139_v11, %v3138_v32  ;;  %v3141_v35 = vsel %vm224_vm0, %v5598_v12, 0.0  ;;  %v5634_v33 = vadd.f32 %v5414_v20, %v3057_v54 }
 0x20a   : > { %v5628_v61 = vadd.f32 %v5414_v20, %v3055_v42  ;;  %v3058_v36 = vadd.f32 %v4266_v23, %v2752_v25  ;;  %v3240_v7 = vsel %vm224_vm0, %v3192_v51, 0.0  ;;  %v2750_v40 = vadd.f32 %v2685_v57, %v5453_v44 }
 0x20b   : > { %v4233_v58 = vpop.f32.mrf.mxu1  ;;  %v3004_v60 = vpop.f32.mrf.mxu0  ;;  %v3143_v38 = vsel %vm224_vm0, %v5607_v8, 0.0  ;;  %v3142_v31 = vadd.f32 %v3141_v35, %v3140_v5  ;;  %v3241_v29 = vadd.f32 %v3240_v7, %v3239_v13  ;;  %v3244_v23 = vsel %vm224_vm0, %v3194_v24, 0.0 }
 0x20c   : > { %v3195_v27 = vmul.f32 %v5628_v61, %v5628_v61  ;;  %v3056_v15 = vadd.f32 %v2991_v10, %v2750_v40  ;;  %v2755_v0 = vadd.f32 %v4233_v58, %v5960_v6  ;;  %v5645_v32 = vadd.f32 %v5414_v20, %v3058_v36 }
 0x20d   : > { %v2698_v39 = vpop.f32.mrf.mxu1  ;;  %v4270_v54 = vpop.f32.mrf.mxu0  ;;  %v3243_v44 = vadd.f32 %v3242_v2, %v3241_v29  ;;  %v3144_v41 = vadd.f32 %v3143_v38, %v3142_v31  ;;  %v3197_v18 = vmul.f32 %v5634_v33, %v5634_v33  ;;  %v3145_v42 = vsel %vm224_vm0, %v5628_v61, 0.0 }
 0x20e   : > { %v2753_v56 = vadd.f32 %v2698_v39, %v5456_v45  ;;  %v5653_v9 = vadd.f32 %v5414_v20, %v3056_v15  ;;  %v3061_v10 = vadd.f32 %v4269_v1, %v2755_v0  ;;  %v3149_v45 = vsel %vm224_vm0, %v5634_v33, 0.0 }
 0x20f   : > { %v4234_v25 = vpop.f32.mrf.mxu1  ;;  %v3007_v55 = vpop.f32.mrf.mxu0  ;;  %v3146_v24 = vadd.f32 %v3145_v42, %v3144_v41  ;;  %v3245_v11 = vadd.f32 %v3244_v23, %v3243_v44  ;;  %v3246_v13 = vsel %vm224_vm0, %v3195_v27, 0.0  ;;  %v3198_v40 = vmul.f32 %v5645_v32, %v5645_v32 }
 0x210   : > { %v3059_v51 = vadd.f32 %v3004_v60, %v2753_v56  ;;  %v2756_v57 = vadd.f32 %v4234_v25, %v5377_v63  ;;  %v3147_v5 = vsel %vm224_vm0, %v5653_v9, 0.0  ;;  %v3196_v36 = vmul.f32 %v5653_v9, %v5653_v9  ;;  %v5961_v56 = vld [vmem:[#allocation15_spill] sm:$0xff] }
 0x211   : > { %v2701_v35 = vpop.f32.mrf.mxu1  ;;  %v4273_v1 = vpop.f32.mrf.mxu0  ;;  %v3247_v7 = vadd.f32 %v3246_v13, %v3245_v11  ;;  %v3148_v58 = vadd.f32 %v3147_v5, %v3146_v24  ;;  %v5670_v2 = vadd.f32 %v5414_v20, %v3061_v10  ;;  %v3250_v23 = vsel %vm224_vm0, %v3197_v18, 0.0 }
 0x212   : > { %v5666_v63 = vadd.f32 %v5414_v20, %v3059_v51  ;;  %v3248_v60 = vsel %vm224_vm0, %v3196_v36, 0.0  ;;  %v3062_v38 = vadd.f32 %v4270_v54, %v2756_v57  ;;  %v2754_v31 = vadd.f32 %v2701_v35, %v5459_v48 }
 0x213   : > { %v4237_v29 = vpop.f32.mrf.mxu1  ;;  %v3150_v27 = vadd.f32 %v3149_v45, %v3148_v58  ;;  %v3249_v15 = vadd.f32 %v3248_v60, %v3247_v7  ;;  %v3020_v6 = vpop.f32.mrf.mxu0  ;;  %v2452_v0 = vadd.f32 %v5384_v16, %v5470_v46  ;;  %v3151_v39 = vsel %vm224_vm0, %v5645_v32, 0.0 }
 0x214   : > { %v3199_v44 = vmul.f32 %v5666_v63, %v5666_v63  ;;  %v3060_v41 = vadd.f32 %v3007_v55, %v2754_v31  ;;  %v2759_v54 = vadd.f32 %v4237_v29, %v5961_v56  ;;  %v3252_v48 = vsel %vm224_vm0, %v3198_v40, 0.0 }
 0x215   : > { %v2714_v42 = vpop.f32.mrf.mxu1  ;;  %v3251_v10 = vadd.f32 %v3250_v23, %v3249_v15  ;;  %v3152_v18 = vadd.f32 %v3151_v39, %v3150_v27  ;;  %v3201_v24 = vmul.f32 %v5670_v2, %v5670_v2  ;;  %v3153_v16 = vsel %vm224_vm0, %v5666_v63, 0.0  ;;  %v4274_v13 = vpop.f32.mrf.mxu0 }
 0x216   : > { %v2757_v25 = vadd.f32 %v2714_v42, %v5467_v22  ;;  %v5688_v46 = vadd.f32 %v5414_v20, %v3062_v38  ;;  %v5691_v55 = vadd.f32 %v5414_v20, %v3060_v41  ;;  %v3254_v22 = vsel %vm224_vm0, %v3199_v44, 0.0 }
 0x217   : > { %v4238_v11 = vpop.f32.mrf.mxu1  ;;  %v3154_v51 = vadd.f32 %v3153_v16, %v3152_v18  ;;  %v3253_v57 = vadd.f32 %v3252_v48, %v3251_v10  ;;  %v3065_v7 = vadd.f32 %v4273_v1, %v2759_v54  ;;  %v3157_v58 = vsel %vm224_vm0, %v5670_v2, 0.0  ;;  %v3023_v39 = vpop.f32.mrf.mxu0 }
 0x218   : > { %v3063_v45 = vadd.f32 %v3020_v6, %v2757_v25  ;;  %v2760_v5 = vadd.f32 %v4238_v11, %v5389_v14  ;;  %v3155_v36 = vsel %vm224_vm0, %v5691_v55, 0.0  ;;  %v3200_v35 = vmul.f32 %v5691_v55, %v5691_v55 }
 0x219   : > { %v2717_v40 = vpop.f32.mrf.mxu1  ;;  %v3255_v60 = vadd.f32 %v3254_v22, %v3253_v57  ;;  %v3156_v38 = vadd.f32 %v3155_v36, %v3154_v51  ;;  %v3202_v14 = vmul.f32 %v5688_v46, %v5688_v46  ;;  %v3258_v15 = vsel %vm224_vm0, %v3201_v24, 0.0 }
 0x21a   : > { %v5702_v31 = vadd.f32 %v5414_v20, %v3063_v45  ;;  %v3256_v29 = vsel %vm224_vm0, %v3200_v35, 0.0  ;;  %v3066_v23 = vadd.f32 %v4274_v13, %v2760_v5  ;;  %v2758_v27 = vadd.f32 %v2717_v40, %v2452_v0 }
 0x21b   : > { %v3158_v6 = vadd.f32 %v3157_v58, %v3156_v38  ;;  %v3257_v1 = vadd.f32 %v3256_v29, %v3255_v60  ;;  %v3159_v44 = vsel %vm224_vm0, %v5688_v46, 0.0  ;;  %v5711_v41 = vadd.f32 %v5414_v20, %v3065_v7 }
 0x21c   : > { %v3203_v56 = vmul.f32 %v5702_v31, %v5702_v31  ;;  %v3064_v54 = vadd.f32 %v3023_v39, %v2758_v27  ;;  %v3260_v10 = vsel %vm224_vm0, %v3202_v14, 0.0  ;;  %v3161_v0 = vsel %vm224_vm0, %v5702_v31, 0.0 }
 0x21d   : > { %v3259_v42 = vadd.f32 %v3258_v15, %v3257_v1  ;;  %v3160_v48 = vadd.f32 %v3159_v44, %v3158_v6  ;;  %v5719_v18 = vadd.f32 %v5414_v20, %v3066_v23  ;;  %v3205_v11 = vmul.f32 %v5711_v41, %v5711_v41 }
 0x21e   : > { %v3103_v25 = vadd.f32 %v5414_v20, %v3064_v54  ;;  %v3262_v51 = vsel %vm224_vm0, %v3203_v56, 0.0  ;;  %v3165_v22 = vsel %vm224_vm0, %v5711_v41, 0.0 }
 0x21f   : > { %v3162_v24 = vadd.f32 %v3161_v0, %v3160_v48  ;;  %v3261_v16 = vadd.f32 %v3260_v10, %v3259_v42  ;;  %v3206_v36 = vmul.f32 %v5719_v18, %v5719_v18  ;;  %v3266_v40 = vsel %vm224_vm0, %v3205_v11, 0.0 }
 0x220   : > { %v3163_v57 = vsel %vm224_vm0, %v3103_v25, 0.0  ;;  %v3204_v45 = vmul.f32 %v3103_v25, %v3103_v25  ;;  %v3167_v58 = vsel %vm224_vm0, %v5719_v18, 0.0 }
 0x221   : > { %v3263_v13 = vadd.f32 %v3262_v51, %v3261_v16  ;;  %v3164_v5 = vadd.f32 %v3163_v57, %v3162_v24  ;;  %v3268_v14 = vsel %vm224_vm0, %v3206_v36, 0.0  ;;  %v3287_v57 = vlaneseq }
 0x222   : > { %v3264_v20 = vsel %vm224_vm0, %v3204_v45, 0.0 }
 0x223   : > { %v3166_v35 = vadd.f32 %v3165_v22, %v3164_v5  ;;  %v3265_v7 = vadd.f32 %v3264_v20, %v3263_v13  ;;  %v3288_v45 = vshrl.u32 %v3287_v57, 7  ;;  %v3282_v13 = vld [vmem:[%s5937_s3] sm:$0x1] }
 0x224   : > { %v3284_v20 = vld [vmem:[%s5938_s4] sm:$0x1] }
 0x225   : > { %v3168_v60 = vadd.f32 %v3167_v58, %v3166_v35  ;;  %v3267_v38 = vadd.f32 %v3266_v40, %v3265_v7  ;;  %v3289_v5 = vsub.s32 0, %v3288_v45 }
 0x227   : > { %v3169_v29 = vrot.slane %v3168_v60, 4  ;;  %v3269_v23 = vadd.f32 %v3268_v14, %v3267_v38 }
 0x229   : > { %v3170_v27 = vadd.f32 %v3169_v29, %v3168_v60  ;;  %v3270_v15 = vrot.slane %v3269_v23, 4 }
 0x22b   : > { %v3171_v6 = vrot.slane %v3170_v27, 2  ;;  %v3271_v1 = vadd.f32 %v3270_v15, %v3269_v23 }
 0x22d   : > { %v3172_v39 = vadd.f32 %v3171_v6, %v3170_v27  ;;  %v3272_v44 = vrot.slane %v3271_v1, 2 }
 0x22f   : > { %v3173_v56 = vrot.slane %v3172_v39, 1  ;;  %v3273_v54 = vadd.f32 %v3272_v44, %v3271_v1 }
 0x231   : > { %v3174_v42 = vadd.f32 %v3173_v56, %v3172_v39  ;;  %v3274_v48 = vrot.slane %v3273_v54, 1 }
 0x233   : > { %v3275_v10 = vadd.f32 %v3274_v48, %v3273_v54  ;;  %v3276_v0 = vmul.f32 0.00390625, %v3174_v42 }
 0x235   : > { %v3277_v24 = vmul.f32 0.00390625, %v3275_v10  ;;  %v3278_v16 = vmul.f32 %v3276_v0, %v3276_v0 }
 0x237   : > { %v3279_v11 = vsub.f32 %v3277_v24, %v3278_v16 }
 0x239   : > { %v3280_v51 = vadd.f32 1e-05, %v3279_v11 }
 0x23b   : > { %4339 = vrsqrt.f32 %v3280_v51 }
 0x248   : > { %v4340_v22 = vpop.eup %4339 }
 0x249   : > { %v3283_v36 = vmul.f32 %v4340_v22, %v3282_v13 }
 0x24b   : > { %v3285_v35 = vmul.f32 %v3283_v36, %v3276_v0  ;;  %v3290_v7 = vrot.slane %v3283_v36, %v3289_v5 }
 0x24d   : > { %v3286_v40 = vsub.f32 %v3284_v20, %v3285_v35  ;;  %v3320_v58 = vmul.f32 %v3290_v7, %v3103_v25  ;;  %v3291_v60 = vmul.f32 %v3290_v7, %v5428_v28  ;;  %v3292_v38 = vmul.f32 %v3290_v7, %v5464_v30 }
 0x24e   : > { %v3293_v14 = vmul.f32 %v3290_v7, %v5434_v59  ;;  %v3294_v29 = vmul.f32 %v3290_v7, %v5446_v50  ;;  %v3295_v23 = vmul.f32 %v3290_v7, %v5484_v53  ;;  %v3296_v27 = vmul.f32 %v3290_v7, %v5509_v34 }
 0x24f   : > { %v3327_v15 = vrot.slane %v3286_v40, %v3289_v5  ;;  %v3297_v6 = vmul.f32 %v3290_v7, %v5491_v52  ;;  %v3298_v1 = vmul.f32 %v3290_v7, %v5499_v19  ;;  %v3299_v25 = vmul.f32 %v3290_v7, %v5520_v17 }
 0x250   : > { %v3300_v28 = vmul.f32 %v3290_v7, %v5545_v26  ;;  %v3301_v30 = vmul.f32 %v3290_v7, %v5526_v3  ;;  %v3302_v59 = vmul.f32 %v3290_v7, %v5535_v21  ;;  %v3303_v50 = vmul.f32 %v3290_v7, %v5556_v47 }
 0x251   : > { %v3358_v53 = vadd.f32 %v3327_v15, %v3320_v58  ;;  %v3304_v34 = vmul.f32 %v3290_v7, %v5581_v37  ;;  %v3305_v39 = vmul.f32 %v3290_v7, %v5562_v4  ;;  %v3306_v44 = vmul.f32 %v3290_v7, %v5571_v43 }
 0x252   : > { %v3307_v52 = vmul.f32 %v3290_v7, %v5592_v49  ;;  %v3308_v19 = vmul.f32 %v3290_v7, %v5617_v62  ;;  %v3309_v17 = vmul.f32 %v3290_v7, %v5598_v12  ;;  %v3310_v26 = vmul.f32 %v3290_v7, %v5607_v8 }
 0x253   : > { %v3390_v3 = vmax.f32 %v3358_v53, 0.0  ;;  %v3311_v21 = vmul.f32 %v3290_v7, %v5628_v61  ;;  %v3312_v47 = vmul.f32 %v3290_v7, %v5653_v9  ;;  %v3313_v56 = vmul.f32 %v3290_v7, %v5634_v33 }
 0x254   : > { %v3314_v37 = vmul.f32 %v3290_v7, %v5645_v32  ;;  %v3315_v4 = vmul.f32 %v3290_v7, %v5666_v63  ;;  %v3316_v43 = vmul.f32 %v3290_v7, %v5691_v55  ;;  %v3317_v49 = vmul.f32 %v3290_v7, %v5670_v2 }
 0x255   : > { %3422 = vst.msk [vmem:[%s5771_s6 + $0xe8] sm:$0xff] %vm224_vm0, %v3390_v3  ;;  %v3318_v12 = vmul.f32 %v3290_v7, %v5688_v46  ;;  %v3319_v8 = vmul.f32 %v3290_v7, %v5702_v31  ;;  %v3321_v62 = vmul.f32 %v3290_v7, %v5711_v41  ;;  %v3322_v61 = vmul.f32 %v3290_v7, %v5719_v18 }
 0x256   : > { %v3329_v33 = vadd.f32 %v3327_v15, %v3291_v60  ;;  %v3330_v32 = vadd.f32 %v3327_v15, %v3292_v38  ;;  %v3331_v9 = vadd.f32 %v3327_v15, %v3293_v14  ;;  %v3332_v63 = vadd.f32 %v3327_v15, %v3294_v29 }
 0x257   : > { %v3333_v55 = vadd.f32 %v3327_v15, %v3295_v23  ;;  %v3334_v54 = vadd.f32 %v3327_v15, %v3296_v27  ;;  %v3335_v2 = vadd.f32 %v3327_v15, %v3297_v6  ;;  %v3336_v42 = vadd.f32 %v3327_v15, %v3298_v1 }
 0x258   : > { %v3337_v48 = vadd.f32 %v3327_v15, %v3299_v25  ;;  %v3338_v10 = vadd.f32 %v3327_v15, %v3300_v28  ;;  %v3339_v0 = vadd.f32 %v3327_v15, %v3301_v30  ;;  %v3340_v24 = vadd.f32 %v3327_v15, %v3302_v59 }
 0x259   : > { %v3341_v16 = vadd.f32 %v3327_v15, %v3303_v50  ;;  %v3342_v46 = vadd.f32 %v3327_v15, %v3304_v34  ;;  %v3343_v11 = vadd.f32 %v3327_v15, %v3305_v39  ;;  %v3344_v31 = vadd.f32 %v3327_v15, %v3306_v44 }
 0x25a   : > { %v3345_v51 = vadd.f32 %v3327_v15, %v3307_v52  ;;  %v5779_v41 = vadd.f32 %v3327_v15, %v3308_v19  ;;  %v5781_v18 = vadd.f32 %v3327_v15, %v3309_v17  ;;  %v5783_v57 = vadd.f32 %v3327_v15, %v3310_v26 }
 0x25b   : > { %v5785_v45 = vadd.f32 %v3327_v15, %v3311_v21  ;;  %v5787_v13 = vadd.f32 %v3327_v15, %v3312_v47  ;;  %v5789_v5 = vadd.f32 %v3327_v15, %v3313_v56  ;;  %v5791_v22 = vadd.f32 %v3327_v15, %v3314_v37 }
 0x25c   : > { %v5793_v36 = vadd.f32 %v3327_v15, %v3315_v4  ;;  %v5795_v20 = vadd.f32 %v3327_v15, %v3316_v43  ;;  %v5797_v35 = vadd.f32 %v3327_v15, %v3317_v49  ;;  %v5799_v7 = vadd.f32 %v3327_v15, %v3318_v12 }
 0x25d   : > { %v5801_v40 = vadd.f32 %v3327_v15, %v3319_v8  ;;  %v5803_v58 = vadd.f32 %v3327_v15, %v3321_v62  ;;  %v5805_v60 = vadd.f32 %v3327_v15, %v3322_v61  ;;  %v3361_v38 = vmax.f32 %v3329_v33, 0.0 }
 0x25e   : > { %v3362_v14 = vmax.f32 %v3330_v32, 0.0  ;;  %v3363_v29 = vmax.f32 %v3331_v9, 0.0  ;;  %v3364_v23 = vmax.f32 %v3332_v63, 0.0  ;;  %v3365_v27 = vmax.f32 %v3333_v55, 0.0 }
 0x25f   : > { %v3366_v6 = vmax.f32 %v3334_v54, 0.0  ;;  %v3367_v1 = vmax.f32 %v3335_v2, 0.0  ;;  %v3368_v25 = vmax.f32 %v3336_v42, 0.0  ;;  %v3369_v28 = vmax.f32 %v3337_v48, 0.0  ;;  %3393 = vst.msk [vmem:[%s5771_s6] sm:$0xff] %vm224_vm0, %v3361_v38 }
 0x260   : > { %v3370_v15 = vmax.f32 %v3338_v10, 0.0  ;;  %v3371_v30 = vmax.f32 %v3339_v0, 0.0  ;;  %v3372_v59 = vmax.f32 %v3340_v24, 0.0  ;;  %v3373_v50 = vmax.f32 %v3341_v16, 0.0  ;;  %3394 = vst.msk [vmem:[%s5771_s6 + $0x8] sm:$0xff] %vm224_vm0, %v3362_v14  ;;  %3395 = vst.msk [vmem:[%s5771_s6 + $0x10] sm:$0xff] %vm224_vm0, %v3363_v29 }
 0x261   : > { %3396 = vst.msk [vmem:[%s5771_s6 + $0x18] sm:$0xff] %vm224_vm0, %v3364_v23  ;;  %3397 = vst.msk [vmem:[%s5771_s6 + $0x20] sm:$0xff] %vm224_vm0, %v3365_v27  ;;  %v3374_v53 = vmax.f32 %v3342_v46, 0.0  ;;  %v3375_v34 = vmax.f32 %v3343_v11, 0.0  ;;  %v3376_v39 = vmax.f32 %v3344_v31, 0.0  ;;  %v3377_v44 = vmax.f32 %v3345_v51, 0.0 }
 0x262   : > { %3398 = vst.msk [vmem:[%s5771_s6 + $0x28] sm:$0xff] %vm224_vm0, %v3366_v6  ;;  %3399 = vst.msk [vmem:[%s5771_s6 + $0x30] sm:$0xff] %vm224_vm0, %v3367_v1  ;;  %v3378_v52 = vmax.f32 %v5779_v41, 0.0  ;;  %v3379_v19 = vmax.f32 %v5781_v18, 0.0  ;;  %v3380_v17 = vmax.f32 %v5783_v57, 0.0  ;;  %v3381_v26 = vmax.f32 %v5785_v45, 0.0 }
 0x263   : > { %3400 = vst.msk [vmem:[%s5771_s6 + $0x38] sm:$0xff] %vm224_vm0, %v3368_v25  ;;  %3401 = vst.msk [vmem:[%s5771_s6 + $0x40] sm:$0xff] %vm224_vm0, %v3369_v28  ;;  %v3382_v3 = vmax.f32 %v5787_v13, 0.0  ;;  %v3383_v21 = vmax.f32 %v5789_v5, 0.0  ;;  %v3384_v47 = vmax.f32 %v5791_v22, 0.0  ;;  %v3385_v56 = vmax.f32 %v5793_v36, 0.0 }
 0x264   : > { %3402 = vst.msk [vmem:[%s5771_s6 + $0x48] sm:$0xff] %vm224_vm0, %v3370_v15  ;;  %3403 = vst.msk [vmem:[%s5771_s6 + $0x50] sm:$0xff] %vm224_vm0, %v3371_v30  ;;  %v3386_v37 = vmax.f32 %v5795_v20, 0.0  ;;  %v3387_v4 = vmax.f32 %v5797_v35, 0.0  ;;  %v3388_v43 = vmax.f32 %v5799_v7, 0.0  ;;  %v3389_v49 = vmax.f32 %v5801_v40, 0.0 }
 0x265   : > { %3404 = vst.msk [vmem:[%s5771_s6 + $0x58] sm:$0xff] %vm224_vm0, %v3372_v59  ;;  %3405 = vst.msk [vmem:[%s5771_s6 + $0x60] sm:$0xff] %vm224_vm0, %v3373_v50  ;;  %v3391_v12 = vmax.f32 %v5803_v58, 0.0  ;;  %v3392_v8 = vmax.f32 %v5805_v60, 0.0 }
 0x266   : > { %3406 = vst.msk [vmem:[%s5771_s6 + $0x68] sm:$0xff] %vm224_vm0, %v3374_v53  ;;  %3407 = vst.msk [vmem:[%s5771_s6 + $0x70] sm:$0xff] %vm224_vm0, %v3375_v34 }
 0x267   : > { %3408 = vst.msk [vmem:[%s5771_s6 + $0x78] sm:$0xff] %vm224_vm0, %v3376_v39  ;;  %3409 = vst.msk [vmem:[%s5771_s6 + $0x80] sm:$0xff] %vm224_vm0, %v3377_v44 }
 0x268   : > { %3410 = vst.msk [vmem:[%s5771_s6 + $0x88] sm:$0xff] %vm224_vm0, %v3378_v52  ;;  %3411 = vst.msk [vmem:[%s5771_s6 + $0x90] sm:$0xff] %vm224_vm0, %v3379_v19 }
 0x269   : > { %3412 = vst.msk [vmem:[%s5771_s6 + $0x98] sm:$0xff] %vm224_vm0, %v3380_v17  ;;  %3413 = vst.msk [vmem:[%s5771_s6 + $0xa0] sm:$0xff] %vm224_vm0, %v3381_v26 }
 0x26a   : > { %3414 = vst.msk [vmem:[%s5771_s6 + $0xa8] sm:$0xff] %vm224_vm0, %v3382_v3  ;;  %3415 = vst.msk [vmem:[%s5771_s6 + $0xb0] sm:$0xff] %vm224_vm0, %v3383_v21 }
 0x26b   : > { %3416 = vst.msk [vmem:[%s5771_s6 + $0xb8] sm:$0xff] %vm224_vm0, %v3384_v47  ;;  %3417 = vst.msk [vmem:[%s5771_s6 + $0xc0] sm:$0xff] %vm224_vm0, %v3385_v56 }
 0x26c   : > { %3418 = vst.msk [vmem:[%s5771_s6 + $0xc8] sm:$0xff] %vm224_vm0, %v3386_v37  ;;  %3419 = vst.msk [vmem:[%s5771_s6 + $0xd0] sm:$0xff] %vm224_vm0, %v3387_v4 }
 0x26d   : > { %3420 = vst.msk [vmem:[%s5771_s6 + $0xd8] sm:$0xff] %vm224_vm0, %v3388_v43  ;;  %3421 = vst.msk [vmem:[%s5771_s6 + $0xe0] sm:$0xff] %vm224_vm0, %v3389_v49 }
 0x26e   : > { %3423 = vst.msk [vmem:[%s5771_s6 + $0xf0] sm:$0xff] %vm224_vm0, %v3391_v12  ;;  %3424 = vst.msk [vmem:[%s5771_s6 + $0xf8] sm:$0xff] %vm224_vm0, %v3392_v8 }
 0x26f   : > { %4354 = shalt.err (!%p4351_p3)
}
 0x270   : > { %s4355_s16 = scalar_lea.hbm %s5866_s10, 4096  ;;  %s4359_s25 = scalar_lea.hbm %s5939_s5, 8192 }
 0x271   : > { %p4356_p4 = scmp.ne.s32.totalorder %s5866_s10, %s4355_s16  ;;  %p4360_p9 = scmp.lt.s32.totalorder %s5866_s10, %s5939_s5 }
 0x272   : > { %p4361_p10 = scmp.lt.s32.totalorder %s4359_s25, %s4355_s16 }
 0x273   : > { %p4357_p7 = pnand %p4356_p4, %p4475_p5 }
 0x274   : > { %p4362_p11 = por %p4361_p10, %p4360_p9 }
 0x275   : > { %p4358_p8 = pneg %p4357_p7 }
 0x277   : > { %p4363_p12 = pnand %p4362_p11, %p4358_p8 }
 0x279   : > { %4366 = shalt.err (!%p4363_p12)
}
 0x27a   : > { %s4405_s6 = smov 128   ;;  %s4406_s7 = smov 8  }
 0x27b   : > { %4279 = dma.vmem_to_hbm [thread:$0]  (%p4475_p5), %s5868_s8, 4096, %s5866_s10, %s5894_s11, %s4405_s6, %s4405_s6, %s4406_s7  }
 0x27c PF: > { %p4285_p13 = scmp.ge.s32.totalorder %s4401_s21, 2  ;;  %s3454_s22 = sand.u32 1, %s4389_s18  }
 0x27d   : > { %s3455_s9 = scalar_lea.sflag [#allocation4], %s3454_s22 }
 0x27e   : > { %p4282_p0 = pnand %p4285_p13, %p4479_p6 }
 0x280   : > { %p4283_p1 = pneg %p4282_p0 }
 0x282   : > { %4384 = dma.done.wait (%p4283_p1), %s3455_s9, 4096  }
 0x283   : > { %4386 = vsyncadd (%p4283_p1), %s3455_s9, 4294963200  ;;  %p15_p2 = scmp.ge.s32.totalorder %s4462_s24, 4   ;;  %s5962_s18 = smov %s4393_s19 }
 0x284   : > { %s5963_s19 = smov %s4397_s20  ;;  %s5964_s20 = smov %s4473_s27 }
 0x285   : > { %s5965_s21 = smov %s4462_s24  ;;  %17 = sbr.rel (!%p15_p2) target bundleno = 3 (0x3), region = 85 }
 0x28a   :  { %3460 = vsyncpa [#allocation4], 1 }
 0x28b   :  { %3462 = vsyncpa [#allocation4 + $0x1], 1 }

</bundles_post_ra>
